<compile_context>
chip_gen: v5e
topology: v5e:2x2
jax: 0.10.0
libtpu: 0.0.40
codegen_flags: <defaults>
</compile_context>

<pallas_src>
import functools

import numpy as np

import jax
import jax.numpy as jnp
from jax.experimental import pallas as pl
from jax.experimental.pallas import tpu as pltpu


# ----------------------------------------------------------------------------
# Fused Block kernel
# ----------------------------------------------------------------------------
def _fused_block_kernel(*refs, H, W, stage_cfg, has_skip, scratch_map):
    """One batch image per grid step.

    refs layout (positional):
      x_ref                          (1, H, W, Cin0)   original input tile
      per stage s: w_s   (9, Cin_s, Cout_s)  folded dw-tap * pw * bn_scale
                   sh_s  (1, Cout_s)         folded bn shift
      if has_skip: skw   (Cin0, Cout)        skip 1x1 weight * bn_scale
                   sksh  (1, Cout)           skip bn shift
      out_ref                        (1, H, W, Cout)
      pad scratches                  (H+2, W+2, Cin_s) zero-halo buffers (VMEM)
    """
    n_stages = len(stage_cfg)
    pos = 0
    x_ref = refs[pos]; pos += 1
    stage_refs = []
    for _ in range(n_stages):
        stage_refs.append((refs[pos], refs[pos + 1]))
        pos += 2
    if has_skip:
        skw_ref, sksh_ref = refs[pos], refs[pos + 1]
        pos += 2
    out_ref = refs[pos]; pos += 1
    pad_refs = refs[pos:]

    # Zero the halo scratches; only the interior is rewritten per stage, so the
    # 1-pixel zero border supplies the conv padding for every stage.  Re-zeroed
    # each grid step (cheap) to stay correct under v7x megacore grid sharding.
    for pr in pad_refs:
        pr[...] = jnp.zeros_like(pr)

    h = x_ref[0]                                       # (H, W, Cin0), f32
    for s, (do_relu, cin, cout) in enumerate(stage_cfg):
        w_ref, sh_ref = stage_refs[s]
        if do_relu:
            # ReLU commutes with the zero halo (relu(0) == 0).
            h = jnp.maximum(h, 0.0)

        pr = pad_refs[scratch_map[s]]
        pr[1:H + 1, 1:W + 1, :] = h                    # interior; border stays 0
        h_flat = h.reshape(H * W, cin)                 # centre-tap window

        # Depthwise-3x3 + pointwise-1x1 + BN-scale as 9 accumulated MXU matmuls:
        #   out = sum_k  window_k @ (diag(dw_k) @ pw * bn_scale)  + bn_shift
        acc = jnp.zeros((H * W, cout), jnp.float32)
        for k in range(9):
            dh, dw = k // 3, k % 3
            if k == 4:
                win = h_flat                           # centre tap: reuse register value
            else:
                win = pr[dh:dh + H, dw:dw + W, :].reshape(H * W, cin)
            acc = acc + jnp.dot(win, w_ref[k],
                                preferred_element_type=jnp.float32)
        h = (acc + sh_ref[...]).reshape(H, W, cout)

    # Skip path + residual add, on data already resident in VMEM.
    if has_skip:
        cin0 = x_ref.shape[-1]
        cout = stage_cfg[-1][2]
        sk = jnp.dot(x_ref[0].reshape(H * W, cin0), skw_ref[...],
                     preferred_element_type=jnp.float32)
        sk = sk + sksh_ref[...]
        h = h + sk.reshape(H, W, cout)
    else:
        h = h + x_ref[0]                               # identity skip (cin == cout)

    out_ref[0] = h


# ----------------------------------------------------------------------------
# pallas_call wrapper
# ----------------------------------------------------------------------------
def fused_block(x_nhwc, kparams):
    N, H, W, Cin0 = x_nhwc.shape
    stages = kparams["stages"]
    stage_cfg = tuple((bool(st["relu"]), int(st["w"].shape[1]), int(st["w"].shape[2]))
                      for st in stages)
    Cout = stage_cfg[-1][2]
    has_skip = kparams["skip"] is not None
    if not has_skip:
        assert Cin0 == Cout, "identity-skip path requires in_filters == out_filters"

    # One zero-halo scratch per distinct stage-input channel count (budget-friendly
    # for v7x's smaller VMEM; shared across stages with the same Cin).
    uniq_cin, scratch_map = [], []
    for _, cin, _ in stage_cfg:
        if cin not in uniq_cin:
            uniq_cin.append(cin)
        scratch_map.append(uniq_cin.index(cin))
    scratch_shapes = [pltpu.VMEM((H + 2, W + 2, c), jnp.float32) for c in uniq_cin]

    args = [x_nhwc]
    in_specs = [pl.BlockSpec((1, H, W, Cin0), lambda n: (n, 0, 0, 0))]
    for st in stages:
        args += [st["w"], st["shift"]]
        in_specs += [pl.BlockSpec(st["w"].shape, lambda n: (0, 0, 0)),
                     pl.BlockSpec(st["shift"].shape, lambda n: (0, 0))]
    if has_skip:
        args += [kparams["skip"]["w"], kparams["skip"]["shift"]]
        in_specs += [pl.BlockSpec(kparams["skip"]["w"].shape, lambda n: (0, 0)),
                     pl.BlockSpec(kparams["skip"]["shift"].shape, lambda n: (0, 0))]

    kernel = functools.partial(_fused_block_kernel, H=H, W=W,
                               stage_cfg=stage_cfg, has_skip=has_skip,
                               scratch_map=tuple(scratch_map))

    return pl.pallas_call(
        kernel,
        out_shape=jax.ShapeDtypeStruct((N, H, W, Cout), jnp.float32),
        grid=(N,),
        in_specs=in_specs,
        out_specs=pl.BlockSpec((1, H, W, Cout), lambda n: (n, 0, 0, 0)),
        scratch_shapes=scratch_shapes,
        compiler_params=pltpu.CompilerParams(dimension_semantics=("parallel",)),
    )(*args)


# ----------------------------------------------------------------------------
# Parameter construction (mirrors Block.__init__), deterministic & synthetic
# ----------------------------------------------------------------------------
def make_bn_params(key, c, eps=1e-5):
    k1, k2, k3, k4 = jax.random.split(key, 4)
    gamma = 1.0 + 0.1 * jax.random.normal(k1, (c,), jnp.float32)
    beta = 0.1 * jax.random.normal(k2, (c,), jnp.float32)
    mean = 0.1 * jax.random.normal(k3, (c,), jnp.float32)
    var = 1.0 + 0.1 * jnp.abs(jax.random.normal(k4, (c,), jnp.float32))
    scale = gamma / jnp.sqrt(var + eps)
    shift = beta - mean * scale
    return scale, shift


def build_block_params(key, in_f, out_f, reps, strides=1,
                       start_with_relu=True, grow_first=True):
    # TODO(synk): strides != 1 (strided depthwise + strided 1x1 skip) not implemented.
    assert strides == 1
    stage_cfg = []  # [leading_relu, cin, cout]
    filters = in_f
    if grow_first:
        stage_cfg.append([True, in_f, out_f])
        filters = out_f
    for _ in range(reps - 1):
        stage_cfg.append([True, filters, filters])
    if not grow_first:
        stage_cfg.append([True, in_f, out_f])
    if not start_with_relu:
        stage_cfg[0][0] = False   # rep = rep[1:]

    params = {"stages": [], "skip": None}
    for relu, cin, cout in stage_cfg:
        key, k1, k2, k3 = jax.random.split(key, 4)
        dw = 0.1 * jax.random.normal(k1, (3, 3, cin), jnp.float32)   # depthwise taps
        pw = 0.1 * jax.random.normal(k2, (cin, cout), jnp.float32)   # 1x1 pointwise
        scale, shift = make_bn_params(k3, cout)
        params["stages"].append(dict(relu=relu, dw=dw, pw=pw, scale=scale, shift=shift))
    if out_f != in_f or strides != 1:
        key, k1, k2 = jax.random.split(key, 3)
        w = 0.1 * jax.random.normal(k1, (in_f, out_f), jnp.float32)  # 1x1 skip conv
        scale, shift = make_bn_params(k2, out_f)
        params["skip"] = dict(w=w, scale=scale, shift=shift)
    return params


def fold_block_params(params):
    """Fold depthwise taps * pointwise weight * BN scale into one (9, Cin, Cout)
    tensor per stage (and BN scale into the skip 1x1 weight) so the kernel is pure
    MXU matmuls + a single +shift per stage."""
    folded = {"stages": [], "skip": None}
    for st in params["stages"]:
        dw9 = st["dw"].reshape(9, -1)                          # (9, Cin), k = dh*3+dw
        w = dw9[:, :, None] * st["pw"][None, :, :]             # (9, Cin, Cout)
        w = w * st["scale"][None, None, :]                     # fold BN scale
        folded["stages"].append(dict(relu=st["relu"], w=w,
                                     shift=st["shift"].reshape(1, -1)))
    if params["skip"] is not None:
        sk = params["skip"]
        folded["skip"] = dict(w=sk["w"] * sk["scale"][None, :],
                              shift=sk["shift"].reshape(1, -1))
    return folded


# ----------------------------------------------------------------------------
# Pure-JAX reference (faithful to the PyTorch forward, inference-mode BN)
# ----------------------------------------------------------------------------
def reference_forward(x_nhwc, params):
    hi = jax.lax.Precision.HIGHEST
    h = x_nhwc
    for st in params["stages"]:
        if st["relu"]:
            h = jax.nn.relu(h)
        c = h.shape[-1]
        dwk = st["dw"].reshape(3, 3, 1, c)                     # HWIO, depthwise
        h = jax.lax.conv_general_dilated(
            h, dwk, window_strides=(1, 1), padding=((1, 1), (1, 1)),
            dimension_numbers=("NHWC", "HWIO", "NHWC"),
            feature_group_count=c, precision=hi)
        h = jnp.einsum("nhwi,io->nhwo", h, st["pw"], precision=hi)
        h = h * st["scale"] + st["shift"]
    if params["skip"] is not None:
        s = jnp.einsum("nhwi,io->nhwo", x_nhwc, params["skip"]["w"], precision=hi)
        s = s * params["skip"]["scale"] + params["skip"]["shift"]
    else:
        s = x_nhwc
    return h + s


# ----------------------------------------------------------------------------
if __name__ == "__main__":
    # Block(in_filters=32, out_filters=64, reps=2, strides=1,
    #       start_with_relu=True, grow_first=True)
    N, C_IN, H, W = 2, 32, 16, 16
    C_OUT, REPS = 64, 2

    key = jax.random.PRNGKey(0)
    kx, kp = jax.random.split(key)

    # PyTorch-style NCHW input.
    x_nchw = jax.random.normal(kx, (N, C_IN, H, W), jnp.float32)
    params = build_block_params(kp, C_IN, C_OUT, REPS, strides=1,
                                start_with_relu=True, grow_first=True)
    kparams = fold_block_params(params)

    x_nhwc = jnp.transpose(x_nchw, (0, 2, 3, 1))          # NCHW -> NHWC
    out_nhwc = fused_block(x_nhwc, kparams)
    out_nchw = jnp.transpose(out_nhwc, (0, 3, 1, 2))      # back to NCHW
    jax.block_until_ready(out_nchw)

    ref_nhwc = reference_forward(x_nhwc, params)
    np.testing.assert_allclose(np.asarray(out_nhwc), np.asarray(ref_nhwc),
                               rtol=2e-3, atol=2e-3)

    print("KERNEL_OK")
</pallas_src>

<mosaic_0001>
module attributes {stable_mosaic.version = 11 : i64} {
  func.func @_fused_block_kernel(%arg0: i32, %arg1: memref<1x16x16x32xf32, #tpu.memory_space<vmem>>, %arg2: memref<9x32x64xf32, #tpu.memory_space<vmem>>, %arg3: memref<1x64xf32, #tpu.memory_space<vmem>>, %arg4: memref<9x64x64xf32, #tpu.memory_space<vmem>>, %arg5: memref<1x64xf32, #tpu.memory_space<vmem>>, %arg6: memref<32x64xf32, #tpu.memory_space<vmem>>, %arg7: memref<1x64xf32, #tpu.memory_space<vmem>>, %arg8: memref<1x16x16x64xf32, #tpu.memory_space<vmem>>, %arg9: memref<18x18x32xf32, #tpu.memory_space<vmem>>, %arg10: memref<18x18x64xf32, #tpu.memory_space<vmem>>) attributes {dimension_semantics = [#tpu.dimension_semantics<parallel>], iteration_bounds = array<i64: 2>, scalar_prefetch = 0 : i64, scratch_operands = 2 : i64, tpu.core_type = #tpu.core_type<tc>, window_params = [{transform_indices = @transform_0, window_bounds = array<i64: 1, 16, 16, 32>}, {pipeline_mode = #tpu.pipeline_mode<synchronous>, transform_indices = @transform_1, window_bounds = array<i64: 9, 32, 64>}, {pipeline_mode = #tpu.pipeline_mode<synchronous>, transform_indices = @transform_2, window_bounds = array<i64: 1, 64>}, {pipeline_mode = #tpu.pipeline_mode<synchronous>, transform_indices = @transform_3, window_bounds = array<i64: 9, 64, 64>}, {pipeline_mode = #tpu.pipeline_mode<synchronous>, transform_indices = @transform_4, window_bounds = array<i64: 1, 64>}, {pipeline_mode = #tpu.pipeline_mode<synchronous>, transform_indices = @transform_5, window_bounds = array<i64: 32, 64>}, {pipeline_mode = #tpu.pipeline_mode<synchronous>, transform_indices = @transform_6, window_bounds = array<i64: 1, 64>}, {transform_indices = @transform_7, window_bounds = array<i64: 1, 16, 16, 64>}]} {
    %cst = arith.constant 0.000000e+00 : f32
    %0 = vector.broadcast %cst : f32 to vector<18x18x32xf32>
    %c0 = arith.constant 0 : index
    %c0_0 = arith.constant 0 : index
    %c0_1 = arith.constant 0 : index
    %1 = vector.load %arg9[%c0, %c0_0, %c0_1] : memref<18x18x32xf32, #tpu.memory_space<vmem>>, vector<18x18x32xf32>
    tpu.vector_store %arg9[%c0, %c0_0, %c0_1], %0 {strides = array<i32>} : memref<18x18x32xf32, #tpu.memory_space<vmem>>, vector<18x18x32xf32>,
    %cst_2 = arith.constant 0.000000e+00 : f32
    %2 = vector.broadcast %cst_2 : f32 to vector<18x18x64xf32>
    %c0_3 = arith.constant 0 : index
    %c0_4 = arith.constant 0 : index
    %c0_5 = arith.constant 0 : index
    %3 = vector.load %arg10[%c0_3, %c0_4, %c0_5] : memref<18x18x64xf32, #tpu.memory_space<vmem>>, vector<18x18x64xf32>
    tpu.vector_store %arg10[%c0_3, %c0_4, %c0_5], %2 {strides = array<i32>} : memref<18x18x64xf32, #tpu.memory_space<vmem>>, vector<18x18x64xf32>,
    %c0_6 = arith.constant 0 : index
    %c0_7 = arith.constant 0 : index
    %c0_8 = arith.constant 0 : index
    %c0_9 = arith.constant 0 : index
    %4 = vector.load %arg1[%c0_6, %c0_7, %c0_8, %c0_9] : memref<1x16x16x32xf32, #tpu.memory_space<vmem>>, vector<1x16x16x32xf32>
    %5 = vector.shape_cast %4 : vector<1x16x16x32xf32> to vector<16x16x32xf32>
    %cst_10 = arith.constant 0.000000e+00 : f32
    %6 = vector.broadcast %cst_10 : f32 to vector<16x16x32xf32>
    %7 = arith.maximumf %5, %6 : vector<16x16x32xf32>
    %c1 = arith.constant 1 : index
    %c1_11 = arith.constant 1 : index
    %c0_12 = arith.constant 0 : index
    %8 = vector.load %arg9[%c1, %c1_11, %c0_12] : memref<18x18x32xf32, #tpu.memory_space<vmem>>, vector<16x16x32xf32>
    tpu.vector_store %arg9[%c1, %c1_11, %c0_12], %7 {strides = array<i32>} : memref<18x18x32xf32, #tpu.memory_space<vmem>>, vector<16x16x32xf32>,
    %9 = vector.shape_cast %7 : vector<16x16x32xf32> to vector<256x32xf32>
    %cst_13 = arith.constant 0.000000e+00 : f32
    %10 = vector.broadcast %cst_13 : f32 to vector<256x64xf32>
    %c0_14 = arith.constant 0 : index
    %c0_15 = arith.constant 0 : index
    %c0_16 = arith.constant 0 : index
    %11 = vector.load %arg9[%c0_14, %c0_15, %c0_16] : memref<18x18x32xf32, #tpu.memory_space<vmem>>, vector<16x16x32xf32>
    %12 = vector.shape_cast %11 : vector<16x16x32xf32> to vector<256x32xf32>
    %c0_17 = arith.constant 0 : index
    %c0_18 = arith.constant 0 : index
    %c0_19 = arith.constant 0 : index
    %13 = vector.load %arg2[%c0_17, %c0_18, %c0_19] : memref<9x32x64xf32, #tpu.memory_space<vmem>>, vector<1x32x64xf32>
    %14 = vector.shape_cast %13 : vector<1x32x64xf32> to vector<32x64xf32>
    %cst_20 = arith.constant dense<0.000000e+00> : vector<256x64xf32>
    %15 = tpu.matmul %12, %14, %cst_20 {dimension_numbers = #tpu.dot_dimension_numbers<[1], [0], [0], [1], [0, 0, 1, 1], [], []>} : vector<256x32xf32>, vector<32x64xf32>, vector<256x64xf32> -> vector<256x64xf32>
    %16 = arith.addf %10, %15 : vector<256x64xf32>
    %c0_21 = arith.constant 0 : index
    %c1_22 = arith.constant 1 : index
    %c0_23 = arith.constant 0 : index
    %17 = vector.load %arg9[%c0_21, %c1_22, %c0_23] : memref<18x18x32xf32, #tpu.memory_space<vmem>>, vector<16x16x32xf32>
    %18 = vector.shape_cast %17 : vector<16x16x32xf32> to vector<256x32xf32>
    %c1_24 = arith.constant 1 : index
    %c0_25 = arith.constant 0 : index
    %c0_26 = arith.constant 0 : index
    %19 = vector.load %arg2[%c1_24, %c0_25, %c0_26] : memref<9x32x64xf32, #tpu.memory_space<vmem>>, vector<1x32x64xf32>
    %20 = vector.shape_cast %19 : vector<1x32x64xf32> to vector<32x64xf32>
    %cst_27 = arith.constant dense<0.000000e+00> : vector<256x64xf32>
    %21 = tpu.matmul %18, %20, %cst_27 {dimension_numbers = #tpu.dot_dimension_numbers<[1], [0], [0], [1], [0, 0, 1, 1], [], []>} : vector<256x32xf32>, vector<32x64xf32>, vector<256x64xf32> -> vector<256x64xf32>
    %22 = arith.addf %16, %21 : vector<256x64xf32>
    %c0_28 = arith.constant 0 : index
    %c2 = arith.constant 2 : index
    %c0_29 = arith.constant 0 : index
    %23 = vector.load %arg9[%c0_28, %c2, %c0_29] : memref<18x18x32xf32, #tpu.memory_space<vmem>>, vector<16x16x32xf32>
    %24 = vector.shape_cast %23 : vector<16x16x32xf32> to vector<256x32xf32>
    %c2_30 = arith.constant 2 : index
    %c0_31 = arith.constant 0 : index
    %c0_32 = arith.constant 0 : index
    %25 = vector.load %arg2[%c2_30, %c0_31, %c0_32] : memref<9x32x64xf32, #tpu.memory_space<vmem>>, vector<1x32x64xf32>
    %26 = vector.shape_cast %25 : vector<1x32x64xf32> to vector<32x64xf32>
    %cst_33 = arith.constant dense<0.000000e+00> : vector<256x64xf32>
    %27 = tpu.matmul %24, %26, %cst_33 {dimension_numbers = #tpu.dot_dimension_numbers<[1], [0], [0], [1], [0, 0, 1, 1], [], []>} : vector<256x32xf32>, vector<32x64xf32>, vector<256x64xf32> -> vector<256x64xf32>
    %28 = arith.addf %22, %27 : vector<256x64xf32>
    %c1_34 = arith.constant 1 : index
    %c0_35 = arith.constant 0 : index
    %c0_36 = arith.constant 0 : index
    %29 = vector.load %arg9[%c1_34, %c0_35, %c0_36] : memref<18x18x32xf32, #tpu.memory_space<vmem>>, vector<16x16x32xf32>
    %30 = vector.shape_cast %29 : vector<16x16x32xf32> to vector<256x32xf32>
    %c3 = arith.constant 3 : index
    %c0_37 = arith.constant 0 : index
    %c0_38 = arith.constant 0 : index
    %31 = vector.load %arg2[%c3, %c0_37, %c0_38] : memref<9x32x64xf32, #tpu.memory_space<vmem>>, vector<1x32x64xf32>
    %32 = vector.shape_cast %31 : vector<1x32x64xf32> to vector<32x64xf32>
    %cst_39 = arith.constant dense<0.000000e+00> : vector<256x64xf32>
    %33 = tpu.matmul %30, %32, %cst_39 {dimension_numbers = #tpu.dot_dimension_numbers<[1], [0], [0], [1], [0, 0, 1, 1], [], []>} : vector<256x32xf32>, vector<32x64xf32>, vector<256x64xf32> -> vector<256x64xf32>
    %34 = arith.addf %28, %33 : vector<256x64xf32>
    %c4 = arith.constant 4 : index
    %c0_40 = arith.constant 0 : index
    %c0_41 = arith.constant 0 : index
    %35 = vector.load %arg2[%c4, %c0_40, %c0_41] : memref<9x32x64xf32, #tpu.memory_space<vmem>>, vector<1x32x64xf32>
    %36 = vector.shape_cast %35 : vector<1x32x64xf32> to vector<32x64xf32>
    %cst_42 = arith.constant dense<0.000000e+00> : vector<256x64xf32>
    %37 = tpu.matmul %9, %36, %cst_42 {dimension_numbers = #tpu.dot_dimension_numbers<[1], [0], [0], [1], [0, 0, 1, 1], [], []>} : vector<256x32xf32>, vector<32x64xf32>, vector<256x64xf32> -> vector<256x64xf32>
    %38 = arith.addf %34, %37 : vector<256x64xf32>
    %c1_43 = arith.constant 1 : index
    %c2_44 = arith.constant 2 : index
    %c0_45 = arith.constant 0 : index
    %39 = vector.load %arg9[%c1_43, %c2_44, %c0_45] : memref<18x18x32xf32, #tpu.memory_space<vmem>>, vector<16x16x32xf32>
    %40 = vector.shape_cast %39 : vector<16x16x32xf32> to vector<256x32xf32>
    %c5 = arith.constant 5 : index
    %c0_46 = arith.constant 0 : index
    %c0_47 = arith.constant 0 : index
    %41 = vector.load %arg2[%c5, %c0_46, %c0_47] : memref<9x32x64xf32, #tpu.memory_space<vmem>>, vector<1x32x64xf32>
    %42 = vector.shape_cast %41 : vector<1x32x64xf32> to vector<32x64xf32>
    %cst_48 = arith.constant dense<0.000000e+00> : vector<256x64xf32>
    %43 = tpu.matmul %40, %42, %cst_48 {dimension_numbers = #tpu.dot_dimension_numbers<[1], [0], [0], [1], [0, 0, 1, 1], [], []>} : vector<256x32xf32>, vector<32x64xf32>, vector<256x64xf32> -> vector<256x64xf32>
    %44 = arith.addf %38, %43 : vector<256x64xf32>
    %c2_49 = arith.constant 2 : index
    %c0_50 = arith.constant 0 : index
    %c0_51 = arith.constant 0 : index
    %45 = vector.load %arg9[%c2_49, %c0_50, %c0_51] : memref<18x18x32xf32, #tpu.memory_space<vmem>>, vector<16x16x32xf32>
    %46 = vector.shape_cast %45 : vector<16x16x32xf32> to vector<256x32xf32>
    %c6 = arith.constant 6 : index
    %c0_52 = arith.constant 0 : index
    %c0_53 = arith.constant 0 : index
    %47 = vector.load %arg2[%c6, %c0_52, %c0_53] : memref<9x32x64xf32, #tpu.memory_space<vmem>>, vector<1x32x64xf32>
    %48 = vector.shape_cast %47 : vector<1x32x64xf32> to vector<32x64xf32>
    %cst_54 = arith.constant dense<0.000000e+00> : vector<256x64xf32>
    %49 = tpu.matmul %46, %48, %cst_54 {dimension_numbers = #tpu.dot_dimension_numbers<[1], [0], [0], [1], [0, 0, 1, 1], [], []>} : vector<256x32xf32>, vector<32x64xf32>, vector<256x64xf32> -> vector<256x64xf32>
    %50 = arith.addf %44, %49 : vector<256x64xf32>
    %c2_55 = arith.constant 2 : index
    %c1_56 = arith.constant 1 : index
    %c0_57 = arith.constant 0 : index
    %51 = vector.load %arg9[%c2_55, %c1_56, %c0_57] : memref<18x18x32xf32, #tpu.memory_space<vmem>>, vector<16x16x32xf32>
    %52 = vector.shape_cast %51 : vector<16x16x32xf32> to vector<256x32xf32>
    %c7 = arith.constant 7 : index
    %c0_58 = arith.constant 0 : index
    %c0_59 = arith.constant 0 : index
    %53 = vector.load %arg2[%c7, %c0_58, %c0_59] : memref<9x32x64xf32, #tpu.memory_space<vmem>>, vector<1x32x64xf32>
    %54 = vector.shape_cast %53 : vector<1x32x64xf32> to vector<32x64xf32>
    %cst_60 = arith.constant dense<0.000000e+00> : vector<256x64xf32>
    %55 = tpu.matmul %52, %54, %cst_60 {dimension_numbers = #tpu.dot_dimension_numbers<[1], [0], [0], [1], [0, 0, 1, 1], [], []>} : vector<256x32xf32>, vector<32x64xf32>, vector<256x64xf32> -> vector<256x64xf32>
    %56 = arith.addf %50, %55 : vector<256x64xf32>
    %c2_61 = arith.constant 2 : index
    %c2_62 = arith.constant 2 : index
    %c0_63 = arith.constant 0 : index
    %57 = vector.load %arg9[%c2_61, %c2_62, %c0_63] : memref<18x18x32xf32, #tpu.memory_space<vmem>>, vector<16x16x32xf32>
    %58 = vector.shape_cast %57 : vector<16x16x32xf32> to vector<256x32xf32>
    %c8 = arith.constant 8 : index
    %c0_64 = arith.constant 0 : index
    %c0_65 = arith.constant 0 : index
    %59 = vector.load %arg2[%c8, %c0_64, %c0_65] : memref<9x32x64xf32, #tpu.memory_space<vmem>>, vector<1x32x64xf32>
    %60 = vector.shape_cast %59 : vector<1x32x64xf32> to vector<32x64xf32>
    %cst_66 = arith.constant dense<0.000000e+00> : vector<256x64xf32>
    %61 = tpu.matmul %58, %60, %cst_66 {dimension_numbers = #tpu.dot_dimension_numbers<[1], [0], [0], [1], [0, 0, 1, 1], [], []>} : vector<256x32xf32>, vector<32x64xf32>, vector<256x64xf32> -> vector<256x64xf32>
    %62 = arith.addf %56, %61 : vector<256x64xf32>
    %c0_67 = arith.constant 0 : index
    %c0_68 = arith.constant 0 : index
    %63 = vector.load %arg3[%c0_67, %c0_68] : memref<1x64xf32, #tpu.memory_space<vmem>>, vector<1x64xf32>
    %64 = vector.broadcast %63 : vector<1x64xf32> to vector<256x64xf32>
    %65 = arith.addf %62, %64 : vector<256x64xf32>
    %66 = vector.shape_cast %65 : vector<256x64xf32> to vector<16x16x64xf32>
    %cst_69 = arith.constant 0.000000e+00 : f32
    %67 = vector.broadcast %cst_69 : f32 to vector<16x16x64xf32>
    %68 = arith.maximumf %66, %67 : vector<16x16x64xf32>
    %c1_70 = arith.constant 1 : index
    %c1_71 = arith.constant 1 : index
    %c0_72 = arith.constant 0 : index
    %69 = vector.load %arg10[%c1_70, %c1_71, %c0_72] : memref<18x18x64xf32, #tpu.memory_space<vmem>>, vector<16x16x64xf32>
    tpu.vector_store %arg10[%c1_70, %c1_71, %c0_72], %68 {strides = array<i32>} : memref<18x18x64xf32, #tpu.memory_space<vmem>>, vector<16x16x64xf32>,
    %70 = vector.shape_cast %68 : vector<16x16x64xf32> to vector<256x64xf32>
    %cst_73 = arith.constant 0.000000e+00 : f32
    %71 = vector.broadcast %cst_73 : f32 to vector<256x64xf32>
    %c0_74 = arith.constant 0 : index
    %c0_75 = arith.constant 0 : index
    %c0_76 = arith.constant 0 : index
    %72 = vector.load %arg10[%c0_74, %c0_75, %c0_76] : memref<18x18x64xf32, #tpu.memory_space<vmem>>, vector<16x16x64xf32>
    %73 = vector.shape_cast %72 : vector<16x16x64xf32> to vector<256x64xf32>
    %c0_77 = arith.constant 0 : index
    %c0_78 = arith.constant 0 : index
    %c0_79 = arith.constant 0 : index
    %74 = vector.load %arg4[%c0_77, %c0_78, %c0_79] : memref<9x64x64xf32, #tpu.memory_space<vmem>>, vector<1x64x64xf32>
    %75 = vector.shape_cast %74 : vector<1x64x64xf32> to vector<64x64xf32>
    %cst_80 = arith.constant dense<0.000000e+00> : vector<256x64xf32>
    %76 = tpu.matmul %73, %75, %cst_80 {dimension_numbers = #tpu.dot_dimension_numbers<[1], [0], [0], [1], [0, 0, 1, 1], [], []>} : vector<256x64xf32>, vector<64x64xf32>, vector<256x64xf32> -> vector<256x64xf32>
    %77 = arith.addf %71, %76 : vector<256x64xf32>
    %c0_81 = arith.constant 0 : index
    %c1_82 = arith.constant 1 : index
    %c0_83 = arith.constant 0 : index
    %78 = vector.load %arg10[%c0_81, %c1_82, %c0_83] : memref<18x18x64xf32, #tpu.memory_space<vmem>>, vector<16x16x64xf32>
    %79 = vector.shape_cast %78 : vector<16x16x64xf32> to vector<256x64xf32>
    %c1_84 = arith.constant 1 : index
    %c0_85 = arith.constant 0 : index
    %c0_86 = arith.constant 0 : index
    %80 = vector.load %arg4[%c1_84, %c0_85, %c0_86] : memref<9x64x64xf32, #tpu.memory_space<vmem>>, vector<1x64x64xf32>
    %81 = vector.shape_cast %80 : vector<1x64x64xf32> to vector<64x64xf32>
    %cst_87 = arith.constant dense<0.000000e+00> : vector<256x64xf32>
    %82 = tpu.matmul %79, %81, %cst_87 {dimension_numbers = #tpu.dot_dimension_numbers<[1], [0], [0], [1], [0, 0, 1, 1], [], []>} : vector<256x64xf32>, vector<64x64xf32>, vector<256x64xf32> -> vector<256x64xf32>
    %83 = arith.addf %77, %82 : vector<256x64xf32>
    %c0_88 = arith.constant 0 : index
    %c2_89 = arith.constant 2 : index
    %c0_90 = arith.constant 0 : index
    %84 = vector.load %arg10[%c0_88, %c2_89, %c0_90] : memref<18x18x64xf32, #tpu.memory_space<vmem>>, vector<16x16x64xf32>
    %85 = vector.shape_cast %84 : vector<16x16x64xf32> to vector<256x64xf32>
    %c2_91 = arith.constant 2 : index
    %c0_92 = arith.constant 0 : index
    %c0_93 = arith.constant 0 : index
    %86 = vector.load %arg4[%c2_91, %c0_92, %c0_93] : memref<9x64x64xf32, #tpu.memory_space<vmem>>, vector<1x64x64xf32>
    %87 = vector.shape_cast %86 : vector<1x64x64xf32> to vector<64x64xf32>
    %cst_94 = arith.constant dense<0.000000e+00> : vector<256x64xf32>
    %88 = tpu.matmul %85, %87, %cst_94 {dimension_numbers = #tpu.dot_dimension_numbers<[1], [0], [0], [1], [0, 0, 1, 1], [], []>} : vector<256x64xf32>, vector<64x64xf32>, vector<256x64xf32> -> vector<256x64xf32>
    %89 = arith.addf %83, %88 : vector<256x64xf32>
    %c1_95 = arith.constant 1 : index
    %c0_96 = arith.constant 0 : index
    %c0_97 = arith.constant 0 : index
    %90 = vector.load %arg10[%c1_95, %c0_96, %c0_97] : memref<18x18x64xf32, #tpu.memory_space<vmem>>, vector<16x16x64xf32>
    %91 = vector.shape_cast %90 : vector<16x16x64xf32> to vector<256x64xf32>
    %c3_98 = arith.constant 3 : index
    %c0_99 = arith.constant 0 : index
    %c0_100 = arith.constant 0 : index
    %92 = vector.load %arg4[%c3_98, %c0_99, %c0_100] : memref<9x64x64xf32, #tpu.memory_space<vmem>>, vector<1x64x64xf32>
    %93 = vector.shape_cast %92 : vector<1x64x64xf32> to vector<64x64xf32>
    %cst_101 = arith.constant dense<0.000000e+00> : vector<256x64xf32>
    %94 = tpu.matmul %91, %93, %cst_101 {dimension_numbers = #tpu.dot_dimension_numbers<[1], [0], [0], [1], [0, 0, 1, 1], [], []>} : vector<256x64xf32>, vector<64x64xf32>, vector<256x64xf32> -> vector<256x64xf32>
    %95 = arith.addf %89, %94 : vector<256x64xf32>
    %c4_102 = arith.constant 4 : index
    %c0_103 = arith.constant 0 : index
    %c0_104 = arith.constant 0 : index
    %96 = vector.load %arg4[%c4_102, %c0_103, %c0_104] : memref<9x64x64xf32, #tpu.memory_space<vmem>>, vector<1x64x64xf32>
    %97 = vector.shape_cast %96 : vector<1x64x64xf32> to vector<64x64xf32>
    %cst_105 = arith.constant dense<0.000000e+00> : vector<256x64xf32>
    %98 = tpu.matmul %70, %97, %cst_105 {dimension_numbers = #tpu.dot_dimension_numbers<[1], [0], [0], [1], [0, 0, 1, 1], [], []>} : vector<256x64xf32>, vector<64x64xf32>, vector<256x64xf32> -> vector<256x64xf32>
    %99 = arith.addf %95, %98 : vector<256x64xf32>
    %c1_106 = arith.constant 1 : index
    %c2_107 = arith.constant 2 : index
    %c0_108 = arith.constant 0 : index
    %100 = vector.load %arg10[%c1_106, %c2_107, %c0_108] : memref<18x18x64xf32, #tpu.memory_space<vmem>>, vector<16x16x64xf32>
    %101 = vector.shape_cast %100 : vector<16x16x64xf32> to vector<256x64xf32>
    %c5_109 = arith.constant 5 : index
    %c0_110 = arith.constant 0 : index
    %c0_111 = arith.constant 0 : index
    %102 = vector.load %arg4[%c5_109, %c0_110, %c0_111] : memref<9x64x64xf32, #tpu.memory_space<vmem>>, vector<1x64x64xf32>
    %103 = vector.shape_cast %102 : vector<1x64x64xf32> to vector<64x64xf32>
    %cst_112 = arith.constant dense<0.000000e+00> : vector<256x64xf32>
    %104 = tpu.matmul %101, %103, %cst_112 {dimension_numbers = #tpu.dot_dimension_numbers<[1], [0], [0], [1], [0, 0, 1, 1], [], []>} : vector<256x64xf32>, vector<64x64xf32>, vector<256x64xf32> -> vector<256x64xf32>
    %105 = arith.addf %99, %104 : vector<256x64xf32>
    %c2_113 = arith.constant 2 : index
    %c0_114 = arith.constant 0 : index
    %c0_115 = arith.constant 0 : index
    %106 = vector.load %arg10[%c2_113, %c0_114, %c0_115] : memref<18x18x64xf32, #tpu.memory_space<vmem>>, vector<16x16x64xf32>
    %107 = vector.shape_cast %106 : vector<16x16x64xf32> to vector<256x64xf32>
    %c6_116 = arith.constant 6 : index
    %c0_117 = arith.constant 0 : index
    %c0_118 = arith.constant 0 : index
    %108 = vector.load %arg4[%c6_116, %c0_117, %c0_118] : memref<9x64x64xf32, #tpu.memory_space<vmem>>, vector<1x64x64xf32>
    %109 = vector.shape_cast %108 : vector<1x64x64xf32> to vector<64x64xf32>
    %cst_119 = arith.constant dense<0.000000e+00> : vector<256x64xf32>
    %110 = tpu.matmul %107, %109, %cst_119 {dimension_numbers = #tpu.dot_dimension_numbers<[1], [0], [0], [1], [0, 0, 1, 1], [], []>} : vector<256x64xf32>, vector<64x64xf32>, vector<256x64xf32> -> vector<256x64xf32>
    %111 = arith.addf %105, %110 : vector<256x64xf32>
    %c2_120 = arith.constant 2 : index
    %c1_121 = arith.constant 1 : index
    %c0_122 = arith.constant 0 : index
    %112 = vector.load %arg10[%c2_120, %c1_121, %c0_122] : memref<18x18x64xf32, #tpu.memory_space<vmem>>, vector<16x16x64xf32>
    %113 = vector.shape_cast %112 : vector<16x16x64xf32> to vector<256x64xf32>
    %c7_123 = arith.constant 7 : index
    %c0_124 = arith.constant 0 : index
    %c0_125 = arith.constant 0 : index
    %114 = vector.load %arg4[%c7_123, %c0_124, %c0_125] : memref<9x64x64xf32, #tpu.memory_space<vmem>>, vector<1x64x64xf32>
    %115 = vector.shape_cast %114 : vector<1x64x64xf32> to vector<64x64xf32>
    %cst_126 = arith.constant dense<0.000000e+00> : vector<256x64xf32>
    %116 = tpu.matmul %113, %115, %cst_126 {dimension_numbers = #tpu.dot_dimension_numbers<[1], [0], [0], [1], [0, 0, 1, 1], [], []>} : vector<256x64xf32>, vector<64x64xf32>, vector<256x64xf32> -> vector<256x64xf32>
    %117 = arith.addf %111, %116 : vector<256x64xf32>
    %c2_127 = arith.constant 2 : index
    %c2_128 = arith.constant 2 : index
    %c0_129 = arith.constant 0 : index
    %118 = vector.load %arg10[%c2_127, %c2_128, %c0_129] : memref<18x18x64xf32, #tpu.memory_space<vmem>>, vector<16x16x64xf32>
    %119 = vector.shape_cast %118 : vector<16x16x64xf32> to vector<256x64xf32>
    %c8_130 = arith.constant 8 : index
    %c0_131 = arith.constant 0 : index
    %c0_132 = arith.constant 0 : index
    %120 = vector.load %arg4[%c8_130, %c0_131, %c0_132] : memref<9x64x64xf32, #tpu.memory_space<vmem>>, vector<1x64x64xf32>
    %121 = vector.shape_cast %120 : vector<1x64x64xf32> to vector<64x64xf32>
    %cst_133 = arith.constant dense<0.000000e+00> : vector<256x64xf32>
    %122 = tpu.matmul %119, %121, %cst_133 {dimension_numbers = #tpu.dot_dimension_numbers<[1], [0], [0], [1], [0, 0, 1, 1], [], []>} : vector<256x64xf32>, vector<64x64xf32>, vector<256x64xf32> -> vector<256x64xf32>
    %123 = arith.addf %117, %122 : vector<256x64xf32>
    %c0_134 = arith.constant 0 : index
    %c0_135 = arith.constant 0 : index
    %124 = vector.load %arg5[%c0_134, %c0_135] : memref<1x64xf32, #tpu.memory_space<vmem>>, vector<1x64xf32>
    %125 = vector.broadcast %124 : vector<1x64xf32> to vector<256x64xf32>
    %126 = arith.addf %123, %125 : vector<256x64xf32>
    %127 = vector.shape_cast %126 : vector<256x64xf32> to vector<16x16x64xf32>
    %c0_136 = arith.constant 0 : index
    %c0_137 = arith.constant 0 : index
    %c0_138 = arith.constant 0 : index
    %c0_139 = arith.constant 0 : index
    %128 = vector.load %arg1[%c0_136, %c0_137, %c0_138, %c0_139] : memref<1x16x16x32xf32, #tpu.memory_space<vmem>>, vector<1x16x16x32xf32>
    %129 = vector.shape_cast %128 : vector<1x16x16x32xf32> to vector<16x16x32xf32>
    %130 = vector.shape_cast %129 : vector<16x16x32xf32> to vector<256x32xf32>
    %c0_140 = arith.constant 0 : index
    %c0_141 = arith.constant 0 : index
    %131 = vector.load %arg6[%c0_140, %c0_141] : memref<32x64xf32, #tpu.memory_space<vmem>>, vector<32x64xf32>
    %cst_142 = arith.constant dense<0.000000e+00> : vector<256x64xf32>
    %132 = tpu.matmul %130, %131, %cst_142 {dimension_numbers = #tpu.dot_dimension_numbers<[1], [0], [0], [1], [0, 0, 1, 1], [], []>} : vector<256x32xf32>, vector<32x64xf32>, vector<256x64xf32> -> vector<256x64xf32>
    %c0_143 = arith.constant 0 : index
    %c0_144 = arith.constant 0 : index
    %133 = vector.load %arg7[%c0_143, %c0_144] : memref<1x64xf32, #tpu.memory_space<vmem>>, vector<1x64xf32>
    %134 = vector.broadcast %133 : vector<1x64xf32> to vector<256x64xf32>
    %135 = arith.addf %132, %134 : vector<256x64xf32>
    %136 = vector.shape_cast %135 : vector<256x64xf32> to vector<16x16x64xf32>
    %137 = arith.addf %127, %136 : vector<16x16x64xf32>
    %c0_145 = arith.constant 0 : index
    %c0_146 = arith.constant 0 : index
    %c0_147 = arith.constant 0 : index
    %c0_148 = arith.constant 0 : index
    %138 = vector.load %arg8[%c0_145, %c0_146, %c0_147, %c0_148] : memref<1x16x16x64xf32, #tpu.memory_space<vmem>>, vector<1x16x16x64xf32>
    %139 = vector.shape_cast %138 : vector<1x16x16x64xf32> to vector<16x16x64xf32>
    %140 = vector.shape_cast %137 : vector<16x16x64xf32> to vector<1x16x16x64xf32>
    tpu.vector_store %arg8[%c0_145, %c0_146, %c0_147, %c0_148], %140 {strides = array<i32>} : memref<1x16x16x64xf32, #tpu.memory_space<vmem>>, vector<1x16x16x64xf32>,
    return
  }
  func.func @transform_0(%arg0: i32) -> (i32, i32, i32, i32) {
    %c0_i32 = arith.constant 0 : i32
    %c0_i32_0 = arith.constant 0 : i32
    %c0_i32_1 = arith.constant 0 : i32
    %c0_i32_2 = arith.constant 0 : i32
    return %arg0, %c0_i32, %c0_i32_0, %c0_i32_1 : i32, i32, i32, i32
  }
  func.func @transform_1(%arg0: i32) -> (i32, i32, i32) {
    %c0_i32 = arith.constant 0 : i32
    %c0_i32_0 = arith.constant 0 : i32
    %c0_i32_1 = arith.constant 0 : i32
    %c0_i32_2 = arith.constant 0 : i32
    return %c0_i32, %c0_i32_0, %c0_i32_1 : i32, i32, i32
  }
  func.func @transform_2(%arg0: i32) -> (i32, i32) {
    %c0_i32 = arith.constant 0 : i32
    %c0_i32_0 = arith.constant 0 : i32
    %c0_i32_1 = arith.constant 0 : i32
    return %c0_i32, %c0_i32_0 : i32, i32
  }
  func.func @transform_3(%arg0: i32) -> (i32, i32, i32) {
    %c0_i32 = arith.constant 0 : i32
    %c0_i32_0 = arith.constant 0 : i32
    %c0_i32_1 = arith.constant 0 : i32
    %c0_i32_2 = arith.constant 0 : i32
    return %c0_i32, %c0_i32_0, %c0_i32_1 : i32, i32, i32
  }
  func.func @transform_4(%arg0: i32) -> (i32, i32) {
    %c0_i32 = arith.constant 0 : i32
    %c0_i32_0 = arith.constant 0 : i32
    %c0_i32_1 = arith.constant 0 : i32
    return %c0_i32, %c0_i32_0 : i32, i32
  }
  func.func @transform_5(%arg0: i32) -> (i32, i32) {
    %c0_i32 = arith.constant 0 : i32
    %c0_i32_0 = arith.constant 0 : i32
    %c0_i32_1 = arith.constant 0 : i32
    return %c0_i32, %c0_i32_0 : i32, i32
  }
  func.func @transform_6(%arg0: i32) -> (i32, i32) {
    %c0_i32 = arith.constant 0 : i32
    %c0_i32_0 = arith.constant 0 : i32
    %c0_i32_1 = arith.constant 0 : i32
    return %c0_i32, %c0_i32_0 : i32, i32
  }
  func.func @transform_7(%arg0: i32) -> (i32, i32, i32, i32) {
    %c0_i32 = arith.constant 0 : i32
    %c0_i32_0 = arith.constant 0 : i32
    %c0_i32_1 = arith.constant 0 : i32
    %c0_i32_2 = arith.constant 0 : i32
    return %arg0, %c0_i32, %c0_i32_0, %c0_i32_1 : i32, i32, i32, i32
  }
}

</mosaic_0001>

<bundles_post_ra>
// kernel: tpu_custom_call.1
= control target key start
LH: loop header
LB: loop body
LE: loop exit
PB: predicated region body
PF: predicated region fallthrough
CT: control target
= control target key end

     0   :  { %s10098_s0 = inlined_call_operand.hbm [shape: f32[2,16,16,32], index: 0, kind: input, shape index: {}]   ;;  %s10099_s1 = inlined_call_operand.hbm [shape: f32[9,32,64], index: 1, kind: input, shape index: {}]   ;;  %s10100_s2 = inlined_call_operand.vmem [shape: f32[1,64], index: 2, kind: input, shape index: {}]   ;;  %s10101_s3 = inlined_call_operand.hbm [shape: f32[9,64,64], index: 3, kind: input, shape index: {}]   ;;  %s10102_s4 = inlined_call_operand.vmem [shape: f32[1,64], index: 4, kind: input, shape index: {}]   ;;  %s10103_s5 = inlined_call_operand.hbm [shape: f32[32,64], index: 5, kind: input, shape index: {}]   ;;  %s10104_s6 = inlined_call_operand.vmem [shape: f32[1,64], index: 6, kind: input, shape index: {}]   ;;  %s10105_s7 = inlined_call_operand.hbm [shape: f32[2,16,16,64], index: 7, kind: output, shape index: {}]  }
   0x1   :  { %10234 = sst [smem:[#allocation88_spill]] %s10099_s1 }
   0x2   :  { %12 = vsyncpa [#allocation5], 0 }
   0x3   :  { %14 = vsyncpa [#allocation5 + $0x1], 0 }
   0x4   :  { %15 = vsyncpa [#allocation8], 0 }
   0x5   :  { %16 = vsyncpa [#allocation11], 0 }
   0x6   :  { %17 = vsyncpa [#allocation6], 0 }
   0x7   :  { %19 = vsyncpa [#allocation6 + $0x1], 0  ;;  %s6947_s24 = smov 0   ;;  %s6949_s25 = smov 0  }
   0x8   :  { %s6951_s26 = smov 0   ;;  %s6953_s27 = smov 0  }
   0x9 LB: > { %s6968_s28 = sadd.s32 4294967295, %s6897_s27   ;;  %s5974_s29 = sadd.s32 4294967294, %s6897_s27   ;;  %s6897_s27 = sphi %s6953_s27, %s10555_s27   ;;  %s6893_s26 = sphi %s6951_s26, %s10554_s26   ;;  %s6889_s25 = sphi %s6949_s25, %s10553_s25   ;;  %s6885_s24 = sphi %s6947_s24, %s10552_s24  }
   0xa   : > { %p45_p0 = scmp.ne.s32.totalorder %s6889_s25, %s6885_s24  ;;  %p46_p1 = scmp.eq.s32.totalorder %s6968_s28, 0 }
   0xb   : > { %p195_p2 = scmp.eq.s32.totalorder %s6968_s28, 1  ;;  %p201_p3 = scmp.eq.s32.totalorder %s5974_s29, 1 }
   0xc   : > { %p6977_p4 = por %p46_p1, %p45_p0  ;;  %p5975_p5 = scmp.ge.s32.totalorder %s6897_s27, 1 }
   0xd   : > { %p6982_p6 = por %p201_p3, %p45_p0  ;;  %p208_p7 = scmp.lt.s32.totalorder %s6897_s27, 3 }
   0xe   : > { %s10237_s1 = sld [smem:[#allocation88_spill]]  ;;  %s6899_s13 = smov [#allocation7]  }
   0xf   : > { %p6990_p8 = pnand %p5975_p5, %p208_p7  ;;  %s221_s14 = sshll.u32 %s6899_s13, 4  ;;  %s222_s14 = int_to_ptr.vmem [resolvable:$true] %s221_s14 }
  0x10   : > { %s236_s18 = sshll.u32 %s10101_s3, 4  ;;  %s10106_s19 = smov 128   ;;  %s237_s18 = int_to_ptr.hbm [resolvable:$true] %s236_s18 }
  0x11   : > { %p6632_p9 = pneg %p6990_p8  ;;  %s10107_s20 = smov 8  }
  0x12   : > { %s6902_s21 = smov [#allocation9]   ;;  %s253_s9 = sshll.u32 %s10103_s5, 4  ;;  %s254_s9 = int_to_ptr.hbm [resolvable:$true] %s253_s9 }
  0x13   : > { %p6998_p10 = pnand %p6632_p9, %p46_p1  ;;  %s238_s22 = sshll.u32 %s6902_s21, 4  ;;  %s239_s22 = int_to_ptr.vmem [resolvable:$true] %s238_s22 }
  0x14   : > { %s219_s11 = sshll.u32 %s10237_s1, 4  ;;  %s6903_s10 = smov [#allocation10]   ;;  %s220_s11 = int_to_ptr.hbm [resolvable:$true] %s219_s11 }
  0x15   : > { %6635 = dma.hbm_to_vmem [thread:$0]  (!%p6998_p10), %s220_s11, 4608, %s222_s14, [#allocation8], %s10106_s19, %s10106_s19, %s10107_s20  }
  0x16   : > { %6638 = dma.hbm_to_vmem [thread:$0]  (!%p6998_p10), %s237_s18, 9216, %s239_s22, [#allocation8], %s10106_s19, %s10106_s19, %s10107_s20  }
  0x17   : > { %s255_s11 = sshll.u32 %s6903_s10, 4  ;;  %s7020_s13 = sadd.s32 1, %s6897_s27   ;;  %s256_s11 = int_to_ptr.vmem [resolvable:$true] %s255_s11 }
  0x18   : > { %6641 = dma.hbm_to_vmem [thread:$0]  (!%p6998_p10), %s254_s9, 512, %s256_s11, [#allocation11], %s10106_s19, %s10106_s19, %s10107_s20  }
  0x19   : > { %s29_s14 = ssub.s32 %s6897_s27, %s7020_s13  ;;  %s32_s16 = sadd.s32 1, %s6893_s26 }
  0x1a   : > { %p30_p12 = scmp.eq.s32.totalorder %s29_s14, 0  ;;  %p39_p13 = scmp.ne.s32.totalorder %s6893_s26, %s6889_s25 }
  0x1b   : > { %p40_p0 = scmp.eq.s32.totalorder %s6897_s27, 0  ;;  %p6653_p5 = scmp.lt.s32.totalorder %s6897_s27, 2 }
  0x1c   : > { %s7034_s17 = scalar_select %p30_p12, %s6893_s26, %s32_s16  }
  0x1d   : > { %p7038_p3 = por %p195_p2, %p39_p13  ;;  %s272_s21 = sand.u32 1, %s6893_s26  }
  0x1e   : > { %s6602_s15 = sshll.u32 %s6897_s27, 8  ;;  %p41_p7 = por %p40_p0, %p39_p13 }
  0x1f   : > { %s5980_s22 = sshll.u32 %s272_s21, 8  ;;  %s281_s9 = scalar_lea.hbm %s10098_s0, %s6602_s15 }
  0x20   : > { %s282_s10 = sshll.u32 %s281_s9, 4  ;;  %s276_s11 = scalar_lea.vmem [#allocation4], %s5980_s22  ;;  %s283_s10 = int_to_ptr.hbm [resolvable:$true] %s282_s10 }
  0x21   : > { %s284_s14 = sshll.u32 %s276_s11, 4  ;;  %p7048_p9 = pnand %p6653_p5, %p41_p7  ;;  %s285_s14 = int_to_ptr.vmem [resolvable:$true] %s284_s14 }
  0x22   : > { %s273_s19 = scalar_lea.sflag [#allocation5], %s272_s21  ;;  %s6793_s20 = sshra.s32 %s283_s10, 4  ;;  %s6794_s20 = int_to_ptr.hbm [resolvable:$true] %s6793_s20 }
  0x23   : > { %s6795_s1 = scalar_lea.hbm %s6794_s20, 256  ;;  %p6797_p10 = pneg %p7048_p9 }
  0x24   : > { %p6796_p2 = scmp.ne.s32.totalorder %s6794_s20, %s6795_s1  ;;  %s6800_s22 = scalar_lea.hbm %s10098_s0, 512 }
  0x25   : > { %p6801_p0 = scmp.lt.s32.totalorder %s6794_s20, %s10098_s0  ;;  %p6802_p5 = scmp.lt.s32.totalorder %s6800_s22, %s6795_s1 }
  0x26   : > { %p6798_p12 = pnand %p6797_p10, %p6796_p2 }
  0x27   : > { %p6803_p7 = por %p6802_p5, %p6801_p0 }
  0x28   : > { %p6799_p13 = pneg %p6798_p12 }
  0x2a   : > { %p6804_p11 = pnand %p6803_p7, %p6799_p13 }
  0x2c   : > { %6807 = shalt.err (!%p6804_p11)
}
  0x2d   : > { %s10242_s21 = smov 8   ;;  %s10243_s11 = smov 128  }
  0x2e   : > { %6645 = dma.hbm_to_vmem [thread:$0]  (!%p7048_p9), %s283_s10, 4096, %s285_s14, %s273_s19, %s10243_s11, %s10243_s11, %s10242_s21  }
  0x2f   : > { %296 = sbr.rel (%p6990_p8) target bundleno = 1602 (0x642), region = 48 }
  0x34   : > { %s7068_s15 = sand.u32 1, %s6889_s25  }
  0x35   : > { %s5984_s1 = sshll.u32 %s7068_s15, 8  ;;  %s299_s20 = scalar_lea.sflag [#allocation5], %s7068_s15 }
  0x36   : > { %s7074_s23 = scalar_lea.vmem [#allocation4], %s5984_s1 }
  0x37   : > { %6868 = dma.done.wait (%p6977_p4), %s299_s20, 4096  }
  0x38   : > { %6870 = vsyncadd (%p6977_p4), %s299_s20, 4294963200 }
  0x39   : > { %6872 = dma.done.wait (%p46_p1), [#allocation8], 13824  }
  0x3a   : > { %6874 = vsyncadd (%p46_p1), [#allocation8], 4294953472 }
  0x3b   : > { %6876 = dma.done.wait (%p46_p1), [#allocation11], 512  }
  0x3c   : > { %6878 = vsyncadd (%p46_p1), [#allocation11], 4294966784  ;;  %vm349_vm0 = vcmask 261120   ;;  %v10108_v0 = vmov 0.0   ;;  %v630_v1 = vld [vmem:[#allocation7 + $0x38] sm:$0xff]  ;;  %v629_v2 = vld [vmem:[#allocation7 + $0x30] sm:$0xff] }
  0x3d   : > { %350 = vst.msk [vmem:[#allocation2] sm:$0xff] %vm349_vm0, %v10108_v0  ;;  %739 = vmatpush.msra.mxu0 %v630_v1  ;;  %6604 = vmatpush.msra.mxu3 %v630_v1  ;;  %v7104_v3 = vld [vmem:[#allocation7 + $0x58] sm:$0xff]  ;;  %v7106_v4 = vld [vmem:[#allocation7 + $0x50] sm:$0xff]  ;;  %v628_v5 = vld [vmem:[#allocation7 + $0x28] sm:$0xff]  ;;  %vm352_vm1 = vcmask 254976   ;;  %vm405_vm2 = vcmask 523264  }
  0x3e   : > { %351 = vst.msk [vmem:[#allocation2 + $0x8] sm:$0xff] %vm349_vm0, %v10108_v0  ;;  %1194 = vmatpush.msra.mxu2 %v7104_v3  ;;  %v627_v6 = vld [vmem:[#allocation7 + $0x20] sm:$0xff]  ;;  %v593_v8 = vld [vmem:[#allocation7 + $0x18] sm:$0xff]  ;;  %v7120_v9 = vld [vmem:[#allocation7 + $0x48] sm:$0xff]  ;;  %vm408_vm3 = vcmask 517120   ;;  %s9817_s9 = scalar_lea.vmem [#allocation12], %s5984_s1 }
  0x3f   : > { %354 = vst.msk [vmem:[#allocation2 + $0x18] sm:$0xff] %vm349_vm0, %v10108_v0  ;;  %740 = vmatpush.msra.mxu0 %v629_v2  ;;  %6605 = vmatpush.msra.mxu3 %v629_v2  ;;  %v592_v10 = vld [vmem:[#allocation7 + $0x10] sm:$0xff]  ;;  %v7127_v11 = vld [vmem:[#allocation7 + $0x40] sm:$0xff]  ;;  %v591_v13 = vld [vmem:[#allocation7 + $0x8] sm:$0xff]  ;;  %s6603_s21 = sshll.u32 %s6968_s28, 8  ;;  %s5857_s28 = scalar_lea.sflag [#allocation6], %s7068_s15 }
  0x40   : > { %355 = vst.msk [vmem:[#allocation2 + $0x20] sm:$0xff] %vm349_vm0, %v10108_v0  ;;  %1195 = vmatpush.msra.mxu2 %v7106_v4  ;;  %948 = vmatpush.msra.mxu1 %v593_v8  ;;  %v590_v14 = vld [vmem:[#allocation7] sm:$0xff]  ;;  %v7163_v15 = vld [vmem:[%s7074_s23 + $0xb0] sm:$0xff]  ;;  %v1609_v17 = vld [vmem:[#allocation7 + $0x98] sm:$0xff]  ;;  %s5868_s20 = scalar_lea.hbm %s10105_s7, %s6603_s21  ;;  %s6843_s16 = scalar_lea.hbm %s10105_s7, 512 }
  0x41   : > { %357 = vst.msk [vmem:[#allocation2 + $0x30] sm:$0xff] %vm349_vm0, %v10108_v0  ;;  %741 = vmatpush.msra.mxu0 %v628_v5  ;;  %6606 = vmatpush.msra.mxu3 %v628_v5  ;;  %v10117_v18 = vmax.f32 %v7163_v15, 0.0  ;;  %v7212_v23 = vld [vmem:[%s7074_s23 + $0xb8] sm:$0xff]  ;;  %v7218_v24 = vld [vmem:[%s7074_s23] sm:$0xff]  ;;  %v7230_v27 = vld [vmem:[%s7074_s23 + $0x8] sm:$0xff]  ;;  %s5871_s30 = sshll.u32 %s5868_s20, 4  ;;  %s5872_s30 = int_to_ptr.hbm [resolvable:$true] %s5871_s30 }
  0x42   : > { %358 = vst.msk [vmem:[#allocation2 + $0x38] sm:$0xff] %vm349_vm0, %v10108_v0  ;;  %1196 = vmatpush.msra.mxu2 %v7120_v9  ;;  %949 = vmatpush.msra.mxu1 %v592_v10  ;;  %v7223_v25 = vld [vmem:[%s7074_s23 + $0xc0] sm:$0xff]  ;;  %v10116_v26 = vmax.f32 %v7212_v23, 0.0  ;;  %v10135_v28 = vmax.f32 %v7218_v24, 0.0  ;;  %v7236_v29 = vld [vmem:[%s7074_s23 + $0xc8] sm:$0xff]  ;;  %v7243_v31 = vld [vmem:[%s7074_s23 + $0x10] sm:$0xff] }
  0x43   : > { %360 = vst.msk [vmem:[#allocation2 + $0x48] sm:$0xff] %vm349_vm0, %v10108_v0  ;;  %742 = vmatpush.msra.mxu0 %v627_v6  ;;  %6607 = vmatpush.msra.mxu3 %v627_v6  ;;  %v10115_v30 = vmax.f32 %v7223_v25, 0.0  ;;  %v10134_v32 = vmax.f32 %v7230_v27, 0.0  ;;  %v7249_v33 = vld [vmem:[%s7074_s23 + $0xd0] sm:$0xff]  ;;  %v10114_v34 = vmax.f32 %v7236_v29, 0.0  ;;  %v7256_v35 = vld [vmem:[%s7074_s23 + $0x18] sm:$0xff] }
  0x44   : > { %361 = vst.msk [vmem:[#allocation2 + $0x50] sm:$0xff] %vm349_vm0, %v10108_v0  ;;  %1197 = vmatpush.msra.mxu2 %v7127_v11  ;;  %950 = vmatpush.msra.mxu1 %v591_v13  ;;  %v558_v16 = vld [vmem:[#allocation2] sm:$0xff]  ;;  %v10133_v36 = vmax.f32 %v7243_v31, 0.0  ;;  %v7263_v37 = vld [vmem:[%s7074_s23 + $0xd8] sm:$0xff]  ;;  %v10113_v38 = vmax.f32 %v7249_v33, 0.0  ;;  %v10132_v40 = vmax.f32 %v7256_v35, 0.0 }
  0x45   : > { %363 = vst.msk [vmem:[#allocation2 + $0x60] sm:$0xff] %vm349_vm0, %v10108_v0  ;;  %v594_v7 = vld [vmem:[#allocation2 + $0x1] sm:$0xff]  ;;  %6608 = vmatpush.msrb.mxu3 %v593_v8  ;;  %1718 = vmatpush.msrb.mxu0 %v1609_v17  ;;  %v10112_v41 = vmax.f32 %v7263_v37, 0.0  ;;  %v7336_v57 = vld [vmem:[%s7074_s23 + $0x30] sm:$0xff]  ;;  %v7353_v1 = vld [vmem:[%s7074_s23 + $0x38] sm:$0xff]  ;;  %s6837_s12 = sshra.s32 %s5872_s30, 4  ;;  %s6838_s12 = int_to_ptr.hbm [resolvable:$true] %s6837_s12 }
  0x46   : > { %364 = vst.msk [vmem:[#allocation2 + $0x68] sm:$0xff] %vm349_vm0, %v10108_v0  ;;  %5989 = vmatmul.msk.f32.vlgmr.msra.gmra.mxu0 %vm349_vm0, %v594_v7  ;;  %v1049_v12 = vld [vmem:[#allocation2 + $0x2] sm:$0xff]  ;;  %951 = vmatpush.msra.mxu1 %v590_v14  ;;  %v10128_v58 = vmax.f32 %v7336_v57, 0.0  ;;  %v1608_v63 = vld [vmem:[#allocation7 + $0x90] sm:$0xff]  ;;  %v10126_v2 = vmax.f32 %v7353_v1, 0.0  ;;  %s6839_s19 = scalar_lea.hbm %s6838_s12, 256  ;;  %p6844_p11 = scmp.lt.s32.totalorder %s6838_s12, %s10105_s7 }
  0x47   : > { %366 = vst.msk [vmem:[#allocation2 + $0x78] sm:$0xff] %vm349_vm0, %v10108_v0  ;;  %6609 = vmatpush.msrb.mxu3 %v592_v10  ;;  %6053 = vmatmul.msk.f32.vlgmr.msra.gmra.mxu2 %vm349_vm0, %v1049_v12  ;;  %v559_v19 = vld [vmem:[#allocation2 + $0x8] sm:$0xff]  ;;  %v7270_v39 = vld [vmem:[%s7074_s23 + $0x20] sm:$0xff]  ;;  %p6840_p1 = scmp.ne.s32.totalorder %s6838_s12, %s6839_s19  ;;  %p6845_p9 = scmp.lt.s32.totalorder %s6843_s16, %s6839_s19 }
  0x48   : > { %367 = vst.msk [vmem:[#allocation2 + $0x80] sm:$0xff] %vm349_vm0, %v10108_v0  ;;  %6021 = vmatmul.msk.f32.vlgmr.msra.gmra.mxu1 %vm349_vm0, %v558_v16  ;;  %v10130_v42 = vmax.f32 %v7270_v39, 0.0  ;;  %v7285_v43 = vld [vmem:[%s7074_s23 + $0xe0] sm:$0xff]  ;;  %v7307_v48 = vld [vmem:[%s7074_s23 + $0x28] sm:$0xff]  ;;  %1719 = vmatpush.msrb.mxu0 %v1608_v63 }
  0x49   : > { %369 = vst.msk [vmem:[#allocation2 + $0x90] sm:$0xff] %vm349_vm0, %v10108_v0  ;;  %6610 = vmatpush.msrb.mxu3 %v591_v13  ;;  %v10111_v44 = vmax.f32 %v7285_v43, 0.0  ;;  %v10129_v50 = vmax.f32 %v7307_v48, 0.0  ;;  %v7321_v52 = vld [vmem:[%s7074_s23 + $0xe8] sm:$0xff]  ;;  %v7370_v7 = vld [vmem:[%s7074_s23 + $0x40] sm:$0xff]  ;;  %p6841_p4 = pnand %p6840_p1, %p7038_p3  ;;  %p6846_p2 = por %p6845_p9, %p6844_p11 }
  0x4a   : > { %370 = vst.msk [vmem:[#allocation2 + $0x98] sm:$0xff] %vm349_vm0, %v10108_v0  ;;  %v10110_v55 = vmax.f32 %v7321_v52, 0.0  ;;  %v10125_v8 = vmax.f32 %v7370_v7, 0.0  ;;  %v7387_v13 = vld [vmem:[%s7074_s23 + $0x48] sm:$0xff] }
  0x4b   : > { %372 = vst.msk [vmem:[#allocation2 + $0xa8] sm:$0xff] %vm349_vm0, %v10108_v0  ;;  %6611 = vmatpush.msrb.mxu3 %v590_v14  ;;  %v10124_v14 = vmax.f32 %v7387_v13, 0.0  ;;  %p6842_p8 = pneg %p6841_p4 }
  0x4c   : > { %373 = vst.msk [vmem:[#allocation2 + $0xb0] sm:$0xff] %vm349_vm0, %v10108_v0 }
  0x4d   : > { %375 = vst.msk [vmem:[#allocation2 + $0xc0] sm:$0xff] %vm349_vm0, %v10108_v0  ;;  %p6847_p10 = pnand %p6846_p2, %p6842_p8 }
  0x4e   : > { %376 = vst.msk [vmem:[#allocation2 + $0xc8] sm:$0xff] %vm349_vm0, %v10108_v0 }
  0x4f   : > { %378 = vst.msk [vmem:[#allocation2 + $0xd8] sm:$0xff] %vm349_vm0, %v10108_v0 }
  0x50   : > { %379 = vst.msk [vmem:[#allocation2 + $0xe0] sm:$0xff] %vm349_vm0, %v10108_v0  ;;  %6022 = vmatmul.msk.f32.gmra.mxu1 %vm349_vm0, %v559_v19 }
  0x51   : > { %381 = vst.msk [vmem:[#allocation2 + $0xf0] sm:$0xff] %vm349_vm0, %v10108_v0 }
  0x52   : > { %382 = vst.msk [vmem:[#allocation2 + $0xf8] sm:$0xff] %vm349_vm0, %v10108_v0 }
  0x53   : > { %384 = vst.msk [vmem:[#allocation2 + $0x108] sm:$0xff] %vm349_vm0, %v10108_v0 }
  0x54   : > { %385 = vst.msk [vmem:[#allocation2 + $0x110] sm:$0xff] %vm349_vm0, %v10108_v0 }
  0x55   : > { %387 = vst.msk [vmem:[#allocation2 + $0x120] sm:$0xff] %vm349_vm0, %v10108_v0 }
  0x56   : > { %388 = vst.msk [vmem:[#allocation2 + $0x128] sm:$0xff] %vm349_vm0, %v10108_v0 }
  0x57   : > { %390 = vst.msk [vmem:[#allocation2 + $0x138] sm:$0xff] %vm349_vm0, %v10108_v0 }
  0x58   : > { %391 = vst.msk [vmem:[#allocation2 + $0x140] sm:$0xff] %vm349_vm0, %v10108_v0 }
  0x59   : > { %393 = vst.msk [vmem:[#allocation2 + $0x150] sm:$0xff] %vm349_vm0, %v10108_v0 }
  0x5a   : > { %394 = vst.msk [vmem:[#allocation2 + $0x158] sm:$0xff] %vm349_vm0, %v10108_v0 }
  0x5b   : > { %10244 = vst [vmem:[#allocation17_spill] sm:$0xff] %v7163_v15 }
  0x5c   : > { %396 = vst.msk [vmem:[#allocation2 + $0x168] sm:$0xff] %vm349_vm0, %v10108_v0 }
  0x5d   : > { %397 = vst.msk [vmem:[#allocation2 + $0x170] sm:$0xff] %vm349_vm0, %v10108_v0 }
  0x5e   : > { %399 = vst.msk [vmem:[#allocation2 + $0x180] sm:$0xff] %vm349_vm0, %v10108_v0 }
  0x5f   : > { %400 = vst.msk [vmem:[#allocation2 + $0x188] sm:$0xff] %vm349_vm0, %v10108_v0 }
  0x60   : > { %402 = vst.msk [vmem:[#allocation2 + $0x198] sm:$0xff] %vm349_vm0, %v10108_v0 }
  0x61   : > { %403 = vst.msk [vmem:[#allocation2 + $0x1a0] sm:$0xff] %vm349_vm0, %v10108_v0 }
  0x62   : > { %548 = vst.msk [vmem:[#allocation2 + $0x121] sm:$0xff] %vm349_vm0, %v10117_v18 }
  0x63   : > { %353 = vst.msk [vmem:[#allocation2 + $0x10] sm:$0x3] %vm352_vm1, %v10108_v0 }
  0x64   : > { %356 = vst.msk [vmem:[#allocation2 + $0x28] sm:$0x3] %vm352_vm1, %v10108_v0 }
  0x65   : > { %359 = vst.msk [vmem:[#allocation2 + $0x40] sm:$0x3] %vm352_vm1, %v10108_v0 }
  0x66   : > { %362 = vst.msk [vmem:[#allocation2 + $0x58] sm:$0x3] %vm352_vm1, %v10108_v0 }
  0x67   : > { %365 = vst.msk [vmem:[#allocation2 + $0x70] sm:$0x3] %vm352_vm1, %v10108_v0 }
  0x68   : > { %368 = vst.msk [vmem:[#allocation2 + $0x88] sm:$0x3] %vm352_vm1, %v10108_v0 }
  0x69   : > { %v618_v20 = vld [vmem:[#allocation2 + $0x121] sm:$0xff]  ;;  %371 = vst.msk [vmem:[#allocation2 + $0xa0] sm:$0x3] %vm352_vm1, %v10108_v0 }
  0x6a   : > { %6013 = vmatmul.msk.f32.vlgmr.msra.gmra.mxu3 %vm349_vm0, %v618_v20  ;;  %v595_v21 = vld [vmem:[#allocation2 + $0x9] sm:$0xff]  ;;  %374 = vst.msk [vmem:[#allocation2 + $0xb8] sm:$0x3] %vm352_vm1, %v10108_v0  ;;  %v582_v63 = vld [vmem:[#allocation2 + $0x120] sm:$0xff] }
  0x6b   : > { %v1050_v22 = vld [vmem:[#allocation2 + $0xa] sm:$0xff]  ;;  %5990 = vmatmul.msk.f32.gmra.mxu0 %vm349_vm0, %v595_v21  ;;  %377 = vst.msk [vmem:[#allocation2 + $0xd0] sm:$0x3] %vm352_vm1, %v10108_v0  ;;  %6612 = vmatpush.msra.mxu3 %v7104_v3 }
  0x6c   : > { %6054 = vmatmul.msk.f32.gmra.mxu2 %vm349_vm0, %v1050_v22  ;;  %380 = vst.msk [vmem:[#allocation2 + $0xe8] sm:$0x3] %vm352_vm1, %v10108_v0  ;;  %v7404_v21 = vld [vmem:[%s7074_s23 + $0x50] sm:$0xff] }
  0x6d   : > { %383 = vst.msk [vmem:[#allocation2 + $0x100] sm:$0x3] %vm352_vm1, %v10108_v0  ;;  %6613 = vmatpush.msra.mxu3 %v7106_v4  ;;  %v10122_v22 = vmax.f32 %v7404_v21, 0.0 }
  0x6e   : > { %386 = vst.msk [vmem:[#allocation2 + $0x118] sm:$0x3] %vm352_vm1, %v10108_v0 }
  0x6f   : > { %10245 = vst [vmem:[#allocation18_spill] sm:$0xff] %v7212_v23  ;;  %6614 = vmatpush.msra.mxu3 %v7120_v9 }
  0x70   : > { %389 = vst.msk [vmem:[#allocation2 + $0x130] sm:$0x3] %vm352_vm1, %v10108_v0 }
  0x71   : > { %392 = vst.msk [vmem:[#allocation2 + $0x148] sm:$0x3] %vm352_vm1, %v10108_v0  ;;  %6615 = vmatpush.msra.mxu3 %v7127_v11 }
  0x72   : > { %10246 = vst [vmem:[#allocation19_spill] sm:$0xff] %v7223_v25 }
  0x73   : > { %395 = vst.msk [vmem:[#allocation2 + $0x160] sm:$0x3] %vm352_vm1, %v10108_v0 }
  0x74   : > { %398 = vst.msk [vmem:[#allocation2 + $0x178] sm:$0x3] %vm352_vm1, %v10108_v0 }
  0x75   : > { %10247 = vst [vmem:[#allocation20_spill] sm:$0xff] %v7236_v29  ;;  %v1361_v29 = vld [vmem:[#allocation7 + $0x68] sm:$0xff] }
  0x76   : > { %401 = vst.msk [vmem:[#allocation2 + $0x190] sm:$0x3] %vm352_vm1, %v10108_v0 }
  0x77   : > { %404 = vst.msk [vmem:[#allocation2 + $0x1a8] sm:$0x3] %vm352_vm1, %v10108_v0  ;;  %v7455_v0 = vld [vmem:[%s7074_s23 + $0x68] sm:$0xff] }
  0x78   : > { %10248 = vst [vmem:[#allocation21_spill] sm:$0xff] %v7249_v33 }
  0x79   : > { %549 = vst.msk [vmem:[#allocation2 + $0x129] sm:$0xff] %vm349_vm0, %v10116_v26  ;;  %v7489_v26 = vld [vmem:[%s7074_s23 + $0x78] sm:$0xff] }
  0x7a   : > { %526 = vst.msk [vmem:[#allocation2 + $0x19] sm:$0xff] %vm349_vm0, %v10135_v28  ;;  %v10123_v18 = vmax.f32 %v7489_v26, 0.0  ;;  %v7561_v28 = vld [vmem:[%s7074_s23 + $0x98] sm:$0xff] }
  0x7b   : > { %10249 = vst [vmem:[#allocation22_spill] sm:$0xff] %v7263_v37 }
  0x7c   : > { %550 = vst.msk [vmem:[#allocation2 + $0x139] sm:$0xff] %vm349_vm0, %v10115_v30 }
  0x7d   : > { %527 = vst.msk [vmem:[#allocation2 + $0x21] sm:$0xff] %vm349_vm0, %v10134_v32 }
  0x7e   : > { %551 = vst.msk [vmem:[#allocation2 + $0x141] sm:$0xff] %vm349_vm0, %v10114_v34 }
  0x7f   : > { %528 = vst.msk [vmem:[#allocation2 + $0x31] sm:$0xff] %vm349_vm0, %v10133_v36 }
  0x80   : > { %10250 = vst [vmem:[#allocation23_spill] sm:$0xff] %v7285_v43  ;;  %v619_v45 = vld [vmem:[#allocation2 + $0x129] sm:$0xff] }
  0x81   : > { %552 = vst.msk [vmem:[#allocation2 + $0x151] sm:$0xff] %vm349_vm0, %v10113_v38  ;;  %6014 = vmatmul.msk.f32.gmra.mxu3 %vm349_vm0, %v619_v45  ;;  %v596_v46 = vld [vmem:[#allocation2 + $0x19] sm:$0xff]  ;;  %v7596_v15 = vld [vmem:[#allocation2 + $0x12a] sm:$0xff] }
  0x82   : > { %529 = vst.msk [vmem:[#allocation2 + $0x39] sm:$0xff] %vm349_vm0, %v10132_v40  ;;  %v7295_v47 = vld [vmem:[#allocation2 + $0x18] sm:$0xff]  ;;  %5991 = vmatmul.msk.f32.gmra.mxu0 %vm349_vm0, %v596_v46 }
  0x83   : > { %553 = vst.msk [vmem:[#allocation2 + $0x159] sm:$0xff] %vm349_vm0, %v10112_v41  ;;  %6023 = vmatmul.msk.f32.gmra.mxu1 %vm349_vm0, %v7295_v47  ;;  %v620_v51 = vld [vmem:[#allocation2 + $0x139] sm:$0xff] }
  0x84   : > { %530 = vst.msk [vmem:[#allocation2 + $0x49] sm:$0xff] %vm349_vm0, %v10130_v42  ;;  %v7309_v49 = vld [vmem:[#allocation2 + $0x1a] sm:$0xff]  ;;  %v7327_v56 = vld [vmem:[#allocation2 + $0x22] sm:$0xff] }
  0x85   : > { %554 = vst.msk [vmem:[#allocation2 + $0x169] sm:$0xff] %vm349_vm0, %v10111_v44  ;;  %6055 = vmatmul.msk.f32.gmra.mxu2 %vm349_vm0, %v7309_v49  ;;  %v597_v53 = vld [vmem:[#allocation2 + $0x21] sm:$0xff] }
  0x86   : > { %531 = vst.msk [vmem:[#allocation2 + $0x51] sm:$0xff] %vm349_vm0, %v10129_v50  ;;  %v7323_v54 = vld [vmem:[#allocation2 + $0x20] sm:$0xff]  ;;  %v598_v60 = vld [vmem:[#allocation2 + $0x31] sm:$0xff] }
  0x87   : > { %10251 = vst [vmem:[#allocation24_spill] sm:$0xff] %v7321_v52  ;;  %v621_v59 = vld [vmem:[#allocation2 + $0x141] sm:$0xff]  ;;  %v7344_v61 = vld [vmem:[#allocation2 + $0x30] sm:$0xff] }
  0x88   : > { %555 = vst.msk [vmem:[#allocation2 + $0x171] sm:$0xff] %vm349_vm0, %v10110_v55  ;;  %v622_v3 = vld [vmem:[#allocation2 + $0x151] sm:$0xff]  ;;  %v10119_v55 = vmax.f32 %v7455_v0, 0.0  ;;  %v585_v34 = vld [vmem:[#allocation2 + $0x140] sm:$0xff] }
  0x89   : > { %6015 = vmatmul.msk.f32.gmra.mxu3 %vm349_vm0, %v620_v51  ;;  %532 = vst.msk [vmem:[#allocation2 + $0x61] sm:$0xff] %vm349_vm0, %v10128_v58  ;;  %v7347_v62 = vld [vmem:[#allocation2 + $0x32] sm:$0xff]  ;;  %v7364_v6 = vld [vmem:[#allocation2 + $0x3a] sm:$0xff] }
  0x8a   : > { %5992 = vmatmul.msk.f32.gmra.mxu0 %vm349_vm0, %v597_v53  ;;  %533 = vst.msk [vmem:[#allocation2 + $0x69] sm:$0xff] %vm349_vm0, %v10126_v2  ;;  %v599_v4 = vld [vmem:[#allocation2 + $0x39] sm:$0xff]  ;;  %v1362_v50 = vld [vmem:[#allocation7 + $0x70] sm:$0xff] }
  0x8b   : > { %6024 = vmatmul.msk.f32.gmra.mxu1 %vm349_vm0, %v7323_v54  ;;  %v7361_v5 = vld [vmem:[#allocation2 + $0x38] sm:$0xff]  ;;  %534 = vst.msk [vmem:[#allocation2 + $0x79] sm:$0xff] %vm349_vm0, %v10125_v8  ;;  %v600_v10 = vld [vmem:[#allocation2 + $0x49] sm:$0xff] }
  0x8c   : > { %v623_v9 = vld [vmem:[#allocation2 + $0x159] sm:$0xff]  ;;  %v7378_v11 = vld [vmem:[#allocation2 + $0x48] sm:$0xff]  ;;  %535 = vst.msk [vmem:[#allocation2 + $0x81] sm:$0xff] %vm349_vm0, %v10124_v14 }
  0x8d   : > { %6056 = vmatmul.msk.f32.gmra.mxu2 %vm349_vm0, %v7327_v56  ;;  %v7381_v12 = vld [vmem:[#allocation2 + $0x4a] sm:$0xff]  ;;  %v7398_v20 = vld [vmem:[#allocation2 + $0x52] sm:$0xff]  ;;  %536 = vst.msk [vmem:[#allocation2 + $0x91] sm:$0xff] %vm349_vm0, %v10122_v22  ;;  %v7506_v22 = vld [vmem:[%s7074_s23 + $0x80] sm:$0xff] }
  0x8e   : > { %v624_v16 = vld [vmem:[#allocation2 + $0x169] sm:$0xff]  ;;  %v601_v17 = vld [vmem:[#allocation2 + $0x51] sm:$0xff]  ;;  %539 = vst.msk [vmem:[#allocation2 + $0xb1] sm:$0xff] %vm349_vm0, %v10119_v55 }
  0x8f   : > { %v7395_v19 = vld [vmem:[#allocation2 + $0x50] sm:$0xff]  ;;  %541 = vst.msk [vmem:[#allocation2 + $0xc9] sm:$0xff] %vm349_vm0, %v10123_v18  ;;  %v10127_v18 = vmax.f32 %v7506_v22, 0.0 }
  0x90   : > { %v625_v45 = vld [vmem:[#allocation2 + $0x171] sm:$0xff]  ;;  %v602_v46 = vld [vmem:[#allocation2 + $0x61] sm:$0xff]  ;;  %10252 = vst [vmem:[#allocation25_spill] sm:$0xff] %v7506_v22 }
  0x91   : > { %6016 = vmatmul.msk.f32.gmra.mxu3 %vm349_vm0, %v621_v59  ;;  %v7412_v51 = vld [vmem:[#allocation2 + $0x60] sm:$0xff]  ;;  %v7421_v59 = vld [vmem:[%s7074_s23 + $0x58] sm:$0xff]  ;;  %542 = vst.msk [vmem:[#allocation2 + $0xd9] sm:$0xff] %vm349_vm0, %v10127_v18  ;;  %v589_v40 = vld [vmem:[#allocation2 + $0x170] sm:$0xff] }
  0x92   : > { %5993 = vmatmul.msk.f32.gmra.mxu0 %vm349_vm0, %v598_v60  ;;  %v7415_v53 = vld [vmem:[#allocation2 + $0x62] sm:$0xff]  ;;  %v10121_v60 = vmax.f32 %v7421_v59, 0.0  ;;  %10257 = vst [vmem:[#allocation30_spill] sm:$0xff] %v7561_v28 }
  0x93   : > { %6025 = vmatmul.msk.f32.gmra.mxu1 %vm349_vm0, %v7344_v61  ;;  %v605_v44 = vld [vmem:[#allocation2 + $0x81] sm:$0xff]  ;;  %10265 = vst [vmem:[#allocation38_spill] sm:$0xff] %v7596_v15 }
  0x94   : > { %537 = vst.msk [vmem:[#allocation2 + $0x99] sm:$0xff] %vm349_vm0, %v10121_v60  ;;  %v7463_v41 = vld [vmem:[#allocation2 + $0x80] sm:$0xff]  ;;  %v7480_v30 = vld [vmem:[#allocation2 + $0x90] sm:$0xff]  ;;  %v2166_v60 = vld [vmem:[#allocation7 + $0xd8] sm:$0xff] }
  0x95   : > { %6057 = vmatmul.msk.f32.gmra.mxu2 %vm349_vm0, %v7347_v62  ;;  %v609_v18 = vld [vmem:[#allocation2 + $0xb1] sm:$0xff] }
  0x96   : > { %2275 = vmatpush.msrb.mxu2 %v2166_v60  ;;  %v1887_v60 = vld [vmem:[#allocation7 + $0xb8] sm:$0xff]  ;;  %v611_v37 = vld [vmem:[#allocation2 + $0xc9] sm:$0xff] }
  0x97   : > { %1996 = vmatpush.msrb.mxu1 %v1887_v60 }
  0x99   : > { %6017 = vmatmul.msk.f32.gmra.mxu3 %vm349_vm0, %v622_v3  ;;  %v603_v3 = vld [vmem:[#allocation2 + $0x69] sm:$0xff] }
  0x9a   : > { %5994 = vmatmul.msk.f32.gmra.mxu0 %vm349_vm0, %v599_v4  ;;  %v7429_v4 = vld [vmem:[#allocation2 + $0x68] sm:$0xff] }
  0x9b   : > { %6026 = vmatmul.msk.f32.gmra.mxu1 %vm349_vm0, %v7361_v5  ;;  %v7497_v55 = vld [vmem:[#allocation2 + $0x98] sm:$0xff] }
  0x9d   : > { %6058 = vmatmul.msk.f32.gmra.mxu2 %vm349_vm0, %v7364_v6 }
  0xa1   : > { %6018 = vmatmul.msk.f32.gmra.mxu3 %vm349_vm0, %v623_v9  ;;  %v7432_v9 = vld [vmem:[#allocation2 + $0x6a] sm:$0xff] }
  0xa2   : > { %5995 = vmatmul.msk.f32.gmra.mxu0 %vm349_vm0, %v600_v10  ;;  %v7438_v10 = vld [vmem:[%s7074_s23 + $0x60] sm:$0xff] }
  0xa3   : > { %6027 = vmatmul.msk.f32.gmra.mxu1 %vm349_vm0, %v7378_v11 }
  0xa5   : > { %6059 = vmatmul.msk.f32.gmra.mxu2 %vm349_vm0, %v7381_v12 }
  0xa9   : > { %6019 = vmatmul.msk.f32.gmra.mxu3 %vm349_vm0, %v624_v16  ;;  %v10120_v16 = vmax.f32 %v7438_v10, 0.0 }
  0xaa   : > { %5996 = vmatmul.msk.f32.gmra.mxu0 %vm349_vm0, %v601_v17  ;;  %v583_v17 = vld [vmem:[#allocation2 + $0x128] sm:$0xff] }
  0xab   : > { %6028 = vmatmul.msk.f32.gmra.mxu1 %vm349_vm0, %v7395_v19  ;;  %538 = vst.msk [vmem:[#allocation2 + $0xa9] sm:$0xff] %vm349_vm0, %v10120_v16  ;;  %v1363_v16 = vld [vmem:[#allocation7 + $0x78] sm:$0xff] }
  0xad   : > { %6060 = vmatmul.msk.f32.gmra.mxu2 %vm349_vm0, %v7398_v20 }
  0xb1   : > { %6020 = vmatmul.msk.f32.gmra.mxu3 %vm349_vm0, %v625_v45  ;;  %v604_v45 = vld [vmem:[#allocation2 + $0x79] sm:$0xff] }
  0xb2   : > { %5997 = vmatmul.msk.f32.gmra.mxu0 %vm349_vm0, %v602_v46  ;;  %v7446_v46 = vld [vmem:[#allocation2 + $0x78] sm:$0xff]  ;;  %v608_v14 = vld [vmem:[#allocation2 + $0xa9] sm:$0xff] }
  0xb3   : > { %6029 = vmatmul.msk.f32.gmra.mxu1 %vm349_vm0, %v7412_v51  ;;  %v7517_v8 = vld [vmem:[#allocation2 + $0xaa] sm:$0xff] }
  0xb4   : > { %v7531_v58 = vld [vmem:[#allocation2 + $0xb0] sm:$0xff] }
  0xb5   : > { %6061 = vmatmul.msk.f32.gmra.mxu2 %vm349_vm0, %v7415_v53 }
  0xb9   : > { %6045 = vmatmul.msk.f32.vlgmr.msrb.gmra.mxu3 %vm349_vm0, %v582_v63  ;;  %v7449_v63 = vld [vmem:[#allocation2 + $0x7a] sm:$0xff] }
  0xba   : > { %5998 = vmatmul.msk.f32.gmra.mxu0 %vm349_vm0, %v603_v3  ;;  %v1607_v3 = vld [vmem:[#allocation7 + $0x88] sm:$0xff]  ;;  %1472 = vmatpush.msrb.mxu3 %v1363_v16 }
  0xbb   : > { %6030 = vmatmul.msk.f32.gmra.mxu1 %vm349_vm0, %v7429_v4  ;;  %1720 = vmatpush.msrb.mxu0 %v1607_v3  ;;  %v7472_v3 = vld [vmem:[%s7074_s23 + $0x70] sm:$0xff]  ;;  %v7523_v16 = vld [vmem:[%s7074_s23 + $0x88] sm:$0xff] }
  0xbc   : > { %v10118_v38 = vmax.f32 %v7472_v3, 0.0  ;;  %10253 = vst [vmem:[#allocation26_spill] sm:$0xff] %v7523_v16  ;;  %v10131_v2 = vmax.f32 %v7523_v16, 0.0  ;;  %1473 = vmatpush.msrb.mxu3 %v1362_v50  ;;  %v1606_v50 = vld [vmem:[#allocation7 + $0x80] sm:$0xff] }
  0xbd   : > { %6062 = vmatmul.msk.f32.gmra.mxu2 %vm349_vm0, %v7432_v9  ;;  %1721 = vmatpush.msrb.mxu0 %v1606_v50  ;;  %v7581_v50 = vld [vmem:[#allocation2 + $0xca] sm:$0xff] }
  0xbe   : > { %540 = vst.msk [vmem:[#allocation2 + $0xc1] sm:$0xff] %vm349_vm0, %v10118_v38  ;;  %v607_v38 = vld [vmem:[#allocation2 + $0x99] sm:$0xff]  ;;  %1474 = vmatpush.msrb.mxu3 %v1361_v29 }
  0xbf   : > { %543 = vst.msk [vmem:[#allocation2 + $0xe1] sm:$0xff] %vm349_vm0, %v10131_v2  ;;  %v7544_v2 = vld [vmem:[%s7074_s23 + $0x90] sm:$0xff]  ;;  %v7605_v29 = vld [vmem:[#allocation2 + $0xd8] sm:$0xff] }
  0xc0   : > { %10256 = vst [vmem:[#allocation29_spill] sm:$0xff] %v7544_v2 }
  0xc1   : > { %6046 = vmatmul.msk.f32.gmra.mxu3 %vm349_vm0, %v583_v17  ;;  %v584_v17 = vld [vmem:[#allocation2 + $0x138] sm:$0xff]  ;;  %10262 = vst [vmem:[#allocation35_spill] sm:$0xff] %v7581_v50 }
  0xc2   : > { %5999 = vmatmul.msk.f32.gmra.mxu0 %vm349_vm0, %v604_v45  ;;  %v7466_v45 = vld [vmem:[#allocation2 + $0x82] sm:$0xff] }
  0xc3   : > { %6031 = vmatmul.msk.f32.gmra.mxu1 %vm349_vm0, %v7446_v46  ;;  %v7539_v60 = vpop.f32.mrf.mxu0 }
  0xc4   : > { %10254 = vst [vmem:[#allocation27_spill] sm:$0xff] %v7539_v60 }
  0xc5   : > { %6063 = vmatmul.msk.f32.gmra.mxu2 %vm349_vm0, %v7449_v63  ;;  %v7541_v42 = vpop.f32.mrf.mxu1  ;;  %v7552_v36 = vld [vmem:[#allocation2 + $0xc0] sm:$0xff]  ;;  %v7577_v33 = vld [vmem:[#allocation2 + $0xc8] sm:$0xff] }
  0xc6   : > { %10255 = vst [vmem:[#allocation28_spill] sm:$0xff] %v7541_v42  ;;  %v7555_v32 = vld [vmem:[#allocation2 + $0xc2] sm:$0xff] }
  0xc7   : > { %v7637_v16 = vld [vmem:[#allocation2 + $0xe2] sm:$0xff] }
  0xc8   : > { %10275 = vst [vmem:[#allocation48_spill] sm:$0xff] %v7637_v16  ;;  %v1360_v42 = vld [vmem:[#allocation7 + $0x60] sm:$0xff] }
  0xc9   : > { %6047 = vmatmul.msk.f32.gmra.mxu3 %vm349_vm0, %v584_v17  ;;  %v606_v17 = vld [vmem:[#allocation2 + $0x91] sm:$0xff] }
  0xca   : > { %6000 = vmatmul.msk.f32.gmra.mxu0 %vm349_vm0, %v605_v44  ;;  %v7483_v44 = vld [vmem:[#allocation2 + $0x92] sm:$0xff]  ;;  %v7563_v52 = vpop.f32.mrf.mxu2  ;;  %1475 = vmatpush.msrb.mxu3 %v1360_v42 }
  0xcb   : > { %6032 = vmatmul.msk.f32.gmra.mxu1 %vm349_vm0, %v7463_v41  ;;  %10258 = vst [vmem:[#allocation31_spill] sm:$0xff] %v7563_v52 }
  0xcd   : > { %6064 = vmatmul.msk.f32.gmra.mxu2 %vm349_vm0, %v7466_v45  ;;  %v7570_v43 = vpop.f32.mrf.mxu1 }
  0xce   : > { %10260 = vst [vmem:[#allocation33_spill] sm:$0xff] %v7570_v43  ;;  %v7609_v43 = vld [vmem:[#allocation2 + $0xda] sm:$0xff] }
  0xcf   : > { %10268 = vst [vmem:[#allocation41_spill] sm:$0xff] %v7609_v43 }
  0xd1   : > { %6048 = vmatmul.msk.f32.gmra.mxu3 %vm349_vm0, %v585_v34  ;;  %v586_v34 = vld [vmem:[#allocation2 + $0x150] sm:$0xff] }
  0xd2   : > { %6001 = vmatmul.msk.f32.gmra.mxu0 %vm349_vm0, %v606_v17  ;;  %v7500_v17 = vld [vmem:[#allocation2 + $0x9a] sm:$0xff] }
  0xd3   : > { %6033 = vmatmul.msk.f32.gmra.mxu1 %vm349_vm0, %v7480_v30 }
  0xd5   : > { %6065 = vmatmul.msk.f32.gmra.mxu2 %vm349_vm0, %v7483_v44 }
  0xd9   : > { %6049 = vmatmul.msk.f32.gmra.mxu3 %vm349_vm0, %v586_v34  ;;  %v587_v34 = vld [vmem:[#allocation2 + $0x158] sm:$0xff] }
  0xda   : > { %6002 = vmatmul.msk.f32.gmra.mxu0 %vm349_vm0, %v607_v38  ;;  %v7514_v38 = vld [vmem:[#allocation2 + $0xa8] sm:$0xff] }
  0xdb   : > { %6034 = vmatmul.msk.f32.gmra.mxu1 %vm349_vm0, %v7497_v55 }
  0xdd   : > { %6066 = vmatmul.msk.f32.gmra.mxu2 %vm349_vm0, %v7500_v17 }
  0xe1   : > { %6050 = vmatmul.msk.f32.gmra.mxu3 %vm349_vm0, %v587_v34  ;;  %v588_v34 = vld [vmem:[#allocation2 + $0x168] sm:$0xff] }
  0xe2   : > { %6003 = vmatmul.msk.f32.gmra.mxu0 %vm349_vm0, %v608_v14  ;;  %v7534_v14 = vld [vmem:[#allocation2 + $0xb2] sm:$0xff] }
  0xe3   : > { %6035 = vmatmul.msk.f32.gmra.mxu1 %vm349_vm0, %v7514_v38 }
  0xe5   : > { %6067 = vmatmul.msk.f32.gmra.mxu2 %vm349_vm0, %v7517_v8 }
  0xe9   : > { %6051 = vmatmul.msk.f32.gmra.mxu3 %vm349_vm0, %v588_v34  ;;  %v10137_v34 = vmax.f32 %v7544_v2, 0.0 }
  0xea   : > { %6004 = vmatmul.msk.f32.gmra.mxu0 %vm349_vm0, %v609_v18  ;;  %v610_v18 = vld [vmem:[#allocation2 + $0xc1] sm:$0xff] }
  0xeb   : > { %6036 = vmatmul.msk.f32.gmra.mxu1 %vm349_vm0, %v7531_v58  ;;  %544 = vst.msk [vmem:[#allocation2 + $0xf1] sm:$0xff] %vm349_vm0, %v10137_v34  ;;  %v10143_v34 = vmax.f32 %v7561_v28, 0.0  ;;  %v612_v28 = vld [vmem:[#allocation2 + $0xd9] sm:$0xff] }
  0xed   : > { %6068 = vmatmul.msk.f32.gmra.mxu2 %vm349_vm0, %v7534_v14  ;;  %545 = vst.msk [vmem:[#allocation2 + $0xf9] sm:$0xff] %vm349_vm0, %v10143_v34  ;;  %v7583_v25 = vpop.f32.mrf.mxu3  ;;  %v7589_v34 = vld [vmem:[%s7074_s23 + $0xa0] sm:$0xff] }
  0xee   : > { %10263 = vst [vmem:[#allocation36_spill] sm:$0xff] %v7589_v34  ;;  %v10150_v23 = vmax.f32 %v7589_v34, 0.0  ;;  %v7615_v34 = vld [vmem:[%s7074_s23 + $0xa8] sm:$0xff] }
  0xef   : > { %10269 = vst [vmem:[#allocation42_spill] sm:$0xff] %v7615_v34 }
  0xf0   : > { %546 = vst.msk [vmem:[#allocation2 + $0x109] sm:$0xff] %vm349_vm0, %v10150_v23  ;;  %v10153_v23 = vmax.f32 %v7615_v34, 0.0  ;;  %v2165_v34 = vld [vmem:[#allocation7 + $0xd0] sm:$0xff] }
  0xf1   : > { %6052 = vmatmul.msk.f32.gmra.mxu3 %vm349_vm0, %v589_v40  ;;  %v7568_v40 = vpop.f32.mrf.mxu0  ;;  %2276 = vmatpush.msrb.mxu2 %v2165_v34 }
  0xf2   : > { %6005 = vmatmul.msk.f32.gmra.mxu0 %vm349_vm0, %v610_v18  ;;  %10259 = vst [vmem:[#allocation32_spill] sm:$0xff] %v7568_v40  ;;  %v7575_v18 = vld [vmem:[#allocation2 + $0x122] sm:$0xff]  ;;  %v7652_v60 = vld [vmem:[#allocation2 + $0xf0] sm:$0xff] }
  0xf3   : > { %6037 = vmatmul.msk.f32.gmra.mxu1 %vm349_vm0, %v7552_v36  ;;  %10261 = vst [vmem:[#allocation34_spill] sm:$0xff] %v7575_v18  ;;  %v7631_v40 = vld [vmem:[#allocation2 + $0xe0] sm:$0xff] }
  0xf4   : > { %547 = vst.msk [vmem:[#allocation2 + $0x111] sm:$0xff] %vm349_vm0, %v10153_v23  ;;  %v7658_v42 = vld [vmem:[#allocation2 + $0xf2] sm:$0xff] }
  0xf5   : > { %6069 = vmatmul.msk.f32.gmra.mxu2 %vm349_vm0, %v7555_v32  ;;  %10273 = vst [vmem:[#allocation46_spill] sm:$0xff] %v7631_v40 }
  0xf6   : > { %10279 = vst [vmem:[#allocation52_spill] sm:$0xff] %v7652_v60 }
  0xf7   : > { %10281 = vst [vmem:[#allocation54_spill] sm:$0xff] %v7658_v42 }
  0xf9   : > { %6077 = vmatmul.msk.f32.vlgmr.msra.gmra.mxu3 %vm349_vm0, %v7575_v18  ;;  %v7594_v18 = vpop.f32.mrf.mxu2 }
  0xfa   : > { %6006 = vmatmul.msk.f32.gmra.mxu0 %vm349_vm0, %v611_v37  ;;  %10264 = vst [vmem:[#allocation37_spill] sm:$0xff] %v7594_v18 }
  0xfb   : > { %6038 = vmatmul.msk.f32.gmra.mxu1 %vm349_vm0, %v7577_v33 }
  0xfd   : > { %6070 = vmatmul.msk.f32.gmra.mxu2 %vm349_vm0, %v7581_v50  ;;  %v7694_v50 = vld [vmem:[#allocation2 + $0x108] sm:$0xff] }
  0xff   : > { %v7601_v37 = vpop.f32.mrf.mxu0 }
 0x100   : > { %10266 = vst [vmem:[#allocation39_spill] sm:$0xff] %v7601_v37  ;;  %v7603_v2 = vpop.f32.mrf.mxu1 }
 0x101   : > { %10267 = vst [vmem:[#allocation40_spill] sm:$0xff] %v7603_v2  ;;  %6078 = vmatmul.msk.f32.gmra.mxu3 %vm349_vm0, %v7596_v15  ;;  %v7625_v15 = vld [vmem:[#allocation2 + $0x13a] sm:$0xff] }
 0x102   : > { %6007 = vmatmul.msk.f32.gmra.mxu0 %vm349_vm0, %v612_v28  ;;  %10270 = vst [vmem:[#allocation43_spill] sm:$0xff] %v7625_v15  ;;  %v613_v28 = vld [vmem:[#allocation2 + $0xe1] sm:$0xff] }
 0x103   : > { %6039 = vmatmul.msk.f32.gmra.mxu1 %vm349_vm0, %v7605_v29 }
 0x104   : > { %v7618_v37 = vpop.f32.mrf.mxu3 }
 0x105   : > { %6071 = vmatmul.msk.f32.gmra.mxu2 %vm349_vm0, %v7609_v43  ;;  %v1886_v43 = vld [vmem:[#allocation7 + $0xb0] sm:$0xff] }
 0x106   : > { %1997 = vmatpush.msrb.mxu1 %v1886_v43  ;;  %v2444_v43 = vld [vmem:[#allocation7 + $0xf8] sm:$0xff] }
 0x107   : > { %v7627_v2 = vpop.f32.mrf.mxu0  ;;  %2553 = vmatpush.msra.mxu3 %v2444_v43 }
 0x108   : > { %10271 = vst [vmem:[#allocation44_spill] sm:$0xff] %v7627_v2  ;;  %v7629_v18 = vpop.f32.mrf.mxu2  ;;  %v7633_v52 = vpop.f32.mrf.mxu1 }
 0x109   : > { %10272 = vst [vmem:[#allocation45_spill] sm:$0xff] %v7629_v18  ;;  %6079 = vmatmul.msk.f32.gmra.mxu3 %vm349_vm0, %v7625_v15  ;;  %v614_v15 = vld [vmem:[#allocation2 + $0xf1] sm:$0xff] }
 0x10a   : > { %10274 = vst [vmem:[#allocation47_spill] sm:$0xff] %v7633_v52  ;;  %6008 = vmatmul.msk.f32.gmra.mxu0 %vm349_vm0, %v613_v28  ;;  %v7646_v52 = vld [vmem:[#allocation2 + $0x142] sm:$0xff] }
 0x10b   : > { %6040 = vmatmul.msk.f32.gmra.mxu1 %vm349_vm0, %v7631_v40  ;;  %10276 = vst [vmem:[#allocation49_spill] sm:$0xff] %v7646_v52  ;;  %v616_v40 = vld [vmem:[#allocation2 + $0x109] sm:$0xff] }
 0x10c   : > { %v7642_v23 = vpop.f32.mrf.mxu3 }
 0x10d   : > { %6072 = vmatmul.msk.f32.gmra.mxu2 %vm349_vm0, %v7637_v16  ;;  %v7673_v16 = vld [vmem:[#allocation2 + $0xf8] sm:$0xff] }
 0x10e   : > { %10285 = vst [vmem:[#allocation58_spill] sm:$0xff] %v7673_v16 }
 0x10f   : > { %v7648_v2 = vpop.f32.mrf.mxu0 }
 0x110   : > { %10277 = vst [vmem:[#allocation50_spill] sm:$0xff] %v7648_v2  ;;  %v7650_v18 = vpop.f32.mrf.mxu2  ;;  %v7654_v28 = vpop.f32.mrf.mxu1  ;;  %v7667_v2 = vld [vmem:[#allocation2 + $0x152] sm:$0xff] }
 0x111   : > { %10278 = vst [vmem:[#allocation51_spill] sm:$0xff] %v7650_v18  ;;  %6080 = vmatmul.msk.f32.gmra.mxu3 %vm349_vm0, %v7646_v52  ;;  %v615_v18 = vld [vmem:[#allocation2 + $0xf9] sm:$0xff] }
 0x112   : > { %10280 = vst [vmem:[#allocation53_spill] sm:$0xff] %v7654_v28  ;;  %6009 = vmatmul.msk.f32.gmra.mxu0 %vm349_vm0, %v614_v15  ;;  %v7679_v15 = vld [vmem:[#allocation2 + $0xfa] sm:$0xff] }
 0x113   : > { %6041 = vmatmul.msk.f32.gmra.mxu1 %vm349_vm0, %v7652_v60  ;;  %10282 = vst [vmem:[#allocation55_spill] sm:$0xff] %v7667_v2  ;;  %v7688_v60 = vld [vmem:[#allocation2 + $0x15a] sm:$0xff] }
 0x114   : > { %v7663_v34 = vpop.f32.mrf.mxu3  ;;  %10287 = vst [vmem:[#allocation60_spill] sm:$0xff] %v7679_v15 }
 0x115   : > { %6073 = vmatmul.msk.f32.gmra.mxu2 %vm349_vm0, %v7658_v42  ;;  %10288 = vst [vmem:[#allocation61_spill] sm:$0xff] %v7688_v60 }
 0x117   : > { %v7669_v28 = vpop.f32.mrf.mxu0 }
 0x118   : > { %10283 = vst [vmem:[#allocation56_spill] sm:$0xff] %v7669_v28  ;;  %v7671_v52 = vpop.f32.mrf.mxu2  ;;  %v7675_v22 = vpop.f32.mrf.mxu1  ;;  %v2164_v28 = vld [vmem:[#allocation7 + $0xc8] sm:$0xff] }
 0x119   : > { %10284 = vst [vmem:[#allocation57_spill] sm:$0xff] %v7671_v52  ;;  %6081 = vmatmul.msk.f32.gmra.mxu3 %vm349_vm0, %v7667_v2  ;;  %2277 = vmatpush.msrb.mxu2 %v2164_v28  ;;  %v1885_v52 = vld [vmem:[#allocation7 + $0xa8] sm:$0xff]  ;;  %v2722_v28 = vld [vmem:[#allocation7 + $0x118] sm:$0xff] }
 0x11a   : > { %10286 = vst [vmem:[#allocation59_spill] sm:$0xff] %v7675_v22  ;;  %6010 = vmatmul.msk.f32.gmra.mxu0 %vm349_vm0, %v615_v18  ;;  %v2163_v22 = vld [vmem:[#allocation7 + $0xc0] sm:$0xff]  ;;  %1998 = vmatpush.msrb.mxu1 %v1885_v52 }
 0x11b   : > { %6042 = vmatmul.msk.f32.gmra.mxu1 %vm349_vm0, %v7673_v16  ;;  %2278 = vmatpush.msrb.mxu2 %v2163_v22  ;;  %v1884_v16 = vld [vmem:[#allocation7 + $0xa0] sm:$0xff]  ;;  %v7709_v22 = vld [vmem:[#allocation2 + $0x16a] sm:$0xff] }
 0x11c   : > { %v7684_v42 = vpop.f32.mrf.mxu3  ;;  %2831 = vmatpush.msra.mxu0 %v2722_v28  ;;  %1999 = vmatpush.msrb.mxu1 %v1884_v16  ;;  %10293 = vst [vmem:[#allocation66_spill] sm:$0xff] %v7709_v22  ;;  %v7721_v16 = vld [vmem:[#allocation2 + $0x112] sm:$0xff] }
 0x11d   : > { %6074 = vmatmul.msk.f32.gmra.mxu2 %vm349_vm0, %v7679_v15  ;;  %v7700_v15 = vld [vmem:[#allocation2 + $0x10a] sm:$0xff] }
 0x11e   : > { %10292 = vst [vmem:[#allocation65_spill] sm:$0xff] %v7700_v15 }
 0x11f   : > { %v7690_v2 = vpop.f32.mrf.mxu0 }
 0x120   : > { %10289 = vst [vmem:[#allocation62_spill] sm:$0xff] %v7690_v2  ;;  %v7692_v18 = vpop.f32.mrf.mxu2  ;;  %v7696_v43 = vpop.f32.mrf.mxu1 }
 0x121   : > { %10290 = vst [vmem:[#allocation63_spill] sm:$0xff] %v7692_v18  ;;  %6082 = vmatmul.msk.f32.gmra.mxu3 %vm349_vm0, %v7688_v60  ;;  %v617_v60 = vld [vmem:[#allocation2 + $0x111] sm:$0xff] }
 0x122   : > { %10291 = vst [vmem:[#allocation64_spill] sm:$0xff] %v7696_v43  ;;  %6011 = vmatmul.msk.f32.gmra.mxu0 %vm349_vm0, %v616_v40  ;;  %v7715_v18 = vld [vmem:[#allocation2 + $0x110] sm:$0xff] }
 0x123   : > { %6043 = vmatmul.msk.f32.gmra.mxu1 %vm349_vm0, %v7694_v50 }
 0x124   : > { %v7705_v52 = vpop.f32.mrf.mxu3 }
 0x125   : > { %6075 = vmatmul.msk.f32.gmra.mxu2 %vm349_vm0, %v7700_v15 }
 0x127   : > { %v7711_v43 = vpop.f32.mrf.mxu0 }
 0x128   : > { %10294 = vst [vmem:[#allocation67_spill] sm:$0xff] %v7711_v43  ;;  %v7713_v2 = vpop.f32.mrf.mxu2  ;;  %v7717_v40 = vpop.f32.mrf.mxu1  ;;  %v7730_v43 = vld [vmem:[#allocation2 + $0x172] sm:$0xff] }
 0x129   : > { %10295 = vst [vmem:[#allocation68_spill] sm:$0xff] %v7713_v2  ;;  %6083 = vmatmul.msk.f32.gmra.mxu3 %vm349_vm0, %v7709_v22 }
 0x12a   : > { %10296 = vst [vmem:[#allocation69_spill] sm:$0xff] %v7717_v40  ;;  %6012 = vmatmul.msk.f32.gmra.mxu0 %vm349_vm0, %v617_v60  ;;  %v10301_v60 = vmax.f32 %v7218_v24, 0.0  ;;  %v10304_v24 = vmax.f32 %v7230_v27, 0.0  ;;  %v10305_v27 = vmax.f32 %v7243_v31, 0.0  ;;  %v10306_v31 = vmax.f32 %v7256_v35, 0.0 }
 0x12b   : > { %6044 = vmatmul.msk.f32.gmra.mxu1 %vm349_vm0, %v7715_v18  ;;  %10297 = vst [vmem:[#allocation70_spill] sm:$0xff] %v7730_v43  ;;  %v10307_v35 = vmax.f32 %v7270_v39, 0.0  ;;  %v2443_v39 = vld [vmem:[#allocation7 + $0xf0] sm:$0xff] }
 0x12c   : > { %v7726_v28 = vpop.f32.mrf.mxu3  ;;  %2554 = vmatpush.msra.mxu3 %v2443_v39 }
 0x12d   : > { %6076 = vmatmul.msk.f32.gmra.mxu2 %vm349_vm0, %v7721_v16 }
 0x12f   : > { %v7732_v2 = vpop.f32.mrf.mxu0 }
 0x130   : > { %10298 = vst [vmem:[#allocation71_spill] sm:$0xff] %v7732_v2  ;;  %v7734_v40 = vpop.f32.mrf.mxu2  ;;  %v7736_v15 = vpop.f32.mrf.mxu1 }
 0x131   : > { %10299 = vst [vmem:[#allocation72_spill] sm:$0xff] %v7734_v40  ;;  %6084 = vmatmul.msk.f32.gmra.mxu3 %vm349_vm0, %v7730_v43 }
 0x132   : > { %10300 = vst [vmem:[#allocation73_spill] sm:$0xff] %v7736_v15  ;;  %6117 = vmatmul.msk.f32.vlgmr.msrb.gmra.mxu0 %vm349_vm0, %v10301_v60 }
 0x133   : > { %6149 = vmatmul.msk.f32.vlgmr.msrb.gmra.mxu1 %vm349_vm0, %v7309_v49 }
 0x134   : > { %v7745_v22 = vpop.f32.mrf.mxu3 }
 0x135   : > { %6181 = vmatmul.msk.f32.vlgmr.msrb.gmra.mxu2 %vm349_vm0, %v7344_v61 }
 0x137   : > { %v7749_v2 = vpop.f32.mrf.mxu0 }
 0x138   : > { %10302 = vst [vmem:[#allocation74_spill] sm:$0xff] %v7749_v2  ;;  %v7751_v40 = vpop.f32.mrf.mxu2  ;;  %v7753_v15 = vpop.f32.mrf.mxu1 }
 0x139   : > { %10303 = vst [vmem:[#allocation75_spill] sm:$0xff] %v7753_v15  ;;  %6085 = vmatmul.msk.f32.vlgmr.msrb.gmra.mxu3 %vm349_vm0, %v7295_v47 }
 0x13a   : > { %6118 = vmatmul.msk.f32.gmra.mxu0 %vm349_vm0, %v10304_v24 }
 0x13b   : > { %6150 = vmatmul.msk.f32.gmra.mxu1 %vm349_vm0, %v7327_v56 }
 0x13c   : > { %v1025_v49 = vpop.f32.mrf.mxu3 }
 0x13d   : > { %6182 = vmatmul.msk.f32.gmra.mxu2 %vm349_vm0, %v7361_v5  ;;  %v7765_v60 = vadd.f32 %v1025_v49, %v7583_v25 }
 0x13f   : > { %v7767_v43 = vpop.f32.mrf.mxu0 }
 0x140   : > { %v7769_v15 = vpop.f32.mrf.mxu2  ;;  %v7771_v2 = vpop.f32.mrf.mxu1 }
 0x141   : > { %6086 = vmatmul.msk.f32.gmra.mxu3 %vm349_vm0, %v7323_v54 }
 0x142   : > { %6119 = vmatmul.msk.f32.gmra.mxu0 %vm349_vm0, %v10305_v27 }
 0x143   : > { %6151 = vmatmul.msk.f32.gmra.mxu1 %vm349_vm0, %v7347_v62 }
 0x144   : > { %v1028_v47 = vpop.f32.mrf.mxu3 }
 0x145   : > { %6183 = vmatmul.msk.f32.gmra.mxu2 %vm349_vm0, %v7378_v11  ;;  %v7783_v25 = vadd.f32 %v1028_v47, %v7618_v37 }
 0x147   : > { %v7785_v56 = vpop.f32.mrf.mxu0 }
 0x148   : > { %v7787_v24 = vpop.f32.mrf.mxu2  ;;  %v7789_v49 = vpop.f32.mrf.mxu1 }
 0x149   : > { %6087 = vmatmul.msk.f32.gmra.mxu3 %vm349_vm0, %v7344_v61 }
 0x14a   : > { %6120 = vmatmul.msk.f32.gmra.mxu0 %vm349_vm0, %v10306_v31 }
 0x14b   : > { %6152 = vmatmul.msk.f32.gmra.mxu1 %vm349_vm0, %v7364_v6 }
 0x14c   : > { %v1031_v54 = vpop.f32.mrf.mxu3 }
 0x14d   : > { %6184 = vmatmul.msk.f32.gmra.mxu2 %vm349_vm0, %v7395_v19  ;;  %v7801_v62 = vadd.f32 %v1031_v54, %v7642_v23 }
 0x14f   : > { %v7803_v37 = vpop.f32.mrf.mxu0 }
 0x150   : > { %v7805_v27 = vpop.f32.mrf.mxu2  ;;  %v7807_v47 = vpop.f32.mrf.mxu1 }
 0x151   : > { %6088 = vmatmul.msk.f32.gmra.mxu3 %vm349_vm0, %v7361_v5  ;;  %v10308_v5 = vmax.f32 %v7307_v48, 0.0  ;;  %v2721_v48 = vld [vmem:[#allocation7 + $0x110] sm:$0xff] }
 0x152   : > { %6121 = vmatmul.msk.f32.gmra.mxu0 %vm349_vm0, %v10307_v35 }
 0x153   : > { %6153 = vmatmul.msk.f32.gmra.mxu1 %vm349_vm0, %v7381_v12  ;;  %2832 = vmatpush.msra.mxu0 %v2721_v48 }
 0x154   : > { %v1034_v61 = vpop.f32.mrf.mxu3 }
 0x155   : > { %6185 = vmatmul.msk.f32.gmra.mxu2 %vm349_vm0, %v7412_v51  ;;  %v7819_v23 = vadd.f32 %v1034_v61, %v7663_v34 }
 0x157   : > { %v7821_v6 = vpop.f32.mrf.mxu0 }
 0x158   : > { %v7823_v31 = vpop.f32.mrf.mxu2  ;;  %v7825_v54 = vpop.f32.mrf.mxu1 }
 0x159   : > { %6089 = vmatmul.msk.f32.gmra.mxu3 %vm349_vm0, %v7378_v11 }
 0x15a   : > { %6122 = vmatmul.msk.f32.gmra.mxu0 %vm349_vm0, %v10308_v5 }
 0x15b   : > { %6154 = vmatmul.msk.f32.gmra.mxu1 %vm349_vm0, %v7398_v20  ;;  %v10309_v20 = vmax.f32 %v7336_v57, 0.0  ;;  %v10310_v57 = vmax.f32 %v7353_v1, 0.0  ;;  %v10311_v1 = vmax.f32 %v7370_v7, 0.0  ;;  %v10312_v7 = vmax.f32 %v7387_v13, 0.0 }
 0x15c   : > { %v1037_v12 = vpop.f32.mrf.mxu3  ;;  %v10314_v13 = vmax.f32 %v7404_v21, 0.0 }
 0x15d   : > { %6186 = vmatmul.msk.f32.gmra.mxu2 %vm349_vm0, %v7429_v4  ;;  %v7837_v34 = vadd.f32 %v1037_v12, %v7684_v42 }
 0x15f   : > { %v7839_v35 = vpop.f32.mrf.mxu0 }
 0x160   : > { %v7841_v61 = vpop.f32.mrf.mxu2  ;;  %v7843_v11 = vpop.f32.mrf.mxu1 }
 0x161   : > { %6090 = vmatmul.msk.f32.gmra.mxu3 %vm349_vm0, %v7395_v19 }
 0x162   : > { %6123 = vmatmul.msk.f32.gmra.mxu0 %vm349_vm0, %v10309_v20 }
 0x163   : > { %6155 = vmatmul.msk.f32.gmra.mxu1 %vm349_vm0, %v7415_v53 }
 0x164   : > { %v1040_v42 = vpop.f32.mrf.mxu3 }
 0x165   : > { %6187 = vmatmul.msk.f32.gmra.mxu2 %vm349_vm0, %v7446_v46  ;;  %v7855_v39 = vadd.f32 %v1040_v42, %v7705_v52 }
 0x167   : > { %v7857_v5 = vpop.f32.mrf.mxu0 }
 0x168   : > { %v7859_v12 = vpop.f32.mrf.mxu2  ;;  %v7861_v19 = vpop.f32.mrf.mxu1 }
 0x169   : > { %6091 = vmatmul.msk.f32.gmra.mxu3 %vm349_vm0, %v7412_v51 }
 0x16a   : > { %6124 = vmatmul.msk.f32.gmra.mxu0 %vm349_vm0, %v10310_v57 }
 0x16b   : > { %6156 = vmatmul.msk.f32.gmra.mxu1 %vm349_vm0, %v7432_v9 }
 0x16c   : > { %v1043_v53 = vpop.f32.mrf.mxu3 }
 0x16d   : > { %6188 = vmatmul.msk.f32.gmra.mxu2 %vm349_vm0, %v7463_v41  ;;  %v7873_v52 = vadd.f32 %v1043_v53, %v7726_v28 }
 0x16f   : > { %v7875_v48 = vpop.f32.mrf.mxu0 }
 0x170   : > { %v7877_v20 = vpop.f32.mrf.mxu2  ;;  %v7879_v42 = vpop.f32.mrf.mxu1 }
 0x171   : > { %6092 = vmatmul.msk.f32.gmra.mxu3 %vm349_vm0, %v7429_v4 }
 0x172   : > { %6125 = vmatmul.msk.f32.gmra.mxu0 %vm349_vm0, %v10311_v1 }
 0x173   : > { %6157 = vmatmul.msk.f32.gmra.mxu1 %vm349_vm0, %v7449_v63 }
 0x174   : > { %v1046_v51 = vpop.f32.mrf.mxu3 }
 0x175   : > { %6189 = vmatmul.msk.f32.gmra.mxu2 %vm349_vm0, %v7480_v30  ;;  %v7891_v9 = vadd.f32 %v1046_v51, %v7745_v22 }
 0x177   : > { %v7893_v28 = vpop.f32.mrf.mxu0 }
 0x178   : > { %v7895_v57 = vpop.f32.mrf.mxu2  ;;  %v7897_v53 = vpop.f32.mrf.mxu1 }
 0x179   : > { %6093 = vmatmul.msk.f32.gmra.mxu3 %vm349_vm0, %v7446_v46 }
 0x17a   : > { %6126 = vmatmul.msk.f32.gmra.mxu0 %vm349_vm0, %v10312_v7 }
 0x17b   : > { %6158 = vmatmul.msk.f32.gmra.mxu1 %vm349_vm0, %v7466_v45 }
 0x17c   : > { %v1271_v4 = vpop.f32.mrf.mxu3 }
 0x17d   : > { %6190 = vmatmul.msk.f32.gmra.mxu2 %vm349_vm0, %v7497_v55  ;;  %v7909_v63 = vadd.f32 %v1271_v4, %v7765_v60 }
 0x17f   : > { %10313 = vst [vmem:[#allocation76_spill] sm:$0xff] %v7909_v63  ;;  %v7911_v22 = vpop.f32.mrf.mxu0 }
 0x180   : > { %v7913_v1 = vpop.f32.mrf.mxu2  ;;  %v7915_v51 = vpop.f32.mrf.mxu1 }
 0x181   : > { %6094 = vmatmul.msk.f32.gmra.mxu3 %vm349_vm0, %v7463_v41  ;;  %v10316_v41 = vmax.f32 %v7421_v59, 0.0 }
 0x182   : > { %6127 = vmatmul.msk.f32.gmra.mxu0 %vm349_vm0, %v10314_v13 }
 0x183   : > { %6159 = vmatmul.msk.f32.gmra.mxu1 %vm349_vm0, %v7483_v44 }
 0x184   : > { %v1274_v46 = vpop.f32.mrf.mxu3 }
 0x185   : > { %6191 = vmatmul.msk.f32.gmra.mxu2 %vm349_vm0, %v7514_v38  ;;  %v7927_v45 = vadd.f32 %v1274_v46, %v7783_v25 }
 0x187   : > { %10315 = vst [vmem:[#allocation77_spill] sm:$0xff] %v7927_v45  ;;  %v7929_v60 = vpop.f32.mrf.mxu0 }
 0x188   : > { %v7931_v7 = vpop.f32.mrf.mxu2  ;;  %v7933_v4 = vpop.f32.mrf.mxu1 }
 0x189   : > { %6095 = vmatmul.msk.f32.gmra.mxu3 %vm349_vm0, %v7480_v30  ;;  %v10318_v30 = vmax.f32 %v7438_v10, 0.0  ;;  %v10320_v10 = vmax.f32 %v7455_v0, 0.0 }
 0x18a   : > { %6128 = vmatmul.msk.f32.gmra.mxu0 %vm349_vm0, %v10316_v41 }
 0x18b   : > { %6160 = vmatmul.msk.f32.gmra.mxu1 %vm349_vm0, %v7500_v17 }
 0x18c   : > { %v1277_v21 = vpop.f32.mrf.mxu3 }
 0x18d   : > { %6192 = vmatmul.msk.f32.gmra.mxu2 %vm349_vm0, %v7531_v58  ;;  %v7945_v44 = vadd.f32 %v1277_v21, %v7801_v62 }
 0x18f   : > { %10317 = vst [vmem:[#allocation78_spill] sm:$0xff] %v7945_v44  ;;  %v7947_v25 = vpop.f32.mrf.mxu0 }
 0x190   : > { %v7949_v13 = vpop.f32.mrf.mxu2  ;;  %v7951_v46 = vpop.f32.mrf.mxu1 }
 0x191   : > { %6096 = vmatmul.msk.f32.gmra.mxu3 %vm349_vm0, %v7497_v55  ;;  %v2442_v55 = vld [vmem:[#allocation7 + $0xe8] sm:$0xff] }
 0x192   : > { %6129 = vmatmul.msk.f32.gmra.mxu0 %vm349_vm0, %v10318_v30  ;;  %2555 = vmatpush.msra.mxu3 %v2442_v55  ;;  %v3104_v30 = vld [vmem:[#allocation9 + $0x38] sm:$0xff] }
 0x193   : > { %6161 = vmatmul.msk.f32.gmra.mxu1 %vm349_vm0, %v7517_v8  ;;  %3459 = vmatpush.msra.mxu2 %v3104_v30  ;;  %v3145_v55 = vld [vmem:[#allocation9 + $0x78] sm:$0xff] }
 0x194   : > { %v1280_v59 = vpop.f32.mrf.mxu3  ;;  %3250 = vmatpush.msra.mxu1 %v3145_v55  ;;  %v10332_v55 = vld [vmem:[#allocation46_spill] sm:$0xff] }
 0x195   : > { %6193 = vmatmul.msk.f32.gmra.mxu2 %vm349_vm0, %v7552_v36  ;;  %v7963_v17 = vadd.f32 %v1280_v59, %v7819_v23 }
 0x197   : > { %10319 = vst [vmem:[#allocation79_spill] sm:$0xff] %v7963_v17  ;;  %v7965_v62 = vpop.f32.mrf.mxu0  ;;  %v10338_v17 = vld [vmem:[#allocation52_spill] sm:$0xff] }
 0x198   : > { %v7967_v41 = vpop.f32.mrf.mxu2  ;;  %v7969_v21 = vpop.f32.mrf.mxu1 }
 0x199   : > { %6097 = vmatmul.msk.f32.gmra.mxu3 %vm349_vm0, %v7514_v38 }
 0x19a   : > { %6130 = vmatmul.msk.f32.gmra.mxu0 %vm349_vm0, %v10320_v10  ;;  %v10325_v10 = vmax.f32 %v7472_v3, 0.0  ;;  %v10331_v3 = vld [vmem:[#allocation35_spill] sm:$0xff] }
 0x19b   : > { %6162 = vmatmul.msk.f32.gmra.mxu1 %vm349_vm0, %v7534_v14  ;;  %v2720_v14 = vld [vmem:[#allocation7 + $0x108] sm:$0xff] }
 0x19c   : > { %v1283_v8 = vpop.f32.mrf.mxu3  ;;  %2833 = vmatpush.msra.mxu0 %v2720_v14 }
 0x19d   : > { %6194 = vmatmul.msk.f32.gmra.mxu2 %vm349_vm0, %v7577_v33  ;;  %v7981_v23 = vadd.f32 %v1283_v8, %v7837_v34 }
 0x19f   : > { %10321 = vst [vmem:[#allocation80_spill] sm:$0xff] %v7981_v23  ;;  %v7983_v59 = vpop.f32.mrf.mxu0 }
 0x1a0   : > { %10322 = vst [vmem:[#allocation81_spill] sm:$0xff] %v7983_v59  ;;  %v7985_v38 = vpop.f32.mrf.mxu2  ;;  %v7987_v0 = vpop.f32.mrf.mxu1  ;;  %v10349_v59 = vld [vmem:[#allocation29_spill] sm:$0xff] }
 0x1a1   : > { %10323 = vst [vmem:[#allocation82_spill] sm:$0xff] %v7985_v38  ;;  %6098 = vmatmul.msk.f32.gmra.mxu3 %vm349_vm0, %v7531_v58 }
 0x1a2   : > { %10324 = vst [vmem:[#allocation83_spill] sm:$0xff] %v7987_v0  ;;  %6131 = vmatmul.msk.f32.gmra.mxu0 %vm349_vm0, %v10325_v10 }
 0x1a3   : > { %6163 = vmatmul.msk.f32.gmra.mxu1 %vm349_vm0, %v7555_v32  ;;  %v10330_v32 = vmax.f32 %v7489_v26, 0.0  ;;  %v10335_v26 = vld [vmem:[#allocation25_spill] sm:$0xff] }
 0x1a4   : > { %v1286_v34 = vpop.f32.mrf.mxu3 }
 0x1a5   : > { %6195 = vmatmul.msk.f32.gmra.mxu2 %vm349_vm0, %v7605_v29  ;;  %v7999_v8 = vadd.f32 %v1286_v34, %v7855_v39 }
 0x1a7   : > { %10326 = vst [vmem:[#allocation84_spill] sm:$0xff] %v7999_v8  ;;  %v8001_v30 = vpop.f32.mrf.mxu0 }
 0x1a8   : > { %10327 = vst [vmem:[#allocation85_spill] sm:$0xff] %v8001_v30  ;;  %v8003_v58 = vpop.f32.mrf.mxu2  ;;  %v8005_v23 = vpop.f32.mrf.mxu1  ;;  %v10348_v30 = vld [vmem:[#allocation33_spill] sm:$0xff] }
 0x1a9   : > { %10328 = vst [vmem:[#allocation86_spill] sm:$0xff] %v8003_v58  ;;  %6099 = vmatmul.msk.f32.gmra.mxu3 %vm349_vm0, %v7552_v36  ;;  %v10336_v36 = vmax.f32 %v10335_v26, 0.0 }
 0x1aa   : > { %10329 = vst [vmem:[#allocation87_spill] sm:$0xff] %v8005_v23  ;;  %6132 = vmatmul.msk.f32.gmra.mxu0 %vm349_vm0, %v10330_v32  ;;  %v10337_v32 = vld [vmem:[#allocation41_spill] sm:$0xff] }
 0x1ab   : > { %6164 = vmatmul.msk.f32.gmra.mxu1 %vm349_vm0, %v10331_v3 }
 0x1ac   : > { %v1289_v14 = vpop.f32.mrf.mxu3 }
 0x1ad   : > { %6196 = vmatmul.msk.f32.gmra.mxu2 %vm349_vm0, %v10332_v55  ;;  %v8017_v39 = vadd.f32 %v1289_v14, %v7873_v52  ;;  %v10340_v14 = vld [vmem:[#allocation27_spill] sm:$0xff] }
 0x1af   : > { %10333 = vst [vmem:[#allocation35_spill] sm:$0xff] %v8017_v39  ;;  %v1723_v10 = vpop.f32.mrf.mxu0  ;;  %v10341_v39 = vld [vmem:[#allocation28_spill] sm:$0xff] }
 0x1b0   : > { %v8019_v34 = vpop.f32.mrf.mxu2  ;;  %v2001_v8 = vpop.f32.mrf.mxu1  ;;  %v954_v44 = vadd.f32 %v10341_v39, %v10340_v14  ;;  %v3103_v14 = vld [vmem:[#allocation9 + $0x30] sm:$0xff] }
 0x1b1   : > { %10334 = vst [vmem:[#allocation46_spill] sm:$0xff] %v8019_v34  ;;  %6100 = vmatmul.msk.f32.gmra.mxu3 %vm349_vm0, %v7577_v33  ;;  %v10342_v33 = vld [vmem:[#allocation26_spill] sm:$0xff]  ;;  %v10345_v34 = vld [vmem:[#allocation31_spill] sm:$0xff]  ;;  %3460 = vmatpush.msra.mxu2 %v3103_v14 }
 0x1b2   : > { %6133 = vmatmul.msk.f32.gmra.mxu0 %vm349_vm0, %v10336_v36  ;;  %v10343_v26 = vmax.f32 %v10342_v33, 0.0  ;;  %v1295_v23 = vadd.f32 %v10345_v34, %v954_v44  ;;  %v10350_v44 = vmax.f32 %v10349_v59, 0.0  ;;  %v10351_v34 = vld [vmem:[#allocation54_spill] sm:$0xff] }
 0x1b3   : > { %6165 = vmatmul.msk.f32.gmra.mxu1 %vm349_vm0, %v10337_v32  ;;  %v10344_v32 = vld [vmem:[#allocation48_spill] sm:$0xff] }
 0x1b4   : > { %v1292_v3 = vpop.f32.mrf.mxu3 }
 0x1b5   : > { %6197 = vmatmul.msk.f32.gmra.mxu2 %vm349_vm0, %v10338_v17  ;;  %v8031_v52 = vadd.f32 %v1292_v3, %v7891_v9  ;;  %v10346_v3 = vld [vmem:[#allocation58_spill] sm:$0xff] }
 0x1b7   : > { %10339 = vst [vmem:[#allocation25_spill] sm:$0xff] %v8031_v52  ;;  %v1726_v45 = vpop.f32.mrf.mxu0  ;;  %v10347_v52 = vld [vmem:[#allocation32_spill] sm:$0xff] }
 0x1b8   : > { %v2280_v63 = vpop.f32.mrf.mxu2  ;;  %v2004_v36 = vpop.f32.mrf.mxu1 }
 0x1b9   : > { %6101 = vmatmul.msk.f32.gmra.mxu3 %vm349_vm0, %v7605_v29  ;;  %v957_v29 = vadd.f32 %v10348_v30, %v10347_v52 }
 0x1ba   : > { %6134 = vmatmul.msk.f32.gmra.mxu0 %vm349_vm0, %v10343_v26 }
 0x1bb   : > { %6166 = vmatmul.msk.f32.gmra.mxu1 %vm349_vm0, %v10344_v32  ;;  %v3144_v32 = vld [vmem:[#allocation9 + $0x70] sm:$0xff] }
 0x1bc   : > { %v1477_v9 = vpop.f32.mrf.mxu3  ;;  %3251 = vmatpush.msra.mxu1 %v3144_v32  ;;  %v10358_v32 = vld [vmem:[#allocation45_spill] sm:$0xff] }
 0x1bd   : > { %6198 = vmatmul.msk.f32.gmra.mxu2 %vm349_vm0, %v10346_v3  ;;  %v1573_v39 = vadd.f32 %v1477_v9, %v1295_v23  ;;  %v10352_v23 = vld [vmem:[#allocation37_spill] sm:$0xff] }
 0x1be   : > { %v1296_v9 = vadd.f32 %v10352_v23, %v957_v29  ;;  %v10355_v29 = vld [vmem:[#allocation30_spill] sm:$0xff] }
 0x1bf   : > { %v1819_v58 = vadd.f32 %v1723_v10, %v1573_v39  ;;  %v1729_v33 = vpop.f32.mrf.mxu0  ;;  %v10354_v10 = vld [vmem:[#allocation40_spill] sm:$0xff] }
 0x1c0   : > { %v2283_v0 = vpop.f32.mrf.mxu2 }
 0x1c1   : > { %v2097_v26 = vadd.f32 %v2001_v8, %v1819_v58  ;;  %6102 = vmatmul.msk.f32.gmra.mxu3 %vm349_vm0, %v10332_v55  ;;  %v2007_v8 = vpop.f32.mrf.mxu1  ;;  %v10353_v55 = vld [vmem:[#allocation39_spill] sm:$0xff] }
 0x1c2   : > { %6135 = vmatmul.msk.f32.gmra.mxu0 %vm349_vm0, %v10350_v44  ;;  %v960_v52 = vadd.f32 %v10354_v10, %v10353_v55 }
 0x1c3   : > { %6167 = vmatmul.msk.f32.gmra.mxu1 %vm349_vm0, %v10351_v34  ;;  %v8055_v14 = vadd.f32 %v2280_v63, %v2097_v26  ;;  %v10356_v63 = vmax.f32 %v10355_v29, 0.0  ;;  %v10357_v26 = vld [vmem:[#allocation60_spill] sm:$0xff] }
 0x1c4   : > { %v1480_v30 = vpop.f32.mrf.mxu3  ;;  %v1297_v34 = vadd.f32 %v10358_v32, %v960_v52  ;;  %v10362_v52 = vld [vmem:[#allocation36_spill] sm:$0xff] }
 0x1c5   : > { %6199 = vmatmul.msk.f32.gmra.mxu2 %vm349_vm0, %v7694_v50  ;;  %v1574_v58 = vadd.f32 %v1480_v30, %v1296_v9  ;;  %v10360_v30 = vld [vmem:[#allocation44_spill] sm:$0xff] }
 0x1c7   : > { %v1820_v59 = vadd.f32 %v1726_v45, %v1574_v58  ;;  %v1732_v39 = vpop.f32.mrf.mxu0  ;;  %v10361_v58 = vld [vmem:[#allocation47_spill] sm:$0xff] }
 0x1c8   : > { %v2286_v44 = vpop.f32.mrf.mxu2 }
 0x1c9   : > { %v2098_v38 = vadd.f32 %v2004_v36, %v1820_v59  ;;  %6103 = vmatmul.msk.f32.gmra.mxu3 %vm349_vm0, %v10338_v17  ;;  %v2010_v36 = vpop.f32.mrf.mxu1  ;;  %v963_v17 = vadd.f32 %v10361_v58, %v10360_v30 }
 0x1ca   : > { %6136 = vmatmul.msk.f32.gmra.mxu0 %vm349_vm0, %v10356_v63  ;;  %v2150_v63 = vld [vmem:[#allocation2 + $0x120] sm:$0xff] }
 0x1cb   : > { %6168 = vmatmul.msk.f32.gmra.mxu1 %vm349_vm0, %v10357_v26  ;;  %v8069_v23 = vadd.f32 %v2283_v0, %v2098_v38  ;;  %v10363_v38 = vmax.f32 %v10362_v52, 0.0  ;;  %v10364_v0 = vld [vmem:[#allocation65_spill] sm:$0xff]  ;;  %v10365_v26 = vld [vmem:[#allocation51_spill] sm:$0xff] }
 0x1cc   : > { %v1483_v9 = vpop.f32.mrf.mxu3  ;;  %v1298_v32 = vadd.f32 %v10365_v26, %v963_v17 }
 0x1cd   : > { %10359 = vst [vmem:[#allocation41_spill] sm:$0xff] %v8069_v23  ;;  %6200 = vmatmul.msk.f32.gmra.mxu2 %vm349_vm0, %v7715_v18  ;;  %v1575_v45 = vadd.f32 %v1483_v9, %v1297_v34  ;;  %v10368_v23 = vld [vmem:[#allocation42_spill] sm:$0xff] }
 0x1ce   : > { %v10369_v17 = vmax.f32 %v10368_v23, 0.0 }
 0x1cf   : > { %v1821_v55 = vadd.f32 %v1729_v33, %v1575_v45  ;;  %v1735_v10 = vpop.f32.mrf.mxu0  ;;  %v10367_v45 = vld [vmem:[#allocation53_spill] sm:$0xff] }
 0x1d0   : > { %v2289_v59 = vpop.f32.mrf.mxu2 }
 0x1d1   : > { %v2099_v29 = vadd.f32 %v2007_v8, %v1821_v55  ;;  %6104 = vmatmul.msk.f32.gmra.mxu3 %vm349_vm0, %v10346_v3  ;;  %v10366_v8 = vld [vmem:[#allocation50_spill] sm:$0xff]  ;;  %v2013_v55 = vpop.f32.mrf.mxu1 }
 0x1d2   : > { %6137 = vmatmul.msk.f32.gmra.mxu0 %vm349_vm0, %v10363_v38  ;;  %v966_v30 = vadd.f32 %v10367_v45, %v10366_v8  ;;  %v2151_v38 = vld [vmem:[#allocation2 + $0x128] sm:$0xff] }
 0x1d3   : > { %6169 = vmatmul.msk.f32.gmra.mxu1 %vm349_vm0, %v10364_v0  ;;  %v8083_v34 = vadd.f32 %v2286_v44, %v2099_v29  ;;  %v2441_v0 = vld [vmem:[#allocation7 + $0xe0] sm:$0xff] }
 0x1d4   : > { %v1486_v9 = vpop.f32.mrf.mxu3  ;;  %v10370_v29 = vld [vmem:[#allocation57_spill] sm:$0xff]  ;;  %2556 = vmatpush.msra.mxu3 %v2441_v0 }
 0x1d5   : > { %6201 = vmatmul.msk.f32.gmra.mxu2 %vm349_vm0, %v2150_v63  ;;  %v1576_v33 = vadd.f32 %v1486_v9, %v1298_v32  ;;  %v1299_v26 = vadd.f32 %v10370_v29, %v966_v30  ;;  %v10372_v9 = vld [vmem:[#allocation56_spill] sm:$0xff]  ;;  %v2719_v30 = vld [vmem:[#allocation7 + $0x100] sm:$0xff]  ;;  %v10376_v29 = vld [vmem:[#allocation34_spill] sm:$0xff] }
 0x1d6   : > { %2834 = vmatpush.msra.mxu0 %v2719_v30 }
 0x1d7   : > { %v1822_v3 = vadd.f32 %v1732_v39, %v1576_v33  ;;  %v1738_v58 = vpop.f32.mrf.mxu0  ;;  %v10373_v33 = vld [vmem:[#allocation59_spill] sm:$0xff] }
 0x1d8   : > { %v2292_v44 = vpop.f32.mrf.mxu2  ;;  %v969_v23 = vadd.f32 %v10373_v33, %v10372_v9  ;;  %v10379_v9 = vld [vmem:[#allocation64_spill] sm:$0xff] }
 0x1d9   : > { %v2100_v52 = vadd.f32 %v2010_v36, %v1822_v3  ;;  %6105 = vmatmul.msk.f32.gmra.mxu3 %vm349_vm0, %v7694_v50  ;;  %v3102_v50 = vld [vmem:[#allocation9 + $0x28] sm:$0xff] }
 0x1da   : > { %6138 = vmatmul.msk.f32.gmra.mxu0 %vm349_vm0, %v10369_v17  ;;  %3461 = vmatpush.msra.mxu2 %v3102_v50  ;;  %v2016_v17 = vpop.f32.mrf.mxu1 }
 0x1db   : > { %6170 = vmatmul.msk.f32.gmra.mxu1 %vm349_vm0, %v7721_v16  ;;  %v8096_v32 = vadd.f32 %v2289_v59, %v2100_v52  ;;  %v2152_v16 = vld [vmem:[#allocation2 + $0x138] sm:$0xff]  ;;  %v3143_v59 = vld [vmem:[#allocation9 + $0x68] sm:$0xff]  ;;  %v10374_v52 = vld [vmem:[#allocation17_spill] sm:$0xff] }
 0x1dc   : > { %v1489_v39 = vpop.f32.mrf.mxu3  ;;  %v10375_v0 = vmax.f32 %v10374_v52, 0.0  ;;  %3252 = vmatpush.msra.mxu1 %v3143_v59 }
 0x1dd   : > { %10371 = vst [vmem:[#allocation52_spill] sm:$0xff] %v8096_v32  ;;  %6202 = vmatmul.msk.f32.gmra.mxu2 %vm349_vm0, %v2151_v38  ;;  %v1577_v36 = vadd.f32 %v1489_v39, %v1299_v26  ;;  %v10377_v26 = vld [vmem:[#allocation63_spill] sm:$0xff]  ;;  %v10380_v32 = vld [vmem:[#allocation18_spill] sm:$0xff] }
 0x1de   : > { %v1300_v39 = vadd.f32 %v10377_v26, %v969_v23  ;;  %v10381_v23 = vmax.f32 %v10380_v32, 0.0 }
 0x1df   : > { %v1823_v8 = vadd.f32 %v1735_v10, %v1577_v36  ;;  %v1741_v45 = vpop.f32.mrf.mxu0  ;;  %v10378_v36 = vld [vmem:[#allocation62_spill] sm:$0xff] }
 0x1e0   : > { %v972_v33 = vadd.f32 %v10379_v9, %v10378_v36 }
 0x1e1   : > { %v2101_v3 = vadd.f32 %v2013_v55, %v1823_v8  ;;  %6106 = vmatmul.msk.f32.gmra.mxu3 %vm349_vm0, %v7715_v18  ;;  %v2295_v55 = vpop.f32.mrf.mxu2 }
 0x1e2   : > { %6139 = vmatmul.msk.f32.gmra.mxu0 %vm349_vm0, %v10375_v0 }
 0x1e3   : > { %6171 = vmatmul.msk.f32.gmra.mxu1 %vm349_vm0, %v10376_v29  ;;  %v8109_v50 = vadd.f32 %v2292_v44, %v2101_v3  ;;  %v2153_v29 = vld [vmem:[#allocation2 + $0x140] sm:$0xff]  ;;  %v10382_v44 = vld [vmem:[#allocation38_spill] sm:$0xff]  ;;  %v10383_v3 = vld [vmem:[#allocation68_spill] sm:$0xff] }
 0x1e4   : > { %v1492_v10 = vpop.f32.mrf.mxu3  ;;  %v1301_v30 = vadd.f32 %v10383_v3, %v972_v33 }
 0x1e5   : > { %6203 = vmatmul.msk.f32.gmra.mxu2 %vm349_vm0, %v2152_v16  ;;  %v1578_v18 = vadd.f32 %v1492_v10, %v1300_v39  ;;  %v2019_v39 = vpop.f32.mrf.mxu1  ;;  %v10385_v10 = vld [vmem:[#allocation69_spill] sm:$0xff] }
 0x1e7   : > { %v1824_v8 = vadd.f32 %v1738_v58, %v1578_v18  ;;  %v1744_v52 = vpop.f32.mrf.mxu0 }
 0x1e9   : > { %v2102_v0 = vadd.f32 %v2016_v17, %v1824_v8  ;;  %6107 = vmatmul.msk.f32.gmra.mxu3 %vm349_vm0, %v2150_v63  ;;  %v2298_v17 = vpop.f32.mrf.mxu2  ;;  %v10384_v63 = vld [vmem:[#allocation67_spill] sm:$0xff] }
 0x1ea   : > { %6140 = vmatmul.msk.f32.gmra.mxu0 %vm349_vm0, %v10381_v23  ;;  %v975_v18 = vadd.f32 %v10385_v10, %v10384_v63  ;;  %v2154_v8 = vld [vmem:[#allocation2 + $0x150] sm:$0xff]  ;;  %v10391_v63 = vld [vmem:[#allocation73_spill] sm:$0xff] }
 0x1eb   : > { %6172 = vmatmul.msk.f32.gmra.mxu1 %vm349_vm0, %v10382_v44  ;;  %v8121_v59 = vadd.f32 %v2295_v55, %v2102_v0  ;;  %v10386_v23 = vld [vmem:[#allocation19_spill] sm:$0xff]  ;;  %v10389_v0 = vld [vmem:[#allocation72_spill] sm:$0xff] }
 0x1ec   : > { %v1495_v26 = vpop.f32.mrf.mxu3  ;;  %v10387_v33 = vmax.f32 %v10386_v23, 0.0  ;;  %v10388_v55 = vld [vmem:[#allocation43_spill] sm:$0xff]  ;;  %v1302_v44 = vadd.f32 %v10389_v0, %v975_v18  ;;  %v10394_v0 = vld [vmem:[#allocation49_spill] sm:$0xff] }
 0x1ed   : > { %6204 = vmatmul.msk.f32.gmra.mxu2 %vm349_vm0, %v2153_v29  ;;  %v1579_v58 = vadd.f32 %v1495_v26, %v1301_v30 }
 0x1ef   : > { %v1825_v32 = vadd.f32 %v1741_v45, %v1579_v58  ;;  %v1747_v36 = vpop.f32.mrf.mxu0  ;;  %v8137_v45 = vld [vmem:[%s7074_s23 + $0xf0] sm:$0xff] }
 0x1f0   : > { %v10390_v58 = vld [vmem:[#allocation71_spill] sm:$0xff] }
 0x1f1   : > { %v2103_v9 = vadd.f32 %v2019_v39, %v1825_v32  ;;  %6108 = vmatmul.msk.f32.gmra.mxu3 %vm349_vm0, %v2151_v38  ;;  %v523_v38 = vmax.f32 %v8137_v45, 0.0  ;;  %v2022_v39 = vpop.f32.mrf.mxu1  ;;  %v978_v10 = vadd.f32 %v10391_v63, %v10390_v58  ;;  %v3101_v58 = vld [vmem:[#allocation9 + $0x20] sm:$0xff]  ;;  %v10395_v63 = vld [vmem:[#allocation74_spill] sm:$0xff] }
 0x1f2   : > { %6141 = vmatmul.msk.f32.gmra.mxu0 %vm349_vm0, %v10387_v33  ;;  %v10392_v33 = vld [vmem:[#allocation20_spill] sm:$0xff]  ;;  %3462 = vmatpush.msra.mxu2 %v3101_v58  ;;  %v984_v58 = vadd.f32 %v7771_v2, %v7767_v43  ;;  %v987_v2 = vadd.f32 %v7789_v49, %v7785_v56  ;;  %v990_v56 = vadd.f32 %v7807_v47, %v7803_v37  ;;  %v2161_v45 = vld [vmem:[#allocation2 + $0x1a0] sm:$0xff] }
 0x1f3   : > { %6173 = vmatmul.msk.f32.gmra.mxu1 %vm349_vm0, %v10388_v55  ;;  %v8133_v3 = vadd.f32 %v2298_v17, %v2103_v9  ;;  %556 = vst.msk [vmem:[#allocation2 + $0x181] sm:$0xff] %vm349_vm0, %v523_v38  ;;  %v2301_v17 = vpop.f32.mrf.mxu2  ;;  %v2155_v9 = vld [vmem:[#allocation2 + $0x158] sm:$0xff]  ;;  %v10393_v55 = vmax.f32 %v10392_v33, 0.0  ;;  %v993_v47 = vadd.f32 %v7825_v54, %v7821_v6 }
 0x1f4   : > { %v1498_v30 = vpop.f32.mrf.mxu3  ;;  %v3100_v37 = vld [vmem:[#allocation9 + $0x18] sm:$0xff] }
 0x1f5   : > { %6205 = vmatmul.msk.f32.gmra.mxu2 %vm349_vm0, %v2154_v8  ;;  %v1580_v26 = vadd.f32 %v1498_v30, %v1302_v44  ;;  %v1303_v44 = vadd.f32 %v7751_v40, %v978_v10  ;;  %v2156_v40 = vld [vmem:[#allocation2 + $0x168] sm:$0xff]  ;;  %v3142_v10 = vld [vmem:[#allocation9 + $0x60] sm:$0xff] }
 0x1f6   : > { %3253 = vmatpush.msra.mxu1 %v3142_v10  ;;  %3463 = vmatpush.msra.mxu2 %v3100_v37  ;;  %v3140_v37 = vld [vmem:[#allocation9 + $0x50] sm:$0xff] }
 0x1f7   : > { %v1826_v32 = vadd.f32 %v1744_v52, %v1580_v26  ;;  %v1750_v23 = vpop.f32.mrf.mxu0  ;;  %v8156_v26 = vld [vmem:[%s7074_s23 + $0xf8] sm:$0xff] }
 0x1f9   : > { %v2104_v18 = vadd.f32 %v2022_v39, %v1826_v32  ;;  %6109 = vmatmul.msk.f32.gmra.mxu3 %vm349_vm0, %v2152_v16  ;;  %v524_v16 = vmax.f32 %v8156_v26, 0.0  ;;  %v10396_v32 = vld [vmem:[#allocation75_spill] sm:$0xff] }
 0x1fa   : > { %6142 = vmatmul.msk.f32.gmra.mxu0 %vm349_vm0, %v10393_v55  ;;  %v981_v33 = vadd.f32 %v10396_v32, %v10395_v63  ;;  %v2157_v32 = vld [vmem:[#allocation2 + $0x170] sm:$0xff] }
 0x1fb   : > { %6174 = vmatmul.msk.f32.gmra.mxu1 %vm349_vm0, %v10394_v0  ;;  %v8152_v52 = vadd.f32 %v2301_v17, %v2104_v18  ;;  %557 = vst.msk [vmem:[#allocation2 + $0x189] sm:$0xff] %vm349_vm0, %v524_v16  ;;  %v10397_v17 = vld [vmem:[#allocation21_spill] sm:$0xff] }
 0x1fc   : > { %v1501_v30 = vpop.f32.mrf.mxu3  ;;  %v10398_v18 = vmax.f32 %v10397_v17, 0.0  ;;  %v10400_v17 = vld [vmem:[#allocation22_spill] sm:$0xff] }
 0x1fd   : > { %6206 = vmatmul.msk.f32.gmra.mxu2 %vm349_vm0, %v2155_v9  ;;  %v1581_v39 = vadd.f32 %v1501_v30, %v1303_v44  ;;  %v10399_v44 = vld [vmem:[#allocation55_spill] sm:$0xff]  ;;  %v1304_v30 = vadd.f32 %v7769_v15, %v981_v33  ;;  %v1305_v15 = vadd.f32 %v7787_v24, %v984_v58  ;;  %v1306_v24 = vadd.f32 %v7805_v27, %v987_v2 }
 0x1fe   : > { %v1307_v27 = vadd.f32 %v7823_v31, %v990_v56  ;;  %v1308_v31 = vadd.f32 %v7841_v61, %v993_v47 }
 0x1ff   : > { %v8161_v55 = vadd.f32 %v1747_v36, %v1581_v39  ;;  %v1753_v0 = vpop.f32.mrf.mxu0 }
 0x201   : > { %6110 = vmatmul.msk.f32.gmra.mxu3 %vm349_vm0, %v2153_v29 }
 0x202   : > { %6143 = vmatmul.msk.f32.gmra.mxu0 %vm349_vm0, %v10398_v18  ;;  %v10401_v18 = vmax.f32 %v10400_v17, 0.0  ;;  %v8214_v2 = vld [vmem:[#allocation2 + $0x182] sm:$0xff] }
 0x203   : > { %6175 = vmatmul.msk.f32.gmra.mxu1 %vm349_vm0, %v10399_v44  ;;  %v10402_v44 = vld [vmem:[#allocation61_spill] sm:$0xff] }
 0x204   : > { %v1504_v36 = vpop.f32.mrf.mxu3 }
 0x205   : > { %6207 = vmatmul.msk.f32.gmra.mxu2 %vm349_vm0, %v2156_v40  ;;  %v1582_v39 = vadd.f32 %v1504_v36, %v1304_v30  ;;  %v10403_v30 = vld [vmem:[#allocation23_spill] sm:$0xff] }
 0x206   : > { %v10404_v36 = vmax.f32 %v10403_v30, 0.0  ;;  %v2160_v30 = vld [vmem:[#allocation2 + $0x198] sm:$0xff] }
 0x207   : > { %v8176_v29 = vadd.f32 %v1750_v23, %v1582_v39  ;;  %v1756_v63 = vpop.f32.mrf.mxu0  ;;  %v2158_v23 = vld [vmem:[#allocation2 + $0x180] sm:$0xff]  ;;  %v10405_v39 = vld [vmem:[#allocation66_spill] sm:$0xff] }
 0x209   : > { %6111 = vmatmul.msk.f32.gmra.mxu3 %vm349_vm0, %v2154_v8 }
 0x20a   : > { %6144 = vmatmul.msk.f32.gmra.mxu0 %vm349_vm0, %v10401_v18  ;;  %v10406_v18 = vld [vmem:[#allocation24_spill] sm:$0xff] }
 0x20b   : > { %6176 = vmatmul.msk.f32.gmra.mxu1 %vm349_vm0, %v10402_v44  ;;  %v10407_v44 = vmax.f32 %v10406_v18, 0.0 }
 0x20c   : > { %v1507_v33 = vpop.f32.mrf.mxu3 }
 0x20d   : > { %6208 = vmatmul.msk.f32.gmra.mxu2 %vm349_vm0, %v2157_v32  ;;  %v1583_v10 = vadd.f32 %v1507_v33, %v1305_v15  ;;  %v10408_v15 = vld [vmem:[#allocation70_spill] sm:$0xff] }
 0x20f   : > { %v8188_v43 = vadd.f32 %v1753_v0, %v1583_v10  ;;  %v1759_v8 = vpop.f32.mrf.mxu0  ;;  %v2159_v0 = vld [vmem:[#allocation2 + $0x188] sm:$0xff] }
 0x211   : > { %6112 = vmatmul.msk.f32.gmra.mxu3 %vm349_vm0, %v2155_v9 }
 0x212   : > { %6145 = vmatmul.msk.f32.gmra.mxu0 %vm349_vm0, %v10404_v36  ;;  %v3141_v36 = vld [vmem:[#allocation9 + $0x58] sm:$0xff] }
 0x213   : > { %6177 = vmatmul.msk.f32.gmra.mxu1 %vm349_vm0, %v10405_v39 }
 0x214   : > { %v1510_v58 = vpop.f32.mrf.mxu3  ;;  %3254 = vmatpush.msra.mxu1 %v3141_v36  ;;  %v1008_v36 = vadd.f32 %v7915_v51, %v7911_v22  ;;  %v2690_v51 = vld [vmem:[#allocation2 + $0x62] sm:$0xff] }
 0x215   : > { %6209 = vmatmul.msk.f32.gmra.mxu2 %vm349_vm0, %v2158_v23  ;;  %v1584_v17 = vadd.f32 %v1510_v58, %v1306_v24  ;;  %v1882_v24 = vld [vmem:[#allocation2 + $0x18a] sm:$0xff] }
 0x216   : > { %3255 = vmatpush.msra.mxu1 %v3140_v37  ;;  %v2414_v37 = vld [vmem:[#allocation2 + $0x79] sm:$0xff] }
 0x217   : > { %v8200_v49 = vadd.f32 %v1756_v63, %v1584_v17  ;;  %v1762_v9 = vpop.f32.mrf.mxu0 }
 0x219   : > { %6113 = vmatmul.msk.f32.gmra.mxu3 %vm349_vm0, %v2156_v40 }
 0x21a   : > { %6146 = vmatmul.msk.f32.gmra.mxu0 %vm349_vm0, %v10407_v44 }
 0x21b   : > { %6178 = vmatmul.msk.f32.gmra.mxu1 %vm349_vm0, %v10408_v15 }
 0x21c   : > { %v1513_v33 = vpop.f32.mrf.mxu3 }
 0x21d   : > { %6210 = vmatmul.msk.f32.gmra.mxu2 %vm349_vm0, %v2159_v0  ;;  %v1585_v10 = vadd.f32 %v1513_v33, %v1307_v27  ;;  %v3099_v27 = vld [vmem:[#allocation9 + $0x10] sm:$0xff]  ;;  %v1005_v33 = vadd.f32 %v7897_v53, %v7893_v28 }
 0x21e   : > { %3464 = vmatpush.msra.mxu2 %v3099_v27  ;;  %v2689_v53 = vld [vmem:[#allocation2 + $0x52] sm:$0xff] }
 0x21f   : > { %v8212_v40 = vadd.f32 %v1759_v8, %v1585_v10  ;;  %v1765_v63 = vpop.f32.mrf.mxu0  ;;  %v996_v8 = vadd.f32 %v7843_v11, %v7839_v35  ;;  %v999_v35 = vadd.f32 %v7861_v19, %v7857_v5  ;;  %v2687_v5 = vld [vmem:[#allocation2 + $0x3a] sm:$0xff] }
 0x221   : > { %6114 = vmatmul.msk.f32.gmra.mxu3 %vm349_vm0, %v2157_v32  ;;  %v1309_v61 = vadd.f32 %v7859_v12, %v996_v8  ;;  %v1310_v26 = vadd.f32 %v7877_v20, %v999_v35  ;;  %v2408_v12 = vld [vmem:[#allocation2 + $0x31] sm:$0xff]  ;;  %v2409_v20 = vld [vmem:[#allocation2 + $0x39] sm:$0xff] }
 0x222   : > { %6147 = vmatmul.msk.f32.gmra.mxu0 %vm349_vm0, %v523_v38 }
 0x223   : > { %6179 = vmatmul.msk.f32.gmra.mxu1 %vm349_vm0, %v8214_v2 }
 0x224   : > { %v1516_v6 = vpop.f32.mrf.mxu3 }
 0x225   : > { %6211 = vmatmul.msk.f32.gmra.mxu2 %vm349_vm0, %v2160_v30  ;;  %v1586_v54 = vadd.f32 %v1516_v6, %v1308_v31  ;;  %v2410_v30 = vld [vmem:[#allocation2 + $0x49] sm:$0xff]  ;;  %v8260_v6 = vpop.f32.mrf.mxu1 }
 0x227   : > { %v8226_v32 = vadd.f32 %v1762_v9, %v1586_v54  ;;  %v1768_v39 = vpop.f32.mrf.mxu0  ;;  %v1002_v9 = vadd.f32 %v7879_v42, %v7875_v48  ;;  %v2688_v42 = vld [vmem:[#allocation2 + $0x4a] sm:$0xff]  ;;  %v1313_v54 = vadd.f32 %v7931_v7, %v1008_v36 }
 0x228   : > { %v10412_v36 = vld [vmem:[#allocation86_spill] sm:$0xff] }
 0x229   : > { %6115 = vmatmul.msk.f32.gmra.mxu3 %vm349_vm0, %v2158_v23  ;;  %v2686_v23 = vld [vmem:[#allocation2 + $0x32] sm:$0xff]  ;;  %v1311_v19 = vadd.f32 %v7895_v57, %v1002_v9  ;;  %v1312_v57 = vadd.f32 %v7913_v1, %v1005_v33 }
 0x22a   : > { %6148 = vmatmul.msk.f32.gmra.mxu0 %vm349_vm0, %v524_v16 }
 0x22b   : > { %6180 = vmatmul.msk.f32.gmra.mxu1 %vm349_vm0, %v1882_v24  ;;  %v1011_v24 = vadd.f32 %v7933_v4, %v7929_v60  ;;  %v1014_v60 = vadd.f32 %v7951_v46, %v7947_v25  ;;  %v1017_v25 = vadd.f32 %v7969_v21, %v7965_v62  ;;  %v10410_v62 = vld [vmem:[#allocation81_spill] sm:$0xff]  ;;  %v10411_v21 = vld [vmem:[#allocation83_spill] sm:$0xff] }
 0x22c   : > { %v1519_v38 = vpop.f32.mrf.mxu3 }
 0x22d   : > { %6212 = vmatmul.msk.f32.gmra.mxu2 %vm349_vm0, %v2161_v45  ;;  %v1587_v58 = vadd.f32 %v1519_v38, %v1309_v61  ;;  %v8269_v61 = vpop.f32.mrf.mxu2  ;;  %v8272_v38 = vpop.f32.mrf.mxu1  ;;  %v1314_v7 = vadd.f32 %v7949_v13, %v1011_v24  ;;  %v10414_v24 = vld [vmem:[#allocation87_spill] sm:$0xff] }
 0x22f   : > { %v8237_v11 = vadd.f32 %v1765_v63, %v1587_v58  ;;  %v1771_v17 = vpop.f32.mrf.mxu0 }
 0x231   : > { %6116 = vmatmul.msk.f32.gmra.mxu3 %vm349_vm0, %v2159_v0 }
 0x232   : > { %6245 = vmatmul.msk.f32.vlgmr.msra.gmra.mxu0 %vm349_vm0, %v2686_v23 }
 0x234   : > { %v1522_v16 = vpop.f32.mrf.mxu3 }
 0x235   : > { %v1588_v56 = vadd.f32 %v1522_v16, %v1310_v26  ;;  %v2691_v26 = vld [vmem:[#allocation2 + $0x6a] sm:$0xff]  ;;  %v8281_v16 = vpop.f32.mrf.mxu2 }
 0x237   : > { %v8244_v18 = vadd.f32 %v1768_v39, %v1588_v56  ;;  %v1774_v44 = vpop.f32.mrf.mxu0  ;;  %v2411_v39 = vld [vmem:[#allocation2 + $0x51] sm:$0xff]  ;;  %v1315_v56 = vadd.f32 %v7967_v41, %v1014_v60  ;;  %v10409_v41 = vld [vmem:[#allocation82_spill] sm:$0xff] }
 0x238   : > { %v1316_v27 = vadd.f32 %v10409_v41, %v1017_v25  ;;  %v3097_v41 = vld [vmem:[#allocation9] sm:$0xff] }
 0x239   : > { %6213 = vmatmul.msk.f32.vlgmr.msra.gmra.mxu3 %vm349_vm0, %v2408_v12  ;;  %v8285_v12 = vpop.f32.mrf.mxu1 }
 0x23a   : > { %6246 = vmatmul.msk.f32.gmra.mxu0 %vm349_vm0, %v2687_v5  ;;  %v2413_v5 = vld [vmem:[#allocation2 + $0x69] sm:$0xff] }
 0x23c   : > { %v1525_v0 = vpop.f32.mrf.mxu3 }
 0x23d   : > { %v1589_v15 = vadd.f32 %v1525_v0, %v1311_v19  ;;  %v2692_v0 = vld [vmem:[#allocation2 + $0x7a] sm:$0xff] }
 0x23f   : > { %v8251_v10 = vadd.f32 %v1771_v17, %v1589_v15  ;;  %v1777_v48 = vpop.f32.mrf.mxu0  ;;  %v2412_v17 = vld [vmem:[#allocation2 + $0x61] sm:$0xff] }
 0x240   : > { %v3139_v15 = vld [vmem:[#allocation9 + $0x48] sm:$0xff] }
 0x241   : > { %6214 = vmatmul.msk.f32.gmra.mxu3 %vm349_vm0, %v2409_v20  ;;  %3256 = vmatpush.msra.mxu1 %v3139_v15  ;;  %v8294_v20 = vpop.f32.mrf.mxu2 }
 0x242   : > { %6247 = vmatmul.msk.f32.gmra.mxu0 %vm349_vm0, %v2688_v42  ;;  %v8296_v42 = vpop.f32.mrf.mxu1 }
 0x244   : > { %v1528_v47 = vpop.f32.mrf.mxu3 }
 0x245   : > { %v1590_v63 = vadd.f32 %v1528_v47, %v1312_v57  ;;  %v1020_v57 = vadd.f32 %v10411_v21, %v10410_v62  ;;  %v3138_v62 = vld [vmem:[#allocation9 + $0x40] sm:$0xff] }
 0x246   : > { %3257 = vmatpush.msra.mxu1 %v3138_v62 }
 0x247   : > { %v8258_v31 = vadd.f32 %v1774_v44, %v1590_v63  ;;  %v1780_v28 = vpop.f32.mrf.mxu0  ;;  %v3098_v44 = vld [vmem:[#allocation9 + $0x8] sm:$0xff] }
 0x248   : > { %3465 = vmatpush.msra.mxu2 %v3098_v44  ;;  %v2695_v44 = vld [vmem:[#allocation2 + $0x9a] sm:$0xff] }
 0x249   : > { %6215 = vmatmul.msk.f32.gmra.mxu3 %vm349_vm0, %v2410_v30  ;;  %v2693_v30 = vld [vmem:[#allocation2 + $0x82] sm:$0xff] }
 0x24a   : > { %6248 = vmatmul.msk.f32.gmra.mxu0 %vm349_vm0, %v2689_v53  ;;  %3466 = vmatpush.msra.mxu2 %v3097_v41  ;;  %v2420_v41 = vld [vmem:[#allocation2 + $0xc1] sm:$0xff] }
 0x24c   : > { %v1531_v8 = vpop.f32.mrf.mxu3 }
 0x24d   : > { %v1591_v1 = vadd.f32 %v1531_v8, %v1313_v54  ;;  %v8305_v8 = vpop.f32.mrf.mxu2 }
 0x24f   : > { %v8267_v45 = vadd.f32 %v1777_v48, %v1591_v1  ;;  %v1783_v22 = vpop.f32.mrf.mxu0  ;;  %v2415_v1 = vld [vmem:[#allocation2 + $0x81] sm:$0xff] }
 0x251   : > { %6216 = vmatmul.msk.f32.gmra.mxu3 %vm349_vm0, %v2411_v39  ;;  %v10413_v39 = vld [vmem:[#allocation85_spill] sm:$0xff] }
 0x252   : > { %6249 = vmatmul.msk.f32.gmra.mxu0 %vm349_vm0, %v2690_v51 }
 0x254   : > { %v1534_v58 = vpop.f32.mrf.mxu3 }
 0x255   : > { %v1592_v35 = vadd.f32 %v1534_v58, %v1314_v7  ;;  %v2694_v58 = vld [vmem:[#allocation2 + $0x92] sm:$0xff] }
 0x257   : > { %v8278_v4 = vadd.f32 %v1780_v28, %v1592_v35  ;;  %v1786_v23 = vpop.f32.mrf.mxu0  ;;  %v1317_v28 = vadd.f32 %v10412_v36, %v1020_v57  ;;  %v8311_v35 = vpop.f32.mrf.mxu1 }
 0x259   : > { %6217 = vmatmul.msk.f32.gmra.mxu3 %vm349_vm0, %v2412_v17  ;;  %v10416_v17 = vld [vmem:[#allocation46_spill] sm:$0xff] }
 0x25a   : > { %6250 = vmatmul.msk.f32.gmra.mxu0 %vm349_vm0, %v2691_v26 }
 0x25c   : > { %v1537_v13 = vpop.f32.mrf.mxu3 }
 0x25d   : > { %v1593_v9 = vadd.f32 %v1537_v13, %v1315_v56  ;;  %v2416_v56 = vld [vmem:[#allocation2 + $0x91] sm:$0xff] }
 0x25f   : > { %v8289_v46 = vadd.f32 %v1783_v22, %v1593_v9  ;;  %v1789_v19 = vpop.f32.mrf.mxu0  ;;  %v1023_v22 = vadd.f32 %v10414_v24, %v10413_v39  ;;  %v8321_v25 = vpop.f32.mrf.mxu1 }
 0x261   : > { %6218 = vmatmul.msk.f32.gmra.mxu3 %vm349_vm0, %v2413_v5  ;;  %v1318_v60 = vadd.f32 %v10416_v17, %v1023_v22  ;;  %v8318_v5 = vpop.f32.mrf.mxu2  ;;  %v10422_v22 = vld [vmem:[#allocation78_spill] sm:$0xff]  ;;  %v2419_v17 = vld [vmem:[#allocation2 + $0xb1] sm:$0xff] }
 0x262   : > { %6251 = vmatmul.msk.f32.gmra.mxu0 %vm349_vm0, %v2692_v0  ;;  %v10418_v0 = vld [vmem:[#allocation76_spill] sm:$0xff] }
 0x264   : > { %v1540_v33 = vpop.f32.mrf.mxu3 }
 0x265   : > { %v1594_v48 = vadd.f32 %v1540_v33, %v1316_v27  ;;  %v2417_v27 = vld [vmem:[#allocation2 + $0x99] sm:$0xff] }
 0x267   : > { %v8300_v47 = vadd.f32 %v1786_v23, %v1594_v48  ;;  %v1792_v63 = vpop.f32.mrf.mxu0  ;;  %v8331_v57 = vpop.f32.mrf.mxu1 }
 0x269   : > { %6219 = vmatmul.msk.f32.gmra.mxu3 %vm349_vm0, %v2414_v37  ;;  %v2696_v37 = vld [vmem:[#allocation2 + $0xaa] sm:$0xff]  ;;  %v8328_v21 = vpop.f32.mrf.mxu2 }
 0x26a   : > { %6252 = vmatmul.msk.f32.gmra.mxu0 %vm349_vm0, %v2693_v30  ;;  %v10420_v30 = vld [vmem:[#allocation77_spill] sm:$0xff] }
 0x26c   : > { %v1543_v53 = vpop.f32.mrf.mxu3 }
 0x26d   : > { %v1595_v54 = vadd.f32 %v1543_v53, %v1317_v28  ;;  %v2418_v28 = vld [vmem:[#allocation2 + $0xa9] sm:$0xff] }
 0x26f   : > { %v8309_v51 = vadd.f32 %v1789_v19, %v1595_v54  ;;  %v1795_v7 = vpop.f32.mrf.mxu0 }
 0x271   : > { %10415 = vst [vmem:[#allocation27_spill] sm:$0xff] %v8309_v51  ;;  %6220 = vmatmul.msk.f32.gmra.mxu3 %vm349_vm0, %v2415_v1  ;;  %v2697_v1 = vld [vmem:[#allocation2 + $0xb2] sm:$0xff]  ;;  %v8338_v39 = vpop.f32.mrf.mxu2  ;;  %v2708_v51 = vld [vmem:[#allocation2 + $0x13a] sm:$0xff] }
 0x272   : > { %6253 = vmatmul.msk.f32.gmra.mxu0 %vm349_vm0, %v2694_v58  ;;  %v8341_v58 = vpop.f32.mrf.mxu1 }
 0x274   : > { %v1546_v23 = vpop.f32.mrf.mxu3 }
 0x275   : > { %v1596_v26 = vadd.f32 %v1546_v23, %v1318_v60 }
 0x277   : > { %v8316_v13 = vadd.f32 %v1792_v63, %v1596_v26  ;;  %v1798_v9 = vpop.f32.mrf.mxu0  ;;  %v2698_v26 = vld [vmem:[#allocation2 + $0xc2] sm:$0xff] }
 0x279   : > { %10417 = vst [vmem:[#allocation28_spill] sm:$0xff] %v8316_v13  ;;  %6221 = vmatmul.msk.f32.gmra.mxu3 %vm349_vm0, %v2416_v56  ;;  %v10424_v56 = vmov 0.0   ;;  %v2707_v13 = vld [vmem:[#allocation2 + $0x12a] sm:$0xff] }
 0x27a   : > { %6254 = vmatmul.msk.f32.gmra.mxu0 %vm349_vm0, %v2695_v44  ;;  %406 = vst.msk [vmem:[#allocation3] sm:$0xff] %vm405_vm2, %v10424_v56  ;;  %v10425_v44 = vld [vmem:[#allocation79_spill] sm:$0xff]  ;;  %v8362_v62 = vpop.f32.mrf.mxu1 }
 0x27b   : > { %407 = vst.msk [vmem:[#allocation3 + $0x8] sm:$0xff] %vm405_vm2, %v10424_v56 }
 0x27c   : > { %v1549_v19 = vpop.f32.mrf.mxu3  ;;  %410 = vst.msk [vmem:[#allocation3 + $0x18] sm:$0xff] %vm405_vm2, %v10424_v56 }
 0x27d   : > { %v1597_v15 = vadd.f32 %v1549_v19, %v10418_v0  ;;  %v3604_v0 = vld [vmem:[#allocation9 + $0xb8] sm:$0xff]  ;;  %411 = vst.msk [vmem:[#allocation3 + $0x20] sm:$0xff] %vm405_vm2, %v10424_v56 }
 0x27e   : > { %3709 = vmatpush.msrb.mxu3 %v3604_v0  ;;  %413 = vst.msk [vmem:[#allocation3 + $0x30] sm:$0xff] %vm405_vm2, %v10424_v56  ;;  %v4418_v0 = vld [vmem:[#allocation9 + $0x178] sm:$0xff] }
 0x27f   : > { %v8325_v33 = vadd.f32 %v1795_v7, %v1597_v15  ;;  %v1801_v48 = vpop.f32.mrf.mxu0  ;;  %v8354_v15 = vpop.f32.mrf.mxu2  ;;  %414 = vst.msk [vmem:[#allocation3 + $0x38] sm:$0xff] %vm405_vm2, %v10424_v56  ;;  %4523 = vmatpush.msrb.mxu2 %v4418_v0  ;;  %v2702_v0 = vld [vmem:[#allocation2 + $0xf2] sm:$0xff] }
 0x280   : > { %416 = vst.msk [vmem:[#allocation3 + $0x48] sm:$0xff] %vm405_vm2, %v10424_v56 }
 0x281   : > { %10419 = vst [vmem:[#allocation26_spill] sm:$0xff] %v8325_v33  ;;  %6222 = vmatmul.msk.f32.gmra.mxu3 %vm349_vm0, %v2417_v27 }
 0x282   : > { %6255 = vmatmul.msk.f32.gmra.mxu0 %vm349_vm0, %v2696_v37  ;;  %v2699_v37 = vld [vmem:[#allocation2 + $0xca] sm:$0xff]  ;;  %417 = vst.msk [vmem:[#allocation3 + $0x50] sm:$0xff] %vm405_vm2, %v10424_v56 }
 0x283   : > { %419 = vst.msk [vmem:[#allocation3 + $0x60] sm:$0xff] %vm405_vm2, %v10424_v56 }
 0x284   : > { %v1552_v63 = vpop.f32.mrf.mxu3  ;;  %420 = vst.msk [vmem:[#allocation3 + $0x68] sm:$0xff] %vm405_vm2, %v10424_v56 }
 0x285   : > { %v1598_v36 = vadd.f32 %v1552_v63, %v10420_v30  ;;  %v3065_v63 = vld [vmem:[#allocation3] sm:$0xff]  ;;  %422 = vst.msk [vmem:[#allocation3 + $0x78] sm:$0xff] %vm405_vm2, %v10424_v56 }
 0x286   : > { %6309 = vmatmul.msk.f32.vlgmr.msra.gmra.mxu2 %vm405_vm2, %v3065_v63  ;;  %423 = vst.msk [vmem:[#allocation3 + $0x80] sm:$0xff] %vm405_vm2, %v10424_v56  ;;  %v2422_v63 = vld [vmem:[#allocation2 + $0xd9] sm:$0xff] }
 0x287   : > { %v8334_v53 = vadd.f32 %v1798_v9, %v1598_v36  ;;  %v1804_v54 = vpop.f32.mrf.mxu0  ;;  %v3105_v36 = vld [vmem:[#allocation3 + $0x1] sm:$0xff]  ;;  %425 = vst.msk [vmem:[#allocation3 + $0x90] sm:$0xff] %vm405_vm2, %v10424_v56 }
 0x288   : > { %6277 = vmatmul.msk.f32.vlgmr.msra.gmra.mxu1 %vm405_vm2, %v3105_v36  ;;  %426 = vst.msk [vmem:[#allocation3 + $0x98] sm:$0xff] %vm405_vm2, %v10424_v56 }
 0x289   : > { %10421 = vst [vmem:[#allocation48_spill] sm:$0xff] %v8334_v53  ;;  %6223 = vmatmul.msk.f32.gmra.mxu3 %vm349_vm0, %v2418_v28  ;;  %v10427_v28 = vld [vmem:[#allocation80_spill] sm:$0xff] }
 0x28a   : > { %6256 = vmatmul.msk.f32.gmra.mxu0 %vm349_vm0, %v2697_v1  ;;  %v2421_v1 = vld [vmem:[#allocation2 + $0xc9] sm:$0xff]  ;;  %428 = vst.msk [vmem:[#allocation3 + $0xa8] sm:$0xff] %vm405_vm2, %v10424_v56  ;;  %v2705_v53 = vld [vmem:[#allocation2 + $0x112] sm:$0xff] }
 0x28b   : > { %429 = vst.msk [vmem:[#allocation3 + $0xb0] sm:$0xff] %vm405_vm2, %v10424_v56 }
 0x28c   : > { %v1555_v24 = vpop.f32.mrf.mxu3  ;;  %431 = vst.msk [vmem:[#allocation3 + $0xc0] sm:$0xff] %vm405_vm2, %v10424_v56 }
 0x28d   : > { %v1599_v7 = vadd.f32 %v1555_v24, %v10422_v22  ;;  %432 = vst.msk [vmem:[#allocation3 + $0xc8] sm:$0xff] %vm405_vm2, %v10424_v56 }
 0x28e   : > { %434 = vst.msk [vmem:[#allocation3 + $0xd8] sm:$0xff] %vm405_vm2, %v10424_v56 }
 0x28f   : > { %v8343_v60 = vadd.f32 %v1801_v48, %v1599_v7  ;;  %v1807_v23 = vpop.f32.mrf.mxu0  ;;  %v2700_v7 = vld [vmem:[#allocation2 + $0xda] sm:$0xff]  ;;  %435 = vst.msk [vmem:[#allocation3 + $0xe0] sm:$0xff] %vm405_vm2, %v10424_v56 }
 0x290   : > { %437 = vst.msk [vmem:[#allocation3 + $0xf0] sm:$0xff] %vm405_vm2, %v10424_v56 }
 0x291   : > { %10423 = vst [vmem:[#allocation31_spill] sm:$0xff] %v8343_v60  ;;  %6224 = vmatmul.msk.f32.gmra.mxu3 %vm349_vm0, %v2419_v17  ;;  %v8387_v17 = vpop.f32.mrf.mxu2 }
 0x292   : > { %6257 = vmatmul.msk.f32.gmra.mxu0 %vm349_vm0, %v2698_v26  ;;  %v8394_v26 = vpop.f32.mrf.mxu1  ;;  %438 = vst.msk [vmem:[#allocation3 + $0xf8] sm:$0xff] %vm405_vm2, %v10424_v56 }
 0x293   : > { %440 = vst.msk [vmem:[#allocation3 + $0x108] sm:$0xff] %vm405_vm2, %v10424_v56 }
 0x294   : > { %v1558_v9 = vpop.f32.mrf.mxu3  ;;  %441 = vst.msk [vmem:[#allocation3 + $0x110] sm:$0xff] %vm405_vm2, %v10424_v56 }
 0x295   : > { %v1600_v19 = vadd.f32 %v1558_v9, %v10425_v44  ;;  %v10429_v44 = vld [vmem:[#allocation84_spill] sm:$0xff]  ;;  %443 = vst.msk [vmem:[#allocation3 + $0x120] sm:$0xff] %vm405_vm2, %v10424_v56 }
 0x296   : > { %444 = vst.msk [vmem:[#allocation3 + $0x128] sm:$0xff] %vm405_vm2, %v10424_v56 }
 0x297   : > { %v8358_v27 = vadd.f32 %v1804_v54, %v1600_v19  ;;  %v1810_v48 = vpop.f32.mrf.mxu0  ;;  %446 = vst.msk [vmem:[#allocation3 + $0x138] sm:$0xff] %vm405_vm2, %v10424_v56 }
 0x298   : > { %447 = vst.msk [vmem:[#allocation3 + $0x140] sm:$0xff] %vm405_vm2, %v10424_v56 }
 0x299   : > { %10426 = vst [vmem:[#allocation58_spill] sm:$0xff] %v8358_v27  ;;  %6225 = vmatmul.msk.f32.gmra.mxu3 %vm349_vm0, %v2420_v41  ;;  %v3886_v41 = vld [vmem:[#allocation9 + $0xf8] sm:$0xff] }
 0x29a   : > { %6258 = vmatmul.msk.f32.gmra.mxu0 %vm349_vm0, %v2699_v37  ;;  %v4136_v37 = vld [vmem:[#allocation9 + $0x138] sm:$0xff]  ;;  %449 = vst.msk [vmem:[#allocation3 + $0x150] sm:$0xff] %vm405_vm2, %v10424_v56 }
 0x29b   : > { %3991 = vmatpush.msrb.mxu0 %v3886_v41  ;;  %4241 = vmatpush.msrb.mxu1 %v4136_v37  ;;  %450 = vst.msk [vmem:[#allocation3 + $0x158] sm:$0xff] %vm405_vm2, %v10424_v56  ;;  %v10433_v37 = vld [vmem:[#allocation25_spill] sm:$0xff] }
 0x29c   : > { %v1561_v30 = vpop.f32.mrf.mxu3  ;;  %452 = vst.msk [vmem:[#allocation3 + $0x168] sm:$0xff] %vm405_vm2, %v10424_v56 }
 0x29d   : > { %v1601_v54 = vadd.f32 %v1561_v30, %v10427_v28  ;;  %v2701_v28 = vld [vmem:[#allocation2 + $0xe2] sm:$0xff]  ;;  %453 = vst.msk [vmem:[#allocation3 + $0x170] sm:$0xff] %vm405_vm2, %v10424_v56 }
 0x29e   : > { %455 = vst.msk [vmem:[#allocation3 + $0x180] sm:$0xff] %vm405_vm2, %v10424_v56 }
 0x29f   : > { %v8383_v24 = vadd.f32 %v1807_v23, %v1601_v54  ;;  %v1813_v22 = vpop.f32.mrf.mxu0  ;;  %v3066_v23 = vld [vmem:[#allocation3 + $0x8] sm:$0xff]  ;;  %v8418_v54 = vpop.f32.mrf.mxu2  ;;  %456 = vst.msk [vmem:[#allocation3 + $0x188] sm:$0xff] %vm405_vm2, %v10424_v56 }
 0x2a0   : > { %6310 = vmatmul.msk.f32.gmra.mxu2 %vm405_vm2, %v3066_v23  ;;  %458 = vst.msk [vmem:[#allocation3 + $0x198] sm:$0xff] %vm405_vm2, %v10424_v56 }
 0x2a1   : > { %10428 = vst [vmem:[#allocation32_spill] sm:$0xff] %v8383_v24  ;;  %6226 = vmatmul.msk.f32.gmra.mxu3 %vm349_vm0, %v2421_v1  ;;  %v4135_v24 = vld [vmem:[#allocation9 + $0x130] sm:$0xff] }
 0x2a2   : > { %6259 = vmatmul.msk.f32.gmra.mxu0 %vm349_vm0, %v2700_v7  ;;  %v10431_v7 = vld [vmem:[#allocation35_spill] sm:$0xff]  ;;  %459 = vst.msk [vmem:[#allocation3 + $0x1a0] sm:$0xff] %vm405_vm2, %v10424_v56  ;;  %4242 = vmatpush.msrb.mxu1 %v4135_v24 }
 0x2a3   : > { %412 = vst.msk [vmem:[#allocation3 + $0x28] sm:$0x3] %vm408_vm3, %v10424_v56 }
 0x2a4   : > { %v1564_v9 = vpop.f32.mrf.mxu3  ;;  %409 = vst.msk [vmem:[#allocation3 + $0x10] sm:$0x3] %vm408_vm3, %v10424_v56 }
 0x2a5   : > { %v1602_v19 = vadd.f32 %v1564_v9, %v10429_v44  ;;  %v2423_v9 = vld [vmem:[#allocation2 + $0xe1] sm:$0xff]  ;;  %415 = vst.msk [vmem:[#allocation3 + $0x40] sm:$0x3] %vm408_vm3, %v10424_v56 }
 0x2a6   : > { %418 = vst.msk [vmem:[#allocation3 + $0x58] sm:$0x3] %vm408_vm3, %v10424_v56 }
 0x2a7   : > { %v8409_v30 = vadd.f32 %v1810_v48, %v1602_v19  ;;  %v1816_v36 = vpop.f32.mrf.mxu0  ;;  %v8425_v48 = vpop.f32.mrf.mxu1  ;;  %421 = vst.msk [vmem:[#allocation3 + $0x70] sm:$0x3] %vm408_vm3, %v10424_v56 }
 0x2a8   : > { %424 = vst.msk [vmem:[#allocation3 + $0x88] sm:$0x3] %vm408_vm3, %v10424_v56 }
 0x2a9   : > { %10430 = vst [vmem:[#allocation33_spill] sm:$0xff] %v8409_v30  ;;  %6227 = vmatmul.msk.f32.gmra.mxu3 %vm349_vm0, %v2422_v63 }
 0x2aa   : > { %6260 = vmatmul.msk.f32.gmra.mxu0 %vm349_vm0, %v2701_v28  ;;  %427 = vst.msk [vmem:[#allocation3 + $0xa0] sm:$0x3] %vm408_vm3, %v10424_v56 }
 0x2ab   : > { %430 = vst.msk [vmem:[#allocation3 + $0xb8] sm:$0x3] %vm408_vm3, %v10424_v56 }
 0x2ac   : > { %v1567_v1 = vpop.f32.mrf.mxu3  ;;  %433 = vst.msk [vmem:[#allocation3 + $0xd0] sm:$0x3] %vm408_vm3, %v10424_v56 }
 0x2ad   : > { %v1603_v23 = vadd.f32 %v1567_v1, %v10431_v7  ;;  %v2424_v1 = vld [vmem:[#allocation2 + $0xf1] sm:$0xff]  ;;  %436 = vst.msk [vmem:[#allocation3 + $0xe8] sm:$0x3] %vm408_vm3, %v10424_v56 }
 0x2ae   : > { %439 = vst.msk [vmem:[#allocation3 + $0x100] sm:$0x3] %vm408_vm3, %v10424_v56 }
 0x2af   : > { %v8434_v44 = vadd.f32 %v1813_v22, %v1603_v23  ;;  %v2836_v19 = vpop.f32.mrf.mxu0  ;;  %v8448_v22 = vpop.f32.mrf.mxu2  ;;  %442 = vst.msk [vmem:[#allocation3 + $0x118] sm:$0x3] %vm408_vm3, %v10424_v56 }
 0x2b0   : > { %v8455_v28 = vpop.f32.mrf.mxu1  ;;  %445 = vst.msk [vmem:[#allocation3 + $0x130] sm:$0x3] %vm408_vm3, %v10424_v56 }
 0x2b1   : > { %10432 = vst [vmem:[#allocation29_spill] sm:$0xff] %v8434_v44  ;;  %6228 = vmatmul.msk.f32.gmra.mxu3 %vm349_vm0, %v2423_v9  ;;  %v2703_v9 = vld [vmem:[#allocation2 + $0xfa] sm:$0xff] }
 0x2b2   : > { %6261 = vmatmul.msk.f32.gmra.mxu0 %vm349_vm0, %v2702_v0  ;;  %448 = vst.msk [vmem:[#allocation3 + $0x148] sm:$0x3] %vm408_vm3, %v10424_v56 }
 0x2b3   : > { %451 = vst.msk [vmem:[#allocation3 + $0x160] sm:$0x3] %vm408_vm3, %v10424_v56 }
 0x2b4   : > { %v1570_v41 = vpop.f32.mrf.mxu3  ;;  %454 = vst.msk [vmem:[#allocation3 + $0x178] sm:$0x3] %vm408_vm3, %v10424_v56 }
 0x2b5   : > { %v1604_v63 = vadd.f32 %v1570_v41, %v10433_v37  ;;  %v8479_v41 = vld [vmem:[%s10100_s2] ss:$0 sm:$0xff]  ;;  %v3603_v37 = vld [vmem:[#allocation9 + $0xb0] sm:$0xff]  ;;  %457 = vst.msk [vmem:[#allocation3 + $0x190] sm:$0x3] %vm408_vm3, %v10424_v56 }
 0x2b6   : > { %3710 = vmatpush.msrb.mxu3 %v3603_v37  ;;  %v10436_v37 = vld [vmem:[#allocation41_spill] sm:$0xff]  ;;  %460 = vst.msk [vmem:[#allocation3 + $0x1a8] sm:$0x3] %vm408_vm3, %v10424_v56  ;;  %v2427_v56 = vld [vmem:[#allocation2 + $0x111] sm:$0xff] }
 0x2b7   : > { %v8459_v7 = vadd.f32 %v1816_v36, %v1604_v63  ;;  %v2839_v23 = vpop.f32.mrf.mxu0  ;;  %v8483_v63 = vpop.f32.mrf.mxu2 }
 0x2b8   : > { %v8489_v44 = vpop.f32.mrf.mxu1 }
 0x2b9   : > { %10434 = vst [vmem:[#allocation54_spill] sm:$0xff] %v8459_v7  ;;  %6229 = vmatmul.msk.f32.gmra.mxu3 %vm349_vm0, %v2424_v1  ;;  %v2425_v1 = vld [vmem:[#allocation2 + $0xf9] sm:$0xff] }
 0x2ba   : > { %6262 = vmatmul.msk.f32.gmra.mxu0 %vm349_vm0, %v2703_v9 }
 0x2bc   : > { %v2558_v36 = vpop.f32.mrf.mxu3 }
 0x2bd   : > { %v2654_v0 = vadd.f32 %v2558_v36, %v8055_v14  ;;  %v3106_v14 = vld [vmem:[#allocation3 + $0x9] sm:$0xff]  ;;  %v2704_v36 = vld [vmem:[#allocation2 + $0x10a] sm:$0xff] }
 0x2be   : > { %6278 = vmatmul.msk.f32.gmra.mxu1 %vm405_vm2, %v3106_v14  ;;  %v3885_v14 = vld [vmem:[#allocation9 + $0xf0] sm:$0xff] }
 0x2bf   : > { %v2932_v9 = vadd.f32 %v2836_v19, %v2654_v0  ;;  %v2842_v7 = vpop.f32.mrf.mxu0  ;;  %3992 = vmatpush.msrb.mxu0 %v3885_v14 }
 0x2c1   : > { %v8495_v30 = vadd.f32 %v8479_v41, %v2932_v9  ;;  %6230 = vmatmul.msk.f32.gmra.mxu3 %vm349_vm0, %v2425_v1  ;;  %v4417_v9 = vld [vmem:[#allocation9 + $0x170] sm:$0xff] }
 0x2c2   : > { %6263 = vmatmul.msk.f32.gmra.mxu0 %vm349_vm0, %v2704_v36  ;;  %v2426_v36 = vld [vmem:[#allocation2 + $0x109] sm:$0xff]  ;;  %4524 = vmatpush.msrb.mxu2 %v4417_v9 }
 0x2c3   : > { %10435 = vst [vmem:[#allocation37_spill] sm:$0xff] %v8495_v30  ;;  %v10175_v19 = vmax.f32 %v8495_v30, 0.0  ;;  %v8516_v30 = vpop.f32.mrf.mxu2 }
 0x2c4   : > { %v2561_v0 = vpop.f32.mrf.mxu3 }
 0x2c5   : > { %3033 = vst.msk [vmem:[#allocation3 + $0x19] sm:$0xff] %vm405_vm2, %v10175_v19  ;;  %v2655_v1 = vadd.f32 %v2561_v0, %v10436_v37 }
 0x2c7   : > { %v2933_v27 = vadd.f32 %v2839_v23, %v2655_v1  ;;  %v2845_v60 = vpop.f32.mrf.mxu0  ;;  %v8526_v23 = vpop.f32.mrf.mxu1 }
 0x2c8   : > { %10438 = vst [vmem:[#allocation40_spill] sm:$0xff] %v8526_v23 }
 0x2c9   : > { %v8521_v0 = vadd.f32 %v8479_v41, %v2933_v27  ;;  %6231 = vmatmul.msk.f32.gmra.mxu3 %vm349_vm0, %v2426_v36  ;;  %v2706_v36 = vld [vmem:[#allocation2 + $0x122] sm:$0xff] }
 0x2ca   : > { %6264 = vmatmul.msk.f32.gmra.mxu0 %vm349_vm0, %v2705_v53 }
 0x2cb   : > { %10437 = vst [vmem:[#allocation39_spill] sm:$0xff] %v8521_v0  ;;  %v10176_v37 = vmax.f32 %v8521_v0, 0.0  ;;  %v8543_v33 = vpop.f32.mrf.mxu2 }
 0x2cc   : > { %v2564_v24 = vpop.f32.mrf.mxu3  ;;  %v3107_v1 = vld [vmem:[#allocation3 + $0x19] sm:$0xff]  ;;  %10440 = vst [vmem:[#allocation60_spill] sm:$0xff] %v8543_v33 }
 0x2cd   : > { %v8530_v9 = vld [vmem:[#allocation3 + $0x18] sm:$0xff]  ;;  %3034 = vst.msk [vmem:[#allocation3 + $0x21] sm:$0xff] %vm405_vm2, %v10176_v37  ;;  %v2656_v27 = vadd.f32 %v2564_v24, %v8083_v34  ;;  %6279 = vmatmul.msk.f32.gmra.mxu1 %vm405_vm2, %v3107_v1 }
 0x2ce   : > { %6311 = vmatmul.msk.f32.gmra.mxu2 %vm405_vm2, %v8530_v9 }
 0x2cf   : > { %v2934_v14 = vadd.f32 %v2842_v7, %v2656_v27  ;;  %v2848_v53 = vpop.f32.mrf.mxu0  ;;  %v8547_v24 = vpop.f32.mrf.mxu1  ;;  %v10442_v7 = vld [vmem:[#allocation52_spill] sm:$0xff] }
 0x2d0   : > { %10441 = vst [vmem:[#allocation45_spill] sm:$0xff] %v8547_v24 }
 0x2d1   : > { %v8540_v19 = vadd.f32 %v8479_v41, %v2934_v14  ;;  %6232 = vmatmul.msk.f32.gmra.mxu3 %vm349_vm0, %v2427_v56  ;;  %v2428_v56 = vld [vmem:[#allocation2 + $0x121] sm:$0xff] }
 0x2d2   : > { %6265 = vmatmul.msk.f32.gmra.mxu0 %vm349_vm0, %v2706_v36 }
 0x2d3   : > { %10439 = vst [vmem:[#allocation30_spill] sm:$0xff] %v8540_v19  ;;  %v10178_v34 = vmax.f32 %v8540_v19, 0.0  ;;  %v8564_v19 = vpop.f32.mrf.mxu2 }
 0x2d4   : > { %v2567_v1 = vpop.f32.mrf.mxu3  ;;  %v3108_v37 = vld [vmem:[#allocation3 + $0x21] sm:$0xff]  ;;  %10444 = vst [vmem:[#allocation47_spill] sm:$0xff] %v8564_v19 }
 0x2d5   : > { %v8549_v0 = vld [vmem:[#allocation3 + $0x20] sm:$0xff]  ;;  %3035 = vst.msk [vmem:[#allocation3 + $0x31] sm:$0xff] %vm405_vm2, %v10178_v34  ;;  %v2657_v27 = vadd.f32 %v2567_v1, %v10442_v7  ;;  %6280 = vmatmul.msk.f32.gmra.mxu1 %vm405_vm2, %v3108_v37 }
 0x2d6   : > { %6312 = vmatmul.msk.f32.gmra.mxu2 %vm405_vm2, %v8549_v0 }
 0x2d7   : > { %v2935_v14 = vadd.f32 %v2845_v60, %v2657_v27  ;;  %v2851_v36 = vpop.f32.mrf.mxu0  ;;  %v8575_v27 = vpop.f32.mrf.mxu1 }
 0x2d8   : > { %10445 = vst [vmem:[#allocation36_spill] sm:$0xff] %v8575_v27 }
 0x2d9   : > { %v8559_v24 = vadd.f32 %v8479_v41, %v2935_v14  ;;  %6233 = vmatmul.msk.f32.gmra.mxu3 %vm349_vm0, %v2428_v56  ;;  %v2429_v56 = vld [vmem:[#allocation2 + $0x129] sm:$0xff] }
 0x2da   : > { %6266 = vmatmul.msk.f32.gmra.mxu0 %vm349_vm0, %v2707_v13  ;;  %v3602_v13 = vld [vmem:[#allocation9 + $0xa8] sm:$0xff] }
 0x2db   : > { %10443 = vst [vmem:[#allocation44_spill] sm:$0xff] %v8559_v24  ;;  %v10180_v34 = vmax.f32 %v8559_v24, 0.0  ;;  %3711 = vmatpush.msrb.mxu3 %v3602_v13  ;;  %v3884_v13 = vld [vmem:[#allocation9 + $0xe8] sm:$0xff] }
 0x2dc   : > { %v2570_v1 = vpop.f32.mrf.mxu3  ;;  %v3109_v37 = vld [vmem:[#allocation3 + $0x31] sm:$0xff]  ;;  %3993 = vmatpush.msrb.mxu0 %v3884_v13 }
 0x2dd   : > { %v8566_v7 = vld [vmem:[#allocation3 + $0x30] sm:$0xff]  ;;  %3036 = vst.msk [vmem:[#allocation3 + $0x39] sm:$0xff] %vm405_vm2, %v10180_v34  ;;  %v2658_v60 = vadd.f32 %v2570_v1, %v8109_v50  ;;  %6281 = vmatmul.msk.f32.gmra.mxu1 %vm405_vm2, %v3109_v37 }
 0x2de   : > { %6313 = vmatmul.msk.f32.gmra.mxu2 %vm405_vm2, %v8566_v7 }
 0x2df   : > { %v2936_v14 = vadd.f32 %v2848_v53, %v2658_v60  ;;  %v2854_v19 = vpop.f32.mrf.mxu0  ;;  %v4416_v60 = vld [vmem:[#allocation9 + $0x168] sm:$0xff] }
 0x2e0   : > { %4525 = vmatpush.msrb.mxu2 %v4416_v60  ;;  %v2710_v60 = vld [vmem:[#allocation2 + $0x152] sm:$0xff] }
 0x2e1   : > { %v8578_v33 = vadd.f32 %v8479_v41, %v2936_v14  ;;  %6234 = vmatmul.msk.f32.gmra.mxu3 %vm349_vm0, %v2429_v56  ;;  %v8592_v56 = vpop.f32.mrf.mxu2  ;;  %v2430_v14 = vld [vmem:[#allocation2 + $0x139] sm:$0xff] }
 0x2e2   : > { %6267 = vmatmul.msk.f32.gmra.mxu0 %vm349_vm0, %v2708_v51  ;;  %v4134_v51 = vld [vmem:[#allocation9 + $0x128] sm:$0xff]  ;;  %10447 = vst [vmem:[#allocation51_spill] sm:$0xff] %v8592_v56 }
 0x2e3   : > { %10446 = vst [vmem:[#allocation65_spill] sm:$0xff] %v8578_v33  ;;  %v10183_v50 = vmax.f32 %v8578_v33, 0.0  ;;  %v2709_v33 = vld [vmem:[#allocation2 + $0x142] sm:$0xff]  ;;  %4243 = vmatpush.msrb.mxu1 %v4134_v51 }
 0x2e4   : > { %v2573_v1 = vpop.f32.mrf.mxu3  ;;  %v3110_v37 = vld [vmem:[#allocation3 + $0x39] sm:$0xff] }
 0x2e5   : > { %v8583_v34 = vld [vmem:[#allocation3 + $0x38] sm:$0xff]  ;;  %3037 = vst.msk [vmem:[#allocation3 + $0x49] sm:$0xff] %vm405_vm2, %v10183_v50  ;;  %v2659_v53 = vadd.f32 %v2573_v1, %v8121_v59  ;;  %6282 = vmatmul.msk.f32.gmra.mxu1 %vm405_vm2, %v3110_v37  ;;  %v8594_v50 = vpop.f32.mrf.mxu1 }
 0x2e6   : > { %6314 = vmatmul.msk.f32.gmra.mxu2 %vm405_vm2, %v8583_v34 }
 0x2e7   : > { %v2937_v24 = vadd.f32 %v2851_v36, %v2659_v53  ;;  %v2857_v27 = vpop.f32.mrf.mxu0 }
 0x2e9   : > { %v8597_v59 = vadd.f32 %v8479_v41, %v2937_v24  ;;  %6235 = vmatmul.msk.f32.gmra.mxu3 %vm349_vm0, %v2430_v14  ;;  %v2431_v24 = vld [vmem:[#allocation2 + $0x141] sm:$0xff]  ;;  %v8611_v13 = vpop.f32.mrf.mxu2 }
 0x2ea   : > { %6268 = vmatmul.msk.f32.gmra.mxu0 %vm349_vm0, %v2709_v33 }
 0x2eb   : > { %10448 = vst [vmem:[#allocation50_spill] sm:$0xff] %v8597_v59  ;;  %v10184_v1 = vmax.f32 %v8597_v59, 0.0  ;;  %v2711_v59 = vld [vmem:[#allocation2 + $0x15a] sm:$0xff] }
 0x2ec   : > { %v2576_v37 = vpop.f32.mrf.mxu3  ;;  %v3111_v56 = vld [vmem:[#allocation3 + $0x49] sm:$0xff] }
 0x2ed   : > { %v8602_v23 = vld [vmem:[#allocation3 + $0x48] sm:$0xff]  ;;  %3038 = vst.msk [vmem:[#allocation3 + $0x51] sm:$0xff] %vm405_vm2, %v10184_v1  ;;  %v2660_v36 = vadd.f32 %v2576_v37, %v8133_v3  ;;  %6283 = vmatmul.msk.f32.gmra.mxu1 %vm405_vm2, %v3111_v56  ;;  %v8617_v14 = vpop.f32.mrf.mxu1 }
 0x2ee   : > { %6315 = vmatmul.msk.f32.gmra.mxu2 %vm405_vm2, %v8602_v23  ;;  %10450 = vst [vmem:[#allocation42_spill] sm:$0xff] %v8617_v14 }
 0x2ef   : > { %v2938_v53 = vadd.f32 %v2854_v19, %v2660_v36  ;;  %v2860_v33 = vpop.f32.mrf.mxu0  ;;  %v2432_v36 = vld [vmem:[#allocation2 + $0x151] sm:$0xff] }
 0x2f1   : > { %v8614_v51 = vadd.f32 %v8479_v41, %v2938_v53  ;;  %6236 = vmatmul.msk.f32.gmra.mxu3 %vm349_vm0, %v2431_v24  ;;  %v2105_v24 = vadd.f32 %v8260_v6, %v8161_v55 }
 0x2f2   : > { %6269 = vmatmul.msk.f32.gmra.mxu0 %vm349_vm0, %v2710_v60 }
 0x2f3   : > { %10449 = vst [vmem:[#allocation53_spill] sm:$0xff] %v8614_v51  ;;  %v10186_v3 = vmax.f32 %v8614_v51, 0.0 }
 0x2f4   : > { %v2579_v56 = vpop.f32.mrf.mxu3  ;;  %v3112_v37 = vld [vmem:[#allocation3 + $0x51] sm:$0xff] }
 0x2f5   : > { %v8621_v1 = vld [vmem:[#allocation3 + $0x50] sm:$0xff]  ;;  %3039 = vst.msk [vmem:[#allocation3 + $0x61] sm:$0xff] %vm405_vm2, %v10186_v3  ;;  %v2661_v19 = vadd.f32 %v2579_v56, %v8152_v52  ;;  %6284 = vmatmul.msk.f32.gmra.mxu1 %vm405_vm2, %v3112_v37  ;;  %v8636_v3 = vpop.f32.mrf.mxu2  ;;  %v2384_v52 = vadd.f32 %v8269_v61, %v2105_v24  ;;  %v8641_v37 = vpop.f32.mrf.mxu1 }
 0x2f6   : > { %6316 = vmatmul.msk.f32.gmra.mxu2 %vm405_vm2, %v8621_v1  ;;  %10452 = vst [vmem:[#allocation56_spill] sm:$0xff] %v8641_v37  ;;  %v2433_v61 = vld [vmem:[#allocation2 + $0x159] sm:$0xff] }
 0x2f7   : > { %v2939_v53 = vadd.f32 %v2857_v27, %v2661_v19  ;;  %v2863_v60 = vpop.f32.mrf.mxu0  ;;  %v2106_v19 = vadd.f32 %v8272_v38, %v8176_v29  ;;  %v4415_v38 = vld [vmem:[#allocation9 + $0x160] sm:$0xff] }
 0x2f8   : > { %4526 = vmatpush.msrb.mxu2 %v4415_v38 }
 0x2f9   : > { %v8633_v14 = vadd.f32 %v8479_v41, %v2939_v53  ;;  %6237 = vmatmul.msk.f32.gmra.mxu3 %vm349_vm0, %v2432_v36  ;;  %v2712_v53 = vld [vmem:[#allocation2 + $0x16a] sm:$0xff] }
 0x2fa   : > { %6270 = vmatmul.msk.f32.gmra.mxu0 %vm349_vm0, %v2711_v59  ;;  %v3601_v59 = vld [vmem:[#allocation9 + $0xa0] sm:$0xff] }
 0x2fb   : > { %10451 = vst [vmem:[#allocation57_spill] sm:$0xff] %v8633_v14  ;;  %v10188_v56 = vmax.f32 %v8633_v14, 0.0  ;;  %3712 = vmatpush.msrb.mxu3 %v3601_v59 }
 0x2fc   : > { %v2582_v51 = vpop.f32.mrf.mxu3  ;;  %v3113_v55 = vld [vmem:[#allocation3 + $0x61] sm:$0xff] }
 0x2fd   : > { %v8643_v6 = vld [vmem:[#allocation3 + $0x60] sm:$0xff]  ;;  %3040 = vst.msk [vmem:[#allocation3 + $0x69] sm:$0xff] %vm405_vm2, %v10188_v56  ;;  %v2662_v27 = vadd.f32 %v2582_v51, %v2384_v52  ;;  %6285 = vmatmul.msk.f32.gmra.mxu1 %vm405_vm2, %v3113_v55  ;;  %v2385_v51 = vadd.f32 %v8281_v16, %v2106_v19  ;;  %v8660_v55 = vpop.f32.mrf.mxu2  ;;  %v3883_v16 = vld [vmem:[#allocation9 + $0xe0] sm:$0xff]  ;;  %v2107_v19 = vadd.f32 %v8285_v12, %v8188_v43 }
 0x2fe   : > { %6317 = vmatmul.msk.f32.gmra.mxu2 %vm405_vm2, %v8643_v6  ;;  %3994 = vmatpush.msrb.mxu0 %v3883_v16 }
 0x2ff   : > { %v2940_v36 = vadd.f32 %v2860_v33, %v2662_v27  ;;  %v2866_v24 = vpop.f32.mrf.mxu0  ;;  %v4133_v33 = vld [vmem:[#allocation9 + $0x120] sm:$0xff]  ;;  %v8670_v27 = vpop.f32.mrf.mxu1 }
 0x300   : > { %4244 = vmatpush.msrb.mxu1 %v4133_v33 }
 0x301   : > { %v8654_v37 = vadd.f32 %v8479_v41, %v2940_v36  ;;  %6238 = vmatmul.msk.f32.gmra.mxu3 %vm349_vm0, %v2433_v61  ;;  %v2434_v61 = vld [vmem:[#allocation2 + $0x169] sm:$0xff] }
 0x302   : > { %6271 = vmatmul.msk.f32.gmra.mxu0 %vm349_vm0, %v2712_v53 }
 0x303   : > { %10453 = vst [vmem:[#allocation59_spill] sm:$0xff] %v8654_v37  ;;  %v10190_v52 = vmax.f32 %v8654_v37, 0.0 }
 0x304   : > { %v2585_v59 = vpop.f32.mrf.mxu3  ;;  %v3114_v56 = vld [vmem:[#allocation3 + $0x69] sm:$0xff] }
 0x305   : > { %v8662_v14 = vld [vmem:[#allocation3 + $0x68] sm:$0xff]  ;;  %3041 = vst.msk [vmem:[#allocation3 + $0x79] sm:$0xff] %vm405_vm2, %v10190_v52  ;;  %v2663_v29 = vadd.f32 %v2585_v59, %v2385_v51  ;;  %6286 = vmatmul.msk.f32.gmra.mxu1 %vm405_vm2, %v3114_v56  ;;  %v2386_v51 = vadd.f32 %v8294_v20, %v2107_v19  ;;  %v8689_v12 = vpop.f32.mrf.mxu2  ;;  %v3881_v19 = vld [vmem:[#allocation9 + $0xd0] sm:$0xff] }
 0x306   : > { %6318 = vmatmul.msk.f32.gmra.mxu2 %vm405_vm2, %v8662_v14  ;;  %v2713_v52 = vld [vmem:[#allocation2 + $0x172] sm:$0xff] }
 0x307   : > { %v2941_v36 = vadd.f32 %v2863_v60, %v2663_v29  ;;  %v2869_v53 = vpop.f32.mrf.mxu0  ;;  %v2435_v60 = vld [vmem:[#allocation2 + $0x171] sm:$0xff] }
 0x308   : > { %v3882_v20 = vld [vmem:[#allocation9 + $0xd8] sm:$0xff] }
 0x309   : > { %v8675_v56 = vadd.f32 %v8479_v41, %v2941_v36  ;;  %6239 = vmatmul.msk.f32.gmra.mxu3 %vm349_vm0, %v2434_v61  ;;  %3995 = vmatpush.msrb.mxu0 %v3882_v20  ;;  %v8693_v61 = vpop.f32.mrf.mxu1 }
 0x30a   : > { %6272 = vmatmul.msk.f32.gmra.mxu0 %vm349_vm0, %v2713_v52  ;;  %v2108_v52 = vadd.f32 %v8296_v42, %v8200_v49 }
 0x30b   : > { %v10194_v59 = vmax.f32 %v8675_v56, 0.0  ;;  %3996 = vmatpush.msrb.mxu0 %v3881_v19 }
 0x30c   : > { %v2588_v38 = vpop.f32.mrf.mxu3  ;;  %v3115_v16 = vld [vmem:[#allocation3 + $0x79] sm:$0xff]  ;;  %v2387_v49 = vadd.f32 %v8305_v8, %v2108_v52  ;;  %v2436_v8 = vld [vmem:[#allocation2 + $0x181] sm:$0xff]  ;;  %v2109_v52 = vadd.f32 %v8311_v35, %v8212_v40 }
 0x30d   : > { %v8681_v37 = vld [vmem:[#allocation3 + $0x78] sm:$0xff]  ;;  %3042 = vst.msk [vmem:[#allocation3 + $0x81] sm:$0xff] %vm405_vm2, %v10194_v59  ;;  %v2664_v43 = vadd.f32 %v2588_v38, %v2386_v51  ;;  %6287 = vmatmul.msk.f32.gmra.mxu1 %vm405_vm2, %v3115_v16  ;;  %v3600_v51 = vld [vmem:[#allocation9 + $0x98] sm:$0xff] }
 0x30e   : > { %6319 = vmatmul.msk.f32.gmra.mxu2 %vm405_vm2, %v8681_v37  ;;  %3713 = vmatpush.msrb.mxu3 %v3600_v51  ;;  %v3880_v38 = vld [vmem:[#allocation9 + $0xc8] sm:$0xff] }
 0x30f   : > { %v2942_v29 = vadd.f32 %v2866_v24, %v2664_v43  ;;  %v2872_v33 = vpop.f32.mrf.mxu0  ;;  %3997 = vmatpush.msrb.mxu0 %v3880_v38  ;;  %v3599_v24 = vld [vmem:[#allocation9 + $0x90] sm:$0xff]  ;;  %v3597_v38 = vld [vmem:[#allocation9 + $0x80] sm:$0xff] }
 0x310   : > { %3714 = vmatpush.msrb.mxu3 %v3599_v24  ;;  %v8713_v24 = vpop.f32.mrf.mxu2  ;;  %v2717_v59 = vld [vmem:[#allocation2 + $0x1a2] sm:$0xff] }
 0x311   : > { %v8696_v36 = vadd.f32 %v8479_v41, %v2942_v29  ;;  %6240 = vmatmul.msk.f32.gmra.mxu3 %vm349_vm0, %v2435_v60  ;;  %v3879_v29 = vld [vmem:[#allocation9 + $0xc0] sm:$0xff] }
 0x312   : > { %6273 = vmatmul.msk.f32.gmra.mxu0 %vm349_vm0, %v8214_v2  ;;  %v3598_v2 = vld [vmem:[#allocation9 + $0x88] sm:$0xff] }
 0x313   : > { %v10192_v42 = vmax.f32 %v8696_v36, 0.0  ;;  %3998 = vmatpush.msrb.mxu0 %v3879_v29  ;;  %3715 = vmatpush.msrb.mxu3 %v3598_v2  ;;  %v2388_v29 = vadd.f32 %v8318_v5, %v2109_v52  ;;  %v2110_v5 = vadd.f32 %v8321_v25, %v8226_v32 }
 0x314   : > { %v2591_v16 = vpop.f32.mrf.mxu3  ;;  %v3116_v43 = vld [vmem:[#allocation3 + $0x81] sm:$0xff] }
 0x315   : > { %v8703_v20 = vld [vmem:[#allocation3 + $0x80] sm:$0xff]  ;;  %3043 = vst.msk [vmem:[#allocation3 + $0x91] sm:$0xff] %vm405_vm2, %v10192_v42  ;;  %v2665_v60 = vadd.f32 %v2591_v16, %v2387_v49  ;;  %6288 = vmatmul.msk.f32.gmra.mxu1 %vm405_vm2, %v3116_v43  ;;  %3716 = vmatpush.msrb.mxu3 %v3597_v38  ;;  %v8719_v16 = vpop.f32.mrf.mxu1  ;;  %v2716_v38 = vld [vmem:[#allocation2 + $0x19a] sm:$0xff] }
 0x316   : > { %6320 = vmatmul.msk.f32.gmra.mxu2 %vm405_vm2, %v8703_v20  ;;  %v6701_v43 = vld [vmem:[#allocation2 + $0x18a] sm:$0xff] }
 0x317   : > { %v2943_v19 = vadd.f32 %v2869_v53, %v2665_v60  ;;  %v2875_v51 = vpop.f32.mrf.mxu0 }
 0x318   : > { %v8738_v42 = vpop.f32.mrf.mxu2 }
 0x319   : > { %v8716_v49 = vadd.f32 %v8479_v41, %v2943_v19  ;;  %6241 = vmatmul.msk.f32.gmra.mxu3 %vm349_vm0, %v2436_v8  ;;  %v2437_v8 = vld [vmem:[#allocation2 + $0x189] sm:$0xff] }
 0x31a   : > { %6274 = vmatmul.msk.f32.gmra.mxu0 %vm349_vm0, %v6701_v43 }
 0x31b   : > { %10454 = vst [vmem:[#allocation17_spill] sm:$0xff] %v8716_v49  ;;  %v10193_v40 = vmax.f32 %v8716_v49, 0.0 }
 0x31c   : > { %v2594_v35 = vpop.f32.mrf.mxu3  ;;  %v3117_v53 = vld [vmem:[#allocation3 + $0x91] sm:$0xff] }
 0x31d   : > { %v8724_v60 = vld [vmem:[#allocation3 + $0x90] sm:$0xff]  ;;  %3044 = vst.msk [vmem:[#allocation3 + $0x99] sm:$0xff] %vm405_vm2, %v10193_v40  ;;  %v2666_v2 = vadd.f32 %v2594_v35, %v2388_v29  ;;  %6289 = vmatmul.msk.f32.gmra.mxu1 %vm405_vm2, %v3117_v53  ;;  %v2389_v29 = vadd.f32 %v8328_v21, %v2110_v5  ;;  %v8743_v53 = vpop.f32.mrf.mxu1  ;;  %v4132_v21 = vld [vmem:[#allocation9 + $0x118] sm:$0xff]  ;;  %v2111_v5 = vadd.f32 %v8331_v57, %v8237_v11 }
 0x31e   : > { %6321 = vmatmul.msk.f32.gmra.mxu2 %vm405_vm2, %v8724_v60  ;;  %4245 = vmatpush.msrb.mxu1 %v4132_v21 }
 0x31f   : > { %v2944_v52 = vadd.f32 %v2872_v33, %v2666_v2  ;;  %v2878_v19 = vpop.f32.mrf.mxu0  ;;  %v4414_v2 = vld [vmem:[#allocation9 + $0x158] sm:$0xff] }
 0x320   : > { %4527 = vmatpush.msrb.mxu2 %v4414_v2 }
 0x321   : > { %v8735_v43 = vadd.f32 %v8479_v41, %v2944_v52  ;;  %6242 = vmatmul.msk.f32.gmra.mxu3 %vm349_vm0, %v2437_v8  ;;  %v2438_v8 = vld [vmem:[#allocation2 + $0x199] sm:$0xff] }
 0x322   : > { %6275 = vmatmul.msk.f32.gmra.mxu0 %vm349_vm0, %v2716_v38 }
 0x323   : > { %10455 = vst [vmem:[#allocation34_spill] sm:$0xff] %v8735_v43  ;;  %v10196_v35 = vmax.f32 %v8735_v43, 0.0 }
 0x324   : > { %v2597_v40 = vpop.f32.mrf.mxu3  ;;  %v3118_v32 = vld [vmem:[#allocation3 + $0x99] sm:$0xff] }
 0x325   : > { %v8745_v25 = vld [vmem:[#allocation3 + $0x98] sm:$0xff]  ;;  %3045 = vst.msk [vmem:[#allocation3 + $0xa9] sm:$0xff] %vm405_vm2, %v10196_v35  ;;  %v2667_v33 = vadd.f32 %v2597_v40, %v2389_v29  ;;  %6290 = vmatmul.msk.f32.gmra.mxu1 %vm405_vm2, %v3118_v32  ;;  %v2390_v40 = vadd.f32 %v8338_v39, %v2111_v5  ;;  %v8762_v32 = vpop.f32.mrf.mxu2  ;;  %v8772_v57 = vpop.f32.mrf.mxu1 }
 0x326   : > { %6322 = vmatmul.msk.f32.gmra.mxu2 %vm405_vm2, %v8745_v25  ;;  %v2439_v39 = vld [vmem:[#allocation2 + $0x1a1] sm:$0xff]  ;;  %v9096_v49 = vld [vmem:[#allocation3 + $0x9a] sm:$0xff] }
 0x327   : > { %v2945_v52 = vadd.f32 %v2875_v51, %v2667_v33  ;;  %v2881_v38 = vpop.f32.mrf.mxu0 }
 0x329   : > { %v8756_v43 = vadd.f32 %v8479_v41, %v2945_v52  ;;  %6243 = vmatmul.msk.f32.gmra.mxu3 %vm349_vm0, %v2438_v8 }
 0x32a   : > { %6276 = vmatmul.msk.f32.gmra.mxu0 %vm349_vm0, %v2717_v59  ;;  %v2112_v59 = vadd.f32 %v8341_v58, %v8244_v18 }
 0x32b   : > { %10456 = vst [vmem:[#allocation63_spill] sm:$0xff] %v8756_v43  ;;  %v10202_v29 = vmax.f32 %v8756_v43, 0.0  ;;  %v9022_v43 = vld [vmem:[#allocation3 + $0x7a] sm:$0xff] }
 0x32c   : > { %v2600_v2 = vpop.f32.mrf.mxu3  ;;  %v3119_v21 = vld [vmem:[#allocation3 + $0xa9] sm:$0xff]  ;;  %v2391_v5 = vadd.f32 %v8354_v15, %v2112_v59 }
 0x32d   : > { %v8764_v35 = vld [vmem:[#allocation3 + $0xa8] sm:$0xff]  ;;  %3046 = vst.msk [vmem:[#allocation3 + $0xb1] sm:$0xff] %vm405_vm2, %v10202_v29  ;;  %v2668_v11 = vadd.f32 %v2600_v2, %v2390_v40  ;;  %6291 = vmatmul.msk.f32.gmra.mxu1 %vm405_vm2, %v3119_v21  ;;  %v8792_v58 = vpop.f32.mrf.mxu2  ;;  %v8794_v15 = vpop.f32.mrf.mxu1 }
 0x32e   : > { %6323 = vmatmul.msk.f32.gmra.mxu2 %vm405_vm2, %v8764_v35 }
 0x32f   : > { %v2946_v51 = vadd.f32 %v2878_v19, %v2668_v11  ;;  %v2884_v33 = vpop.f32.mrf.mxu0  ;;  %v2113_v19 = vadd.f32 %v8362_v62, %v8251_v10 }
 0x331   : > { %v8777_v8 = vadd.f32 %v8479_v41, %v2946_v51  ;;  %6244 = vmatmul.msk.f32.gmra.mxu3 %vm349_vm0, %v2439_v39  ;;  %v2392_v51 = vadd.f32 %v8387_v17, %v2113_v19  ;;  %v2114_v17 = vadd.f32 %v8394_v26, %v8258_v31  ;;  %v4413_v26 = vld [vmem:[#allocation9 + $0x150] sm:$0xff] }
 0x332   : > { %6373 = vmatmul.msk.f32.vlgmr.msrb.gmra.mxu0 %vm405_vm2, %v8530_v9  ;;  %v3564_v9 = vld [vmem:[#allocation3 + $0x2] sm:$0xff]  ;;  %4528 = vmatpush.msrb.mxu2 %v4413_v26 }
 0x333   : > { %10457 = vst [vmem:[#allocation62_spill] sm:$0xff] %v8777_v8  ;;  %v10197_v52 = vmax.f32 %v8777_v8, 0.0 }
 0x334   : > { %v2603_v40 = vpop.f32.mrf.mxu3  ;;  %v3120_v2 = vld [vmem:[#allocation3 + $0xb1] sm:$0xff] }
 0x335   : > { %v8784_v21 = vld [vmem:[#allocation3 + $0xb0] sm:$0xff]  ;;  %3047 = vst.msk [vmem:[#allocation3 + $0xc1] sm:$0xff] %vm405_vm2, %v10197_v52  ;;  %v2669_v18 = vadd.f32 %v2603_v40, %v2391_v5  ;;  %6292 = vmatmul.msk.f32.gmra.mxu1 %vm405_vm2, %v3120_v2  ;;  %v8814_v62 = vpop.f32.mrf.mxu2 }
 0x336   : > { %6324 = vmatmul.msk.f32.gmra.mxu2 %vm405_vm2, %v8784_v21 }
 0x337   : > { %v2947_v11 = vadd.f32 %v2881_v38, %v2669_v18  ;;  %v2887_v39 = vpop.f32.mrf.mxu0 }
 0x339   : > { %v8799_v59 = vadd.f32 %v8479_v41, %v2947_v11  ;;  %6341 = vmatmul.msk.f32.vlgmr.msrb.gmra.mxu3 %vm405_vm2, %v3564_v9  ;;  %v2393_v11 = vadd.f32 %v8418_v54, %v2114_v17  ;;  %v2115_v54 = vadd.f32 %v8425_v48, %v8267_v45  ;;  %v8840_v17 = vld [vmem:[#allocation3 + $0x1a] sm:$0xff] }
 0x33a   : > { %6374 = vmatmul.msk.f32.gmra.mxu0 %vm405_vm2, %v8549_v0  ;;  %v3565_v0 = vld [vmem:[#allocation3 + $0xa] sm:$0xff] }
 0x33b   : > { %10458 = vst [vmem:[#allocation64_spill] sm:$0xff] %v8799_v59  ;;  %v10198_v5 = vmax.f32 %v8799_v59, 0.0  ;;  %v8818_v9 = vpop.f32.mrf.mxu1 }
 0x33c   : > { %v2606_v40 = vpop.f32.mrf.mxu3  ;;  %v3121_v2 = vld [vmem:[#allocation3 + $0xc1] sm:$0xff] }
 0x33d   : > { %v8806_v52 = vld [vmem:[#allocation3 + $0xc0] sm:$0xff]  ;;  %3048 = vst.msk [vmem:[#allocation3 + $0xc9] sm:$0xff] %vm405_vm2, %v10198_v5  ;;  %v2670_v10 = vadd.f32 %v2606_v40, %v2392_v51  ;;  %6293 = vmatmul.msk.f32.gmra.mxu1 %vm405_vm2, %v3121_v2 }
 0x33e   : > { %6325 = vmatmul.msk.f32.gmra.mxu2 %vm405_vm2, %v8806_v52 }
 0x33f   : > { %v2948_v38 = vadd.f32 %v2884_v33, %v2670_v10  ;;  %v2890_v18 = vpop.f32.mrf.mxu0 }
 0x341   : > { %v8821_v19 = vadd.f32 %v8479_v41, %v2948_v38  ;;  %6342 = vmatmul.msk.f32.gmra.mxu3 %vm405_vm2, %v3565_v0  ;;  %v8838_v0 = vpop.f32.mrf.mxu2 }
 0x342   : > { %6375 = vmatmul.msk.f32.gmra.mxu0 %vm405_vm2, %v8566_v7  ;;  %v4131_v7 = vld [vmem:[#allocation9 + $0x110] sm:$0xff] }
 0x343   : > { %10459 = vst [vmem:[#allocation18_spill] sm:$0xff] %v8821_v19  ;;  %v10199_v51 = vmax.f32 %v8821_v19, 0.0  ;;  %4246 = vmatpush.msrb.mxu1 %v4131_v7 }
 0x344   : > { %v2609_v40 = vpop.f32.mrf.mxu3  ;;  %v3122_v2 = vld [vmem:[#allocation3 + $0xc9] sm:$0xff] }
 0x345   : > { %v8828_v5 = vld [vmem:[#allocation3 + $0xc8] sm:$0xff]  ;;  %3049 = vst.msk [vmem:[#allocation3 + $0xd9] sm:$0xff] %vm405_vm2, %v10199_v51  ;;  %v2671_v31 = vadd.f32 %v2609_v40, %v2393_v11  ;;  %6294 = vmatmul.msk.f32.gmra.mxu1 %vm405_vm2, %v3122_v2  ;;  %v2394_v40 = vadd.f32 %v8448_v22, %v2115_v54 }
 0x346   : > { %6326 = vmatmul.msk.f32.gmra.mxu2 %vm405_vm2, %v8828_v5  ;;  %v8861_v54 = vld [vmem:[#allocation3 + $0x22] sm:$0xff] }
 0x347   : > { %v2949_v33 = vadd.f32 %v2887_v39, %v2671_v31  ;;  %v2893_v10 = vpop.f32.mrf.mxu0 }
 0x349   : > { %v8843_v38 = vadd.f32 %v8479_v41, %v2949_v33  ;;  %6343 = vmatmul.msk.f32.gmra.mxu3 %vm405_vm2, %v8840_v17 }
 0x34a   : > { %v3265_v11 = vpop.f32.mrf.mxu1  ;;  %6376 = vmatmul.msk.f32.gmra.mxu0 %vm405_vm2, %v8583_v34  ;;  %v2116_v34 = vadd.f32 %v8455_v28, %v8278_v4 }
 0x34b   : > { %10460 = vst [vmem:[#allocation38_spill] sm:$0xff] %v8843_v38  ;;  %v10200_v45 = vmax.f32 %v8843_v38, 0.0  ;;  %v8930_v38 = vld [vmem:[#allocation3 + $0x4a] sm:$0xff] }
 0x34c   : > { %v2612_v48 = vpop.f32.mrf.mxu3  ;;  %v3123_v39 = vld [vmem:[#allocation3 + $0xd9] sm:$0xff] }
 0x34d   : > { %v8851_v2 = vld [vmem:[#allocation3 + $0xd8] sm:$0xff]  ;;  %3050 = vst.msk [vmem:[#allocation3 + $0xe1] sm:$0xff] %vm405_vm2, %v10200_v45  ;;  %v2672_v31 = vadd.f32 %v2612_v48, %v2394_v40  ;;  %6295 = vmatmul.msk.f32.gmra.mxu1 %vm405_vm2, %v3123_v39  ;;  %v2395_v48 = vadd.f32 %v8483_v63, %v2116_v34 }
 0x34e   : > { %6327 = vmatmul.msk.f32.gmra.mxu2 %vm405_vm2, %v8851_v2 }
 0x34f   : > { %v2950_v22 = vadd.f32 %v2890_v18, %v2672_v31  ;;  %v2896_v26 = vpop.f32.mrf.mxu0 }
 0x351   : > { %v3474_v7 = vpop.f32.mrf.mxu2  ;;  %v8864_v33 = vadd.f32 %v8479_v41, %v2950_v22  ;;  %6344 = vmatmul.msk.f32.gmra.mxu3 %vm405_vm2, %v8861_v54  ;;  %v8884_v22 = vld [vmem:[#allocation3 + $0x32] sm:$0xff] }
 0x352   : > { %v8866_v51 = vadd.f32 %v3474_v7, %v3265_v11  ;;  %v3268_v40 = vpop.f32.mrf.mxu1  ;;  %6377 = vmatmul.msk.f32.gmra.mxu0 %vm405_vm2, %v8602_v23  ;;  %v2117_v23 = vadd.f32 %v8489_v44, %v8289_v46 }
 0x353   : > { %10461 = vst [vmem:[#allocation68_spill] sm:$0xff] %v8864_v33  ;;  %v10201_v4 = vmax.f32 %v8864_v33, 0.0 }
 0x354   : > { %v2615_v28 = vpop.f32.mrf.mxu3  ;;  %v3124_v18 = vld [vmem:[#allocation3 + $0xe1] sm:$0xff] }
 0x355   : > { %v8874_v39 = vld [vmem:[#allocation3 + $0xe0] sm:$0xff]  ;;  %3051 = vst.msk [vmem:[#allocation3 + $0xf1] sm:$0xff] %vm405_vm2, %v10201_v4  ;;  %v2673_v11 = vadd.f32 %v2615_v28, %v2395_v48  ;;  %6296 = vmatmul.msk.f32.gmra.mxu1 %vm405_vm2, %v3124_v18  ;;  %v2396_v28 = vadd.f32 %v8516_v30, %v2117_v23 }
 0x356   : > { %6328 = vmatmul.msk.f32.gmra.mxu2 %vm405_vm2, %v8874_v39 }
 0x357   : > { %v2951_v63 = vadd.f32 %v2893_v10, %v2673_v11  ;;  %v2899_v31 = vpop.f32.mrf.mxu0 }
 0x359   : > { %v3477_v34 = vpop.f32.mrf.mxu2  ;;  %v8887_v7 = vadd.f32 %v8479_v41, %v2951_v63  ;;  %6345 = vmatmul.msk.f32.gmra.mxu3 %vm405_vm2, %v8884_v22 }
 0x35a   : > { %v8889_v45 = vadd.f32 %v3477_v34, %v3268_v40  ;;  %v3271_v48 = vpop.f32.mrf.mxu1  ;;  %6378 = vmatmul.msk.f32.gmra.mxu0 %vm405_vm2, %v8621_v1  ;;  %v10463_v1 = vld [vmem:[#allocation40_spill] sm:$0xff]  ;;  %v8907_v34 = vld [vmem:[#allocation3 + $0x3a] sm:$0xff] }
 0x35b   : > { %10462 = vst [vmem:[#allocation67_spill] sm:$0xff] %v8887_v7  ;;  %v10203_v46 = vmax.f32 %v8887_v7, 0.0  ;;  %v2118_v11 = vadd.f32 %v10463_v1, %v8300_v47 }
 0x35c   : > { %v2618_v44 = vpop.f32.mrf.mxu3  ;;  %v3125_v10 = vld [vmem:[#allocation3 + $0xf1] sm:$0xff] }
 0x35d   : > { %v8897_v18 = vld [vmem:[#allocation3 + $0xf0] sm:$0xff]  ;;  %3052 = vst.msk [vmem:[#allocation3 + $0xf9] sm:$0xff] %vm405_vm2, %v10203_v46  ;;  %v2674_v40 = vadd.f32 %v2618_v44, %v2396_v28  ;;  %6297 = vmatmul.msk.f32.gmra.mxu1 %vm405_vm2, %v3125_v10  ;;  %v10465_v44 = vld [vmem:[#allocation60_spill] sm:$0xff] }
 0x35e   : > { %6329 = vmatmul.msk.f32.gmra.mxu2 %vm405_vm2, %v8897_v18  ;;  %v2397_v10 = vadd.f32 %v10465_v44, %v2118_v11  ;;  %v10466_v11 = vld [vmem:[#allocation27_spill] sm:$0xff] }
 0x35f   : > { %v2952_v30 = vadd.f32 %v2896_v26, %v2674_v40  ;;  %v2902_v23 = vpop.f32.mrf.mxu0 }
 0x361   : > { %v3480_v63 = vpop.f32.mrf.mxu2  ;;  %v8910_v4 = vadd.f32 %v8479_v41, %v2952_v30  ;;  %6346 = vmatmul.msk.f32.gmra.mxu3 %vm405_vm2, %v8907_v34  ;;  %v4412_v30 = vld [vmem:[#allocation9 + $0x148] sm:$0xff] }
 0x362   : > { %v8912_v29 = vadd.f32 %v3480_v63, %v3271_v48  ;;  %v3274_v28 = vpop.f32.mrf.mxu1  ;;  %6379 = vmatmul.msk.f32.gmra.mxu0 %vm405_vm2, %v8643_v6  ;;  %v4130_v6 = vld [vmem:[#allocation9 + $0x108] sm:$0xff]  ;;  %4529 = vmatpush.msrb.mxu2 %v4412_v30  ;;  %v10467_v63 = vld [vmem:[#allocation45_spill] sm:$0xff] }
 0x363   : > { %10464 = vst [vmem:[#allocation69_spill] sm:$0xff] %v8910_v4  ;;  %v10207_v47 = vmax.f32 %v8910_v4, 0.0  ;;  %4247 = vmatpush.msrb.mxu1 %v4130_v6  ;;  %v2119_v44 = vadd.f32 %v10467_v63, %v10466_v11  ;;  %v8953_v4 = vld [vmem:[#allocation3 + $0x52] sm:$0xff] }
 0x364   : > { %v2621_v26 = vpop.f32.mrf.mxu3  ;;  %v3126_v40 = vld [vmem:[#allocation3 + $0xf9] sm:$0xff] }
 0x365   : > { %v8920_v1 = vld [vmem:[#allocation3 + $0xf8] sm:$0xff]  ;;  %3053 = vst.msk [vmem:[#allocation3 + $0x109] sm:$0xff] %vm405_vm2, %v10207_v47  ;;  %v2675_v48 = vadd.f32 %v2621_v26, %v2397_v10  ;;  %6298 = vmatmul.msk.f32.gmra.mxu1 %vm405_vm2, %v3126_v40  ;;  %v10469_v40 = vld [vmem:[#allocation47_spill] sm:$0xff] }
 0x366   : > { %6330 = vmatmul.msk.f32.gmra.mxu2 %vm405_vm2, %v8920_v1  ;;  %v2398_v30 = vadd.f32 %v10469_v40, %v2119_v44 }
 0x367   : > { %v2953_v46 = vadd.f32 %v2899_v31, %v2675_v48  ;;  %v2905_v7 = vpop.f32.mrf.mxu0 }
 0x369   : > { %v3483_v33 = vpop.f32.mrf.mxu2  ;;  %v8933_v47 = vadd.f32 %v8479_v41, %v2953_v46  ;;  %6347 = vmatmul.msk.f32.gmra.mxu3 %vm405_vm2, %v8930_v38  ;;  %v10470_v46 = vld [vmem:[#allocation28_spill] sm:$0xff] }
 0x36a   : > { %v8935_v10 = vadd.f32 %v3483_v33, %v3274_v28  ;;  %v3277_v26 = vpop.f32.mrf.mxu1  ;;  %6380 = vmatmul.msk.f32.gmra.mxu0 %vm405_vm2, %v8662_v14  ;;  %v10471_v14 = vld [vmem:[#allocation36_spill] sm:$0xff] }
 0x36b   : > { %10468 = vst [vmem:[#allocation19_spill] sm:$0xff] %v8933_v47  ;;  %v10211_v31 = vmax.f32 %v8933_v47, 0.0  ;;  %v2120_v28 = vadd.f32 %v10471_v14, %v10470_v46 }
 0x36c   : > { %v2624_v48 = vpop.f32.mrf.mxu3  ;;  %v3127_v6 = vld [vmem:[#allocation3 + $0x109] sm:$0xff] }
 0x36d   : > { %v8943_v11 = vld [vmem:[#allocation3 + $0x108] sm:$0xff]  ;;  %3054 = vst.msk [vmem:[#allocation3 + $0x111] sm:$0xff] %vm405_vm2, %v10211_v31  ;;  %v2676_v33 = vadd.f32 %v2624_v48, %v2398_v30  ;;  %6299 = vmatmul.msk.f32.gmra.mxu1 %vm405_vm2, %v3127_v6  ;;  %v10473_v48 = vld [vmem:[#allocation51_spill] sm:$0xff] }
 0x36e   : > { %6331 = vmatmul.msk.f32.gmra.mxu2 %vm405_vm2, %v8943_v11  ;;  %v2399_v6 = vadd.f32 %v10473_v48, %v2120_v28  ;;  %v8976_v31 = vld [vmem:[#allocation3 + $0x62] sm:$0xff] }
 0x36f   : > { %v2954_v63 = vadd.f32 %v2902_v23, %v2676_v33  ;;  %v2908_v44 = vpop.f32.mrf.mxu0 }
 0x371   : > { %v3486_v40 = vpop.f32.mrf.mxu2  ;;  %v8956_v19 = vadd.f32 %v8479_v41, %v2954_v63  ;;  %6348 = vmatmul.msk.f32.gmra.mxu3 %vm405_vm2, %v8953_v4  ;;  %v10474_v63 = vld [vmem:[#allocation26_spill] sm:$0xff] }
 0x372   : > { %v8958_v47 = vadd.f32 %v3486_v40, %v3277_v26  ;;  %v3280_v30 = vpop.f32.mrf.mxu1  ;;  %6381 = vmatmul.msk.f32.gmra.mxu0 %vm405_vm2, %v8681_v37  ;;  %v2121_v37 = vadd.f32 %v8594_v50, %v10474_v63  ;;  %v10476_v63 = vld [vmem:[#allocation48_spill] sm:$0xff] }
 0x373   : > { %10472 = vst [vmem:[#allocation43_spill] sm:$0xff] %v8956_v19  ;;  %v10214_v23 = vmax.f32 %v8956_v19, 0.0 }
 0x374   : > { %v2627_v33 = vpop.f32.mrf.mxu3  ;;  %v3128_v46 = vld [vmem:[#allocation3 + $0x111] sm:$0xff] }
 0x375   : > { %v8966_v14 = vld [vmem:[#allocation3 + $0x110] sm:$0xff]  ;;  %3055 = vst.msk [vmem:[#allocation3 + $0x121] sm:$0xff] %vm405_vm2, %v10214_v23  ;;  %v2677_v26 = vadd.f32 %v2627_v33, %v2399_v6  ;;  %6300 = vmatmul.msk.f32.gmra.mxu1 %vm405_vm2, %v3128_v46  ;;  %v2400_v33 = vadd.f32 %v8611_v13, %v2121_v37 }
 0x376   : > { %6332 = vmatmul.msk.f32.gmra.mxu2 %vm405_vm2, %v8966_v14  ;;  %v8999_v23 = vld [vmem:[#allocation3 + $0x6a] sm:$0xff] }
 0x377   : > { %v2955_v28 = vadd.f32 %v2905_v7, %v2677_v26  ;;  %v2911_v40 = vpop.f32.mrf.mxu0 }
 0x379   : > { %v3489_v48 = vpop.f32.mrf.mxu2  ;;  %v8979_v59 = vadd.f32 %v8479_v41, %v2955_v28  ;;  %6349 = vmatmul.msk.f32.gmra.mxu3 %vm405_vm2, %v8976_v31 }
 0x37a   : > { %v8981_v19 = vadd.f32 %v3489_v48, %v3280_v30  ;;  %v3283_v6 = vpop.f32.mrf.mxu1  ;;  %6382 = vmatmul.msk.f32.gmra.mxu0 %vm405_vm2, %v8703_v20  ;;  %v10477_v20 = vld [vmem:[#allocation42_spill] sm:$0xff] }
 0x37b   : > { %10475 = vst [vmem:[#allocation72_spill] sm:$0xff] %v8979_v59  ;;  %v10217_v50 = vmax.f32 %v8979_v59, 0.0  ;;  %v2122_v28 = vadd.f32 %v10477_v20, %v10476_v63  ;;  %v10480_v20 = vld [vmem:[#allocation56_spill] sm:$0xff] }
 0x37c   : > { %v2630_v7 = vpop.f32.mrf.mxu3  ;;  %v3129_v46 = vld [vmem:[#allocation3 + $0x121] sm:$0xff] }
 0x37d   : > { %v8989_v26 = vld [vmem:[#allocation3 + $0x120] sm:$0xff]  ;;  %3056 = vst.msk [vmem:[#allocation3 + $0x129] sm:$0xff] %vm405_vm2, %v10217_v50  ;;  %v2678_v30 = vadd.f32 %v2630_v7, %v2400_v33  ;;  %6301 = vmatmul.msk.f32.gmra.mxu1 %vm405_vm2, %v3129_v46  ;;  %v2401_v7 = vadd.f32 %v8636_v3, %v2122_v28 }
 0x37e   : > { %6333 = vmatmul.msk.f32.gmra.mxu2 %vm405_vm2, %v8989_v26  ;;  %v10479_v3 = vld [vmem:[#allocation31_spill] sm:$0xff] }
 0x37f   : > { %v2956_v13 = vadd.f32 %v2908_v44, %v2678_v30  ;;  %v2914_v37 = vpop.f32.mrf.mxu0  ;;  %v2123_v28 = vadd.f32 %v10480_v20, %v10479_v3 }
 0x381   : > { %v3492_v48 = vpop.f32.mrf.mxu2  ;;  %v9002_v8 = vadd.f32 %v8479_v41, %v2956_v13  ;;  %6350 = vmatmul.msk.f32.gmra.mxu3 %vm405_vm2, %v8999_v23 }
 0x382   : > { %v9004_v59 = vadd.f32 %v3492_v48, %v3283_v6  ;;  %v3286_v33 = vpop.f32.mrf.mxu1  ;;  %6383 = vmatmul.msk.f32.gmra.mxu0 %vm405_vm2, %v8724_v60  ;;  %v4411_v6 = vld [vmem:[#allocation9 + $0x140] sm:$0xff] }
 0x383   : > { %10478 = vst [vmem:[#allocation71_spill] sm:$0xff] %v9002_v8  ;;  %v10219_v44 = vmax.f32 %v9002_v8, 0.0  ;;  %v4129_v60 = vld [vmem:[#allocation9 + $0x100] sm:$0xff]  ;;  %4530 = vmatpush.msrb.mxu2 %v4411_v6 }
 0x384   : > { %v2633_v46 = vpop.f32.mrf.mxu3  ;;  %v3130_v30 = vld [vmem:[#allocation3 + $0x129] sm:$0xff]  ;;  %4248 = vmatpush.msrb.mxu1 %v4129_v60 }
 0x385   : > { %v9012_v63 = vld [vmem:[#allocation3 + $0x128] sm:$0xff]  ;;  %3057 = vst.msk [vmem:[#allocation3 + $0x139] sm:$0xff] %vm405_vm2, %v10219_v44  ;;  %v2679_v41 = vadd.f32 %v2633_v46, %v2401_v7  ;;  %6302 = vmatmul.msk.f32.gmra.mxu1 %vm405_vm2, %v3130_v30  ;;  %v9027_v7 = vld [vmem:[%s10100_s2] ss:$0 sm:$0xff] }
 0x386   : > { %6334 = vmatmul.msk.f32.gmra.mxu2 %vm405_vm2, %v9012_v63  ;;  %v9050_v44 = vld [vmem:[#allocation3 + $0x82] sm:$0xff] }
 0x387   : > { %v2957_v13 = vadd.f32 %v2911_v40, %v2679_v41  ;;  %v2917_v48 = vpop.f32.mrf.mxu0  ;;  %v2402_v40 = vadd.f32 %v8660_v55, %v2123_v28 }
 0x389   : > { %v3495_v50 = vpop.f32.mrf.mxu2  ;;  %v9030_v46 = vadd.f32 %v9027_v7, %v2957_v13  ;;  %6351 = vmatmul.msk.f32.gmra.mxu3 %vm405_vm2, %v9022_v43 }
 0x38a   : > { %v9032_v30 = vadd.f32 %v3495_v50, %v3286_v33  ;;  %v3289_v6 = vpop.f32.mrf.mxu1  ;;  %6384 = vmatmul.msk.f32.gmra.mxu0 %vm405_vm2, %v8745_v25  ;;  %v10482_v33 = vld [vmem:[#allocation58_spill] sm:$0xff] }
 0x38b   : > { %10481 = vst [vmem:[#allocation73_spill] sm:$0xff] %v9030_v46  ;;  %v10222_v41 = vmax.f32 %v9030_v46, 0.0  ;;  %v2124_v25 = vadd.f32 %v8670_v27, %v10482_v33  ;;  %v10484_v33 = vld [vmem:[#allocation32_spill] sm:$0xff] }
 0x38c   : > { %v2636_v60 = vpop.f32.mrf.mxu3  ;;  %v3131_v3 = vld [vmem:[#allocation3 + $0x139] sm:$0xff] }
 0x38d   : > { %v9040_v20 = vld [vmem:[#allocation3 + $0x138] sm:$0xff]  ;;  %3058 = vst.msk [vmem:[#allocation3 + $0x141] sm:$0xff] %vm405_vm2, %v10222_v41  ;;  %v2680_v50 = vadd.f32 %v2636_v60, %v2402_v40  ;;  %6303 = vmatmul.msk.f32.gmra.mxu1 %vm405_vm2, %v3131_v3  ;;  %v2403_v60 = vadd.f32 %v8689_v12, %v2124_v25 }
 0x38e   : > { %6335 = vmatmul.msk.f32.gmra.mxu2 %vm405_vm2, %v9040_v20 }
 0x38f   : > { %v2958_v55 = vadd.f32 %v2914_v37, %v2680_v50  ;;  %v2920_v28 = vpop.f32.mrf.mxu0 }
 0x391   : > { %v3498_v13 = vpop.f32.mrf.mxu2  ;;  %v9053_v8 = vadd.f32 %v9027_v7, %v2958_v55  ;;  %6352 = vmatmul.msk.f32.gmra.mxu3 %vm405_vm2, %v9050_v44 }
 0x392   : > { %v9055_v46 = vadd.f32 %v3498_v13, %v3289_v6  ;;  %v3292_v40 = vpop.f32.mrf.mxu1  ;;  %6385 = vmatmul.msk.f32.gmra.mxu0 %vm405_vm2, %v8764_v35  ;;  %v2125_v35 = vadd.f32 %v8693_v61, %v10484_v33  ;;  %v9073_v13 = vld [vmem:[#allocation3 + $0x92] sm:$0xff]  ;;  %v4701_v33 = vld [vmem:[#allocation9 + $0x1b8] sm:$0xff] }
 0x393   : > { %10483 = vst [vmem:[#allocation20_spill] sm:$0xff] %v9053_v8  ;;  %v10224_v27 = vmax.f32 %v9053_v8, 0.0  ;;  %4806 = vmatpush.msra.mxu3 %v4701_v33 }
 0x394   : > { %v2639_v37 = vpop.f32.mrf.mxu3  ;;  %v3132_v3 = vld [vmem:[#allocation3 + $0x141] sm:$0xff] }
 0x395   : > { %v9063_v50 = vld [vmem:[#allocation3 + $0x140] sm:$0xff]  ;;  %3059 = vst.msk [vmem:[#allocation3 + $0x151] sm:$0xff] %vm405_vm2, %v10224_v27  ;;  %v2681_v6 = vadd.f32 %v2639_v37, %v2403_v60  ;;  %6304 = vmatmul.msk.f32.gmra.mxu1 %vm405_vm2, %v3132_v3  ;;  %v2404_v37 = vadd.f32 %v8713_v24, %v2125_v35  ;;  %v10486_v24 = vld [vmem:[#allocation33_spill] sm:$0xff] }
 0x396   : > { %6336 = vmatmul.msk.f32.gmra.mxu2 %vm405_vm2, %v9063_v50  ;;  %v2126_v35 = vadd.f32 %v8719_v16, %v10486_v24 }
 0x397   : > { %v2959_v12 = vadd.f32 %v2917_v48, %v2681_v6  ;;  %v2923_v25 = vpop.f32.mrf.mxu0 }
 0x398   : > { %v2405_v16 = vadd.f32 %v8738_v42, %v2126_v35 }
 0x399   : > { %v3501_v55 = vpop.f32.mrf.mxu2  ;;  %v9076_v41 = vadd.f32 %v9027_v7, %v2959_v12  ;;  %6353 = vmatmul.msk.f32.gmra.mxu3 %vm405_vm2, %v9073_v13  ;;  %v4983_v12 = vld [vmem:[#allocation9 + $0x1f8] sm:$0xff] }
 0x39a   : > { %v9078_v8 = vadd.f32 %v3501_v55, %v3292_v40  ;;  %v3295_v60 = vpop.f32.mrf.mxu1  ;;  %6386 = vmatmul.msk.f32.gmra.mxu0 %vm405_vm2, %v8784_v21  ;;  %v5578_v21 = vld [vmem:[#allocation10 + $0x18] sm:$0xff] }
 0x39b   : > { %10485 = vst [vmem:[#allocation49_spill] sm:$0xff] %v9076_v41  ;;  %v10227_v61 = vmax.f32 %v9076_v41, 0.0  ;;  %5691 = vmatpush.msra.mxu2 %v5578_v21  ;;  %5088 = vmatpush.msra.mxu0 %v4983_v12 }
 0x39c   : > { %v2642_v48 = vpop.f32.mrf.mxu3  ;;  %v3133_v3 = vld [vmem:[#allocation3 + $0x151] sm:$0xff] }
 0x39d   : > { %v9086_v6 = vld [vmem:[#allocation3 + $0x150] sm:$0xff]  ;;  %3060 = vst.msk [vmem:[#allocation3 + $0x159] sm:$0xff] %vm405_vm2, %v10227_v61  ;;  %v2682_v40 = vadd.f32 %v2642_v48, %v2404_v37  ;;  %6305 = vmatmul.msk.f32.gmra.mxu1 %vm405_vm2, %v3133_v3  ;;  %v5265_v3 = vld [vmem:[#allocation9 + $0x238] sm:$0xff] }
 0x39e   : > { %6337 = vmatmul.msk.f32.gmra.mxu2 %vm405_vm2, %v9086_v6  ;;  %5370 = vmatpush.msra.mxu1 %v5265_v3 }
 0x39f   : > { %v2960_v55 = vadd.f32 %v2920_v28, %v2682_v40  ;;  %v2926_v27 = vpop.f32.mrf.mxu0 }
 0x3a1   : > { %v3504_v41 = vpop.f32.mrf.mxu2  ;;  %v9099_v37 = vadd.f32 %v9027_v7, %v2960_v55  ;;  %6354 = vmatmul.msk.f32.gmra.mxu3 %vm405_vm2, %v9096_v49  ;;  %v9119_v55 = vld [vmem:[#allocation3 + $0xaa] sm:$0xff] }
 0x3a2   : > { %v9101_v48 = vadd.f32 %v3504_v41, %v3295_v60  ;;  %v3298_v33 = vpop.f32.mrf.mxu1  ;;  %6387 = vmatmul.msk.f32.gmra.mxu0 %vm405_vm2, %v8806_v52  ;;  %v10487_v52 = vld [vmem:[#allocation29_spill] sm:$0xff] }
 0x3a3   : > { %v10228_v28 = vmax.f32 %v9099_v37, 0.0  ;;  %v2127_v60 = vadd.f32 %v8743_v53, %v10487_v52  ;;  %v10489_v52 = vld [vmem:[#allocation54_spill] sm:$0xff] }
 0x3a4   : > { %v2645_v40 = vpop.f32.mrf.mxu3  ;;  %v3134_v21 = vld [vmem:[#allocation3 + $0x159] sm:$0xff] }
 0x3a5   : > { %v9109_v12 = vld [vmem:[#allocation3 + $0x158] sm:$0xff]  ;;  %3061 = vst.msk [vmem:[#allocation3 + $0x169] sm:$0xff] %vm405_vm2, %v10228_v28  ;;  %v2683_v41 = vadd.f32 %v2645_v40, %v2405_v16  ;;  %6306 = vmatmul.msk.f32.gmra.mxu1 %vm405_vm2, %v3134_v21  ;;  %v2406_v40 = vadd.f32 %v8762_v32, %v2127_v60 }
 0x3a6   : > { %6338 = vmatmul.msk.f32.gmra.mxu2 %vm405_vm2, %v9109_v12 }
 0x3a7   : > { %v2961_v42 = vadd.f32 %v2923_v25, %v2683_v41  ;;  %v2929_v24 = vpop.f32.mrf.mxu0 }
 0x3a9   : > { %v3507_v35 = vpop.f32.mrf.mxu2  ;;  %v9122_v3 = vadd.f32 %v9027_v7, %v2961_v42  ;;  %6355 = vmatmul.msk.f32.gmra.mxu3 %vm405_vm2, %v9119_v55 }
 0x3aa   : > { %v9124_v61 = vadd.f32 %v3507_v35, %v3298_v33  ;;  %v3301_v16 = vpop.f32.mrf.mxu1  ;;  %6388 = vmatmul.msk.f32.gmra.mxu0 %vm405_vm2, %v8828_v5  ;;  %v2128_v5 = vadd.f32 %v8772_v57, %v10489_v52  ;;  %v9142_v35 = vld [vmem:[#allocation3 + $0xb2] sm:$0xff]  ;;  %v4700_v52 = vld [vmem:[#allocation9 + $0x1b0] sm:$0xff] }
 0x3ab   : > { %10488 = vst [vmem:[#allocation74_spill] sm:$0xff] %v9122_v3  ;;  %v10230_v53 = vmax.f32 %v9122_v3, 0.0  ;;  %4807 = vmatpush.msra.mxu3 %v4700_v52  ;;  %v4982_v52 = vld [vmem:[#allocation9 + $0x1f0] sm:$0xff] }
 0x3ac   : > { %v2648_v25 = vpop.f32.mrf.mxu3  ;;  %v3135_v21 = vld [vmem:[#allocation3 + $0x169] sm:$0xff]  ;;  %5089 = vmatpush.msra.mxu0 %v4982_v52 }
 0x3ad   : > { %v9132_v41 = vld [vmem:[#allocation3 + $0x168] sm:$0xff]  ;;  %3062 = vst.msk [vmem:[#allocation3 + $0x171] sm:$0xff] %vm405_vm2, %v10230_v53  ;;  %v2684_v33 = vadd.f32 %v2648_v25, %v2406_v40  ;;  %6307 = vmatmul.msk.f32.gmra.mxu1 %vm405_vm2, %v3135_v21  ;;  %v2407_v25 = vadd.f32 %v8792_v58, %v2128_v5 }
 0x3ae   : > { %6339 = vmatmul.msk.f32.gmra.mxu2 %vm405_vm2, %v9132_v41 }
 0x3af   : > { %v2962_v32 = vadd.f32 %v2926_v27, %v2684_v33  ;;  %v4000_v60 = vpop.f32.mrf.mxu0 }
 0x3b1   : > { %v3510_v42 = vpop.f32.mrf.mxu2  ;;  %v9145_v28 = vadd.f32 %v9027_v7, %v2962_v32  ;;  %6356 = vmatmul.msk.f32.gmra.mxu3 %vm405_vm2, %v9142_v35  ;;  %v9163_v32 = vld [vmem:[#allocation3 + $0xc2] sm:$0xff] }
 0x3b2   : > { %v9147_v3 = vadd.f32 %v3510_v42, %v3301_v16  ;;  %v3304_v40 = vpop.f32.mrf.mxu1  ;;  %6389 = vmatmul.msk.f32.gmra.mxu0 %vm405_vm2, %v8851_v2 }
 0x3b3   : > { %v10232_v57 = vmax.f32 %v9145_v28, 0.0 }
 0x3b4   : > { %v2651_v27 = vpop.f32.mrf.mxu3  ;;  %v3136_v21 = vld [vmem:[#allocation3 + $0x171] sm:$0xff] }
 0x3b5   : > { %v9155_v33 = vld [vmem:[#allocation3 + $0x170] sm:$0xff]  ;;  %3063 = vst.msk [vmem:[#allocation3 + $0x181] sm:$0xff] %vm405_vm2, %v10232_v57  ;;  %v2685_v16 = vadd.f32 %v2651_v27, %v2407_v25  ;;  %6308 = vmatmul.msk.f32.gmra.mxu1 %vm405_vm2, %v3136_v21  ;;  %v3469_v27 = vadd.f32 %v8814_v62, %v8794_v15 }
 0x3b6   : > { %6340 = vmatmul.msk.f32.gmra.mxu2 %vm405_vm2, %v9155_v33  ;;  %v9187_v62 = vld [vmem:[#allocation3 + $0xca] sm:$0xff] }
 0x3b7   : > { %v2963_v2 = vadd.f32 %v2929_v24, %v2685_v16  ;;  %v4003_v58 = vpop.f32.mrf.mxu0 }
 0x3b9   : > { %v3513_v5 = vpop.f32.mrf.mxu2  ;;  %v9166_v42 = vadd.f32 %v9027_v7, %v2963_v2  ;;  %6357 = vmatmul.msk.f32.gmra.mxu3 %vm405_vm2, %v9163_v32 }
 0x3ba   : > { %v9168_v53 = vadd.f32 %v3513_v5, %v3304_v40  ;;  %v3307_v25 = vpop.f32.mrf.mxu1  ;;  %6390 = vmatmul.msk.f32.gmra.mxu0 %vm405_vm2, %v8874_v39  ;;  %v10490_v40 = vld [vmem:[#allocation37_spill] sm:$0xff] }
 0x3bb   : > { %v10231_v24 = vmax.f32 %v9166_v42, 0.0  ;;  %v10491_v16 = vmax.f32 %v10490_v40, 0.0 }
 0x3bc   : > { %v3718_v21 = vpop.f32.mrf.mxu3 }
 0x3bd   : > { %3064 = vst.msk [vmem:[#allocation3 + $0x189] sm:$0xff] %vm405_vm2, %v10231_v24  ;;  %v3814_v7 = vadd.f32 %v3718_v21, %v3469_v27  ;;  %6405 = vmatmul.msk.f32.vlgmr.msrb.gmra.mxu1 %vm405_vm2, %v10491_v16  ;;  %v5264_v27 = vld [vmem:[#allocation9 + $0x230] sm:$0xff] }
 0x3be   : > { %6437 = vmatmul.msk.f32.vlgmr.msrb.gmra.mxu2 %vm405_vm2, %v8840_v17  ;;  %5371 = vmatpush.msra.mxu1 %v5264_v27  ;;  %v3472_v17 = vadd.f32 %v8838_v0, %v8818_v9  ;;  %v9204_v24 = vld [vmem:[#allocation3 + $0xda] sm:$0xff] }
 0x3bf   : > { %v4006_v39 = vpop.f32.mrf.mxu0  ;;  %v9185_v2 = vadd.f32 %v4000_v60, %v3814_v7  ;;  %v10492_v7 = vld [vmem:[#allocation39_spill] sm:$0xff] }
 0x3c0   : > { %v10493_v16 = vmax.f32 %v10492_v7, 0.0 }
 0x3c1   : > { %v3516_v15 = vpop.f32.mrf.mxu2  ;;  %6358 = vmatmul.msk.f32.gmra.mxu3 %vm405_vm2, %v9187_v62 }
 0x3c2   : > { %v9189_v5 = vadd.f32 %v3516_v15, %v3307_v25  ;;  %v3310_v21 = vpop.f32.mrf.mxu1  ;;  %6391 = vmatmul.msk.f32.gmra.mxu0 %vm405_vm2, %v8897_v18 }
 0x3c4   : > { %v3721_v40 = vpop.f32.mrf.mxu3 }
 0x3c5   : > { %v3815_v60 = vadd.f32 %v3721_v40, %v3472_v17  ;;  %6406 = vmatmul.msk.f32.gmra.mxu1 %vm405_vm2, %v10493_v16  ;;  %v10494_v17 = vld [vmem:[#allocation30_spill] sm:$0xff] }
 0x3c6   : > { %6438 = vmatmul.msk.f32.gmra.mxu2 %vm405_vm2, %v8861_v54  ;;  %v10495_v54 = vmax.f32 %v10494_v17, 0.0  ;;  %v9236_v17 = vld [vmem:[#allocation3 + $0xf2] sm:$0xff] }
 0x3c7   : > { %v4009_v25 = vpop.f32.mrf.mxu0  ;;  %v9202_v52 = vadd.f32 %v4003_v58, %v3815_v60  ;;  %v9220_v60 = vld [vmem:[#allocation3 + $0xe2] sm:$0xff] }
 0x3c9   : > { %v3519_v15 = vpop.f32.mrf.mxu2  ;;  %6359 = vmatmul.msk.f32.gmra.mxu3 %vm405_vm2, %v9204_v24 }
 0x3ca   : > { %v9206_v18 = vadd.f32 %v3519_v15, %v3310_v21  ;;  %v3313_v9 = vpop.f32.mrf.mxu1  ;;  %6392 = vmatmul.msk.f32.gmra.mxu0 %vm405_vm2, %v8920_v1  ;;  %v10496_v15 = vld [vmem:[#allocation44_spill] sm:$0xff] }
 0x3cc   : > { %v3724_v0 = vpop.f32.mrf.mxu3 }
 0x3cd   : > { %v3816_v27 = vadd.f32 %v3724_v0, %v8866_v51  ;;  %6407 = vmatmul.msk.f32.gmra.mxu1 %vm405_vm2, %v10495_v54 }
 0x3ce   : > { %6439 = vmatmul.msk.f32.gmra.mxu2 %vm405_vm2, %v8884_v22  ;;  %v10497_v22 = vmax.f32 %v10496_v15, 0.0 }
 0x3cf   : > { %v4012_v58 = vpop.f32.mrf.mxu0  ;;  %v9218_v21 = vadd.f32 %v4006_v39, %v3816_v27  ;;  %v4699_v39 = vld [vmem:[#allocation9 + $0x1a8] sm:$0xff] }
 0x3d0   : > { %4808 = vmatpush.msra.mxu3 %v4699_v39  ;;  %v9252_v39 = vld [vmem:[#allocation3 + $0xfa] sm:$0xff] }
 0x3d1   : > { %v3522_v40 = vpop.f32.mrf.mxu2  ;;  %6360 = vmatmul.msk.f32.gmra.mxu3 %vm405_vm2, %v9220_v60 }
 0x3d2   : > { %v9222_v7 = vadd.f32 %v3522_v40, %v3313_v9  ;;  %v3316_v1 = vpop.f32.mrf.mxu1  ;;  %6393 = vmatmul.msk.f32.gmra.mxu0 %vm405_vm2, %v8943_v11  ;;  %v10498_v40 = vld [vmem:[#allocation65_spill] sm:$0xff] }
 0x3d4   : > { %v3727_v51 = vpop.f32.mrf.mxu3 }
 0x3d5   : > { %v3817_v16 = vadd.f32 %v3727_v51, %v8889_v45  ;;  %6408 = vmatmul.msk.f32.gmra.mxu1 %vm405_vm2, %v10497_v22  ;;  %v10499_v51 = vmax.f32 %v10498_v40, 0.0  ;;  %v10500_v40 = vld [vmem:[#allocation50_spill] sm:$0xff] }
 0x3d6   : > { %6440 = vmatmul.msk.f32.gmra.mxu2 %vm405_vm2, %v8907_v34 }
 0x3d7   : > { %v4015_v9 = vpop.f32.mrf.mxu0  ;;  %v9234_v0 = vadd.f32 %v4009_v25, %v3817_v16  ;;  %v5577_v25 = vld [vmem:[#allocation10 + $0x10] sm:$0xff] }
 0x3d8   : > { %5692 = vmatpush.msra.mxu2 %v5577_v25  ;;  %v9268_v25 = vld [vmem:[#allocation3 + $0x10a] sm:$0xff] }
 0x3d9   : > { %v3525_v27 = vpop.f32.mrf.mxu2  ;;  %6361 = vmatmul.msk.f32.gmra.mxu3 %vm405_vm2, %v9236_v17 }
 0x3da   : > { %v9238_v54 = vadd.f32 %v3525_v27, %v3316_v1  ;;  %v3319_v45 = vpop.f32.mrf.mxu1  ;;  %6394 = vmatmul.msk.f32.gmra.mxu0 %vm405_vm2, %v8966_v14  ;;  %v4981_v1 = vld [vmem:[#allocation9 + $0x1e8] sm:$0xff] }
 0x3db   : > { %5090 = vmatpush.msra.mxu0 %v4981_v1 }
 0x3dc   : > { %v3730_v11 = vpop.f32.mrf.mxu3 }
 0x3dd   : > { %v3818_v34 = vadd.f32 %v3730_v11, %v8912_v29  ;;  %6409 = vmatmul.msk.f32.gmra.mxu1 %vm405_vm2, %v10499_v51  ;;  %v5263_v29 = vld [vmem:[#allocation9 + $0x228] sm:$0xff] }
 0x3de   : > { %6441 = vmatmul.msk.f32.gmra.mxu2 %vm405_vm2, %v8930_v38  ;;  %5372 = vmatpush.msra.mxu1 %v5263_v29  ;;  %v10502_v29 = vld [vmem:[#allocation53_spill] sm:$0xff] }
 0x3df   : > { %v4018_v16 = vpop.f32.mrf.mxu0  ;;  %v9250_v15 = vadd.f32 %v4012_v58, %v3818_v34  ;;  %v10501_v58 = vmax.f32 %v10500_v40, 0.0 }
 0x3e1   : > { %v3528_v22 = vpop.f32.mrf.mxu2  ;;  %6362 = vmatmul.msk.f32.gmra.mxu3 %vm405_vm2, %v9252_v39 }
 0x3e2   : > { %v9254_v14 = vadd.f32 %v3528_v22, %v3319_v45  ;;  %v3322_v27 = vpop.f32.mrf.mxu1  ;;  %6395 = vmatmul.msk.f32.gmra.mxu0 %vm405_vm2, %v8989_v26 }
 0x3e4   : > { %v3733_v38 = vpop.f32.mrf.mxu3 }
 0x3e5   : > { %v3819_v11 = vadd.f32 %v3733_v38, %v8935_v10  ;;  %6410 = vmatmul.msk.f32.gmra.mxu1 %vm405_vm2, %v10501_v58 }
 0x3e6   : > { %6442 = vmatmul.msk.f32.gmra.mxu2 %vm405_vm2, %v8953_v4  ;;  %v10503_v4 = vmax.f32 %v10502_v29, 0.0  ;;  %v9300_v29 = vld [vmem:[#allocation3 + $0x122] sm:$0xff] }
 0x3e7   : > { %v4021_v45 = vpop.f32.mrf.mxu0  ;;  %v9266_v34 = vadd.f32 %v4015_v9, %v3819_v11  ;;  %v9284_v11 = vld [vmem:[#allocation3 + $0x112] sm:$0xff] }
 0x3e9   : > { %v3531_v51 = vpop.f32.mrf.mxu2  ;;  %6363 = vmatmul.msk.f32.gmra.mxu3 %vm405_vm2, %v9268_v25 }
 0x3ea   : > { %v9270_v1 = vadd.f32 %v3531_v51, %v3322_v27  ;;  %v3325_v26 = vpop.f32.mrf.mxu1  ;;  %6396 = vmatmul.msk.f32.gmra.mxu0 %vm405_vm2, %v9012_v63  ;;  %v10504_v51 = vld [vmem:[#allocation57_spill] sm:$0xff] }
 0x3ec   : > { %v3736_v10 = vpop.f32.mrf.mxu3 }
 0x3ed   : > { %v3820_v22 = vadd.f32 %v3736_v10, %v8958_v47  ;;  %6411 = vmatmul.msk.f32.gmra.mxu1 %vm405_vm2, %v10503_v4 }
 0x3ee   : > { %6443 = vmatmul.msk.f32.gmra.mxu2 %vm405_vm2, %v8976_v31  ;;  %v10505_v31 = vmax.f32 %v10504_v51, 0.0 }
 0x3ef   : > { %v4024_v9 = vpop.f32.mrf.mxu0  ;;  %v9282_v27 = vadd.f32 %v4018_v16, %v3820_v22  ;;  %v4698_v16 = vld [vmem:[#allocation9 + $0x1a0] sm:$0xff] }
 0x3f0   : > { %4809 = vmatpush.msra.mxu3 %v4698_v16 }
 0x3f1   : > { %v3534_v38 = vpop.f32.mrf.mxu2  ;;  %6364 = vmatmul.msk.f32.gmra.mxu3 %vm405_vm2, %v9284_v11 }
 0x3f2   : > { %v9286_v40 = vadd.f32 %v3534_v38, %v3325_v26  ;;  %v3328_v63 = vpop.f32.mrf.mxu1  ;;  %6397 = vmatmul.msk.f32.gmra.mxu0 %vm405_vm2, %v9040_v20  ;;  %v10506_v38 = vld [vmem:[#allocation59_spill] sm:$0xff] }
 0x3f4   : > { %v3739_v47 = vpop.f32.mrf.mxu3 }
 0x3f5   : > { %v3821_v58 = vadd.f32 %v3739_v47, %v8981_v19  ;;  %6412 = vmatmul.msk.f32.gmra.mxu1 %vm405_vm2, %v10505_v31  ;;  %v10507_v47 = vmax.f32 %v10506_v38, 0.0  ;;  %v9316_v31 = vld [vmem:[#allocation3 + $0x12a] sm:$0xff]  ;;  %v9332_v38 = vld [vmem:[#allocation3 + $0x13a] sm:$0xff] }
 0x3f6   : > { %6444 = vmatmul.msk.f32.gmra.mxu2 %vm405_vm2, %v8999_v23 }
 0x3f7   : > { %v4027_v26 = vpop.f32.mrf.mxu0  ;;  %v9298_v10 = vadd.f32 %v4021_v45, %v3821_v58  ;;  %v4980_v45 = vld [vmem:[#allocation9 + $0x1e0] sm:$0xff] }
 0x3f8   : > { %5091 = vmatpush.msra.mxu0 %v4980_v45 }
 0x3f9   : > { %v3537_v22 = vpop.f32.mrf.mxu2  ;;  %6365 = vmatmul.msk.f32.gmra.mxu3 %vm405_vm2, %v9300_v29 }
 0x3fa   : > { %v9302_v4 = vadd.f32 %v3537_v22, %v3328_v63  ;;  %v3331_v19 = vpop.f32.mrf.mxu1  ;;  %6398 = vmatmul.msk.f32.gmra.mxu0 %vm405_vm2, %v9063_v50 }
 0x3fc   : > { %v3742_v20 = vpop.f32.mrf.mxu3 }
 0x3fd   : > { %v3822_v23 = vadd.f32 %v3742_v20, %v9004_v59  ;;  %6413 = vmatmul.msk.f32.gmra.mxu1 %vm405_vm2, %v10507_v47  ;;  %v5262_v59 = vld [vmem:[#allocation9 + $0x220] sm:$0xff] }
 0x3fe   : > { %6445 = vmatmul.msk.f32.gmra.mxu2 %vm405_vm2, %v9022_v43  ;;  %5373 = vmatpush.msra.mxu1 %v5262_v59 }
 0x3ff   : > { %v4030_v63 = vpop.f32.mrf.mxu0  ;;  %v9314_v58 = vadd.f32 %v4024_v9, %v3822_v23  ;;  %v10508_v9 = vmax.f32 %v8675_v56, 0.0 }
 0x401   : > { %v3540_v51 = vpop.f32.mrf.mxu2  ;;  %6366 = vmatmul.msk.f32.gmra.mxu3 %vm405_vm2, %v9316_v31 }
 0x402   : > { %v9318_v16 = vadd.f32 %v3540_v51, %v3331_v19  ;;  %v3334_v50 = vpop.f32.mrf.mxu1  ;;  %6399 = vmatmul.msk.f32.gmra.mxu0 %vm405_vm2, %v9086_v6 }
 0x404   : > { %v3745_v43 = vpop.f32.mrf.mxu3 }
 0x405   : > { %v3823_v22 = vadd.f32 %v3745_v43, %v9032_v30  ;;  %6414 = vmatmul.msk.f32.gmra.mxu1 %vm405_vm2, %v10508_v9  ;;  %v10510_v9 = vld [vmem:[#allocation17_spill] sm:$0xff] }
 0x406   : > { %6446 = vmatmul.msk.f32.gmra.mxu2 %vm405_vm2, %v9050_v44  ;;  %v10509_v44 = vmax.f32 %v8696_v36, 0.0 }
 0x407   : > { %v4033_v19 = vpop.f32.mrf.mxu0  ;;  %v9330_v20 = vadd.f32 %v4027_v26, %v3823_v22  ;;  %v4979_v26 = vld [vmem:[#allocation9 + $0x1d8] sm:$0xff] }
 0x408   : > { %5092 = vmatpush.msra.mxu0 %v4979_v26 }
 0x409   : > { %v3543_v23 = vpop.f32.mrf.mxu2  ;;  %6367 = vmatmul.msk.f32.gmra.mxu3 %vm405_vm2, %v9332_v38 }
 0x40a   : > { %v9334_v47 = vadd.f32 %v3543_v23, %v3334_v50  ;;  %v3337_v6 = vpop.f32.mrf.mxu1  ;;  %6400 = vmatmul.msk.f32.gmra.mxu0 %vm405_vm2, %v9109_v12  ;;  %v9348_v50 = vld [vmem:[#allocation3 + $0x142] sm:$0xff]  ;;  %v10511_v23 = vmax.f32 %v10510_v9, 0.0 }
 0x40b   : > { %v4697_v12 = vld [vmem:[#allocation9 + $0x198] sm:$0xff] }
 0x40c   : > { %v3748_v56 = vpop.f32.mrf.mxu3  ;;  %4810 = vmatpush.msra.mxu3 %v4697_v12 }
 0x40d   : > { %v3824_v30 = vadd.f32 %v3748_v56, %v9055_v46  ;;  %6415 = vmatmul.msk.f32.gmra.mxu1 %vm405_vm2, %v10509_v44  ;;  %v4978_v46 = vld [vmem:[#allocation9 + $0x1d0] sm:$0xff]  ;;  %v4976_v56 = vld [vmem:[#allocation9 + $0x1c0] sm:$0xff] }
 0x40e   : > { %6447 = vmatmul.msk.f32.gmra.mxu2 %vm405_vm2, %v9073_v13  ;;  %5093 = vmatpush.msra.mxu0 %v4978_v46  ;;  %v4977_v13 = vld [vmem:[#allocation9 + $0x1c8] sm:$0xff]  ;;  %v4694_v46 = vld [vmem:[#allocation9 + $0x180] sm:$0xff] }
 0x40f   : > { %v4036_v45 = vpop.f32.mrf.mxu0  ;;  %v9346_v51 = vadd.f32 %v4030_v63, %v3824_v30  ;;  %v4695_v30 = vld [vmem:[#allocation9 + $0x188] sm:$0xff] }
 0x410   : > { %5094 = vmatpush.msra.mxu0 %v4977_v13  ;;  %v10512_v13 = vld [vmem:[#allocation34_spill] sm:$0xff] }
 0x411   : > { %v3546_v59 = vpop.f32.mrf.mxu2  ;;  %6368 = vmatmul.msk.f32.gmra.mxu3 %vm405_vm2, %v9348_v50 }
 0x412   : > { %v9350_v43 = vadd.f32 %v3546_v59, %v3337_v6  ;;  %v3340_v36 = vpop.f32.mrf.mxu1  ;;  %6401 = vmatmul.msk.f32.gmra.mxu0 %vm405_vm2, %v9132_v41  ;;  %v4696_v6 = vld [vmem:[#allocation9 + $0x190] sm:$0xff]  ;;  %v9364_v59 = vld [vmem:[#allocation3 + $0x152] sm:$0xff] }
 0x413   : > { %4811 = vmatpush.msra.mxu3 %v4696_v6  ;;  %5095 = vmatpush.msra.mxu0 %v4976_v56  ;;  %v9380_v6 = vld [vmem:[#allocation3 + $0x15a] sm:$0xff]  ;;  %v5261_v56 = vld [vmem:[#allocation9 + $0x218] sm:$0xff] }
 0x414   : > { %v3751_v22 = vpop.f32.mrf.mxu3  ;;  %5374 = vmatpush.msra.mxu1 %v5261_v56  ;;  %v10517_v56 = vld [vmem:[#allocation62_spill] sm:$0xff] }
 0x415   : > { %v3825_v63 = vadd.f32 %v3751_v22, %v9078_v8  ;;  %6416 = vmatmul.msk.f32.gmra.mxu1 %vm405_vm2, %v10511_v23  ;;  %4812 = vmatpush.msra.mxu3 %v4695_v30  ;;  %v10513_v22 = vmax.f32 %v10512_v13, 0.0  ;;  %v9398_v13 = vld [vmem:[#allocation3 + $0x16a] sm:$0xff] }
 0x416   : > { %6448 = vmatmul.msk.f32.gmra.mxu2 %vm405_vm2, %v9096_v49 }
 0x417   : > { %v4039_v41 = vpop.f32.mrf.mxu0  ;;  %v9362_v44 = vadd.f32 %v4033_v19, %v3825_v63  ;;  %4813 = vmatpush.msra.mxu3 %v4694_v46 }
 0x419   : > { %v3549_v26 = vpop.f32.mrf.mxu2  ;;  %6369 = vmatmul.msk.f32.gmra.mxu3 %vm405_vm2, %v9364_v59 }
 0x41a   : > { %v9366_v8 = vadd.f32 %v3549_v26, %v3340_v36  ;;  %v3343_v49 = vpop.f32.mrf.mxu1  ;;  %6402 = vmatmul.msk.f32.gmra.mxu0 %vm405_vm2, %v9155_v33  ;;  %v5576_v36 = vld [vmem:[#allocation10 + $0x8] sm:$0xff]  ;;  %v10514_v26 = vld [vmem:[#allocation63_spill] sm:$0xff] }
 0x41b   : > { %5693 = vmatpush.msra.mxu2 %v5576_v36  ;;  %v10515_v46 = vmax.f32 %v10514_v26, 0.0  ;;  %v9404_v36 = vld [vmem:[#allocation3 + $0x188] sm:$0xff]  ;;  %v9416_v26 = vld [vmem:[#allocation3 + $0x172] sm:$0xff] }
 0x41c   : > { %v3754_v12 = vpop.f32.mrf.mxu3  ;;  %10516 = vst [vmem:[#allocation75_spill] sm:$0xff] %v9404_v36 }
 0x41d   : > { %v3826_v19 = vadd.f32 %v3754_v12, %v9101_v48  ;;  %6417 = vmatmul.msk.f32.gmra.mxu1 %vm405_vm2, %v10513_v22  ;;  %v9386_v48 = vld [vmem:[#allocation3 + $0x180] sm:$0xff] }
 0x41e   : > { %6449 = vmatmul.msk.f32.gmra.mxu2 %vm405_vm2, %v9119_v55 }
 0x41f   : > { %v4042_v63 = vpop.f32.mrf.mxu0  ;;  %v9378_v9 = vadd.f32 %v4036_v45, %v3826_v19 }
 0x421   : > { %v3552_v23 = vpop.f32.mrf.mxu2  ;;  %6370 = vmatmul.msk.f32.gmra.mxu3 %vm405_vm2, %v9380_v6 }
 0x422   : > { %v9382_v33 = vadd.f32 %v3552_v23, %v3343_v49  ;;  %v3346_v30 = vpop.f32.mrf.mxu1  ;;  %6403 = vmatmul.msk.f32.gmra.mxu0 %vm405_vm2, %v9386_v48 }
 0x424   : > { %v3757_v55 = vpop.f32.mrf.mxu3 }
 0x425   : > { %v3827_v45 = vadd.f32 %v3757_v55, %v9124_v61  ;;  %6418 = vmatmul.msk.f32.gmra.mxu1 %vm405_vm2, %v10515_v46 }
 0x426   : > { %6450 = vmatmul.msk.f32.gmra.mxu2 %vm405_vm2, %v9142_v35 }
 0x427   : > { %v4045_v49 = vpop.f32.mrf.mxu0  ;;  %v9396_v12 = vadd.f32 %v4039_v41, %v3827_v45  ;;  %v10518_v41 = vmax.f32 %v10517_v56, 0.0 }
 0x429   : > { %v3555_v19 = vpop.f32.mrf.mxu2  ;;  %6371 = vmatmul.msk.f32.gmra.mxu3 %vm405_vm2, %v9398_v13 }
 0x42a   : > { %v9400_v22 = vadd.f32 %v3555_v19, %v3346_v30  ;;  %v3349_v61 = vpop.f32.mrf.mxu1  ;;  %6404 = vmatmul.msk.f32.gmra.mxu0 %vm405_vm2, %v9404_v36  ;;  %v4943_v19 = vld [vmem:[#allocation3 + $0x31] sm:$0xff] }
 0x42c   : > { %v3760_v23 = vpop.f32.mrf.mxu3 }
 0x42d   : > { %v3828_v35 = vadd.f32 %v3760_v23, %v9147_v3  ;;  %6419 = vmatmul.msk.f32.gmra.mxu1 %vm405_vm2, %v10518_v41  ;;  %v10519_v41 = vld [vmem:[#allocation64_spill] sm:$0xff] }
 0x42e   : > { %6451 = vmatmul.msk.f32.gmra.mxu2 %vm405_vm2, %v9163_v32  ;;  %v10520_v32 = vmax.f32 %v10519_v41, 0.0  ;;  %v10521_v41 = vld [vmem:[#allocation18_spill] sm:$0xff] }
 0x42f   : > { %v4048_v30 = vpop.f32.mrf.mxu0  ;;  %v9414_v55 = vadd.f32 %v4042_v63, %v3828_v35 }
 0x431   : > { %v3558_v45 = vpop.f32.mrf.mxu2  ;;  %6372 = vmatmul.msk.f32.gmra.mxu3 %vm405_vm2, %v9416_v26 }
 0x432   : > { %v9418_v46 = vadd.f32 %v3558_v45, %v3349_v61  ;;  %v3352_v3 = vpop.f32.mrf.mxu1  ;;  %6501 = vmatmul.msk.f32.vlgmr.msra.gmra.mxu0 %vm405_vm2, %v4943_v19  ;;  %v4661_v45 = vld [vmem:[#allocation3 + $0x30] sm:$0xff]  ;;  %v4944_v19 = vld [vmem:[#allocation3 + $0x39] sm:$0xff] }
 0x434   : > { %v3763_v23 = vpop.f32.mrf.mxu3 }
 0x435   : > { %v3829_v56 = vadd.f32 %v3763_v23, %v9168_v53  ;;  %6420 = vmatmul.msk.f32.gmra.mxu1 %vm405_vm2, %v10520_v32  ;;  %v10522_v32 = vmax.f32 %v10521_v41, 0.0 }
 0x436   : > { %6452 = vmatmul.msk.f32.gmra.mxu2 %vm405_vm2, %v9187_v62 }
 0x437   : > { %v4051_v63 = vpop.f32.mrf.mxu0  ;;  %v9429_v61 = vadd.f32 %v4045_v49, %v3829_v56 }
 0x439   : > { %v3561_v35 = vpop.f32.mrf.mxu2  ;;  %6469 = vmatmul.msk.f32.vlgmr.msra.gmra.mxu3 %vm405_vm2, %v4661_v45 }
 0x43a   : > { %v9431_v57 = vadd.f32 %v3561_v35, %v3352_v3  ;;  %v4250_v36 = vpop.f32.mrf.mxu1  ;;  %6502 = vmatmul.msk.f32.gmra.mxu0 %vm405_vm2, %v4944_v19  ;;  %v4662_v35 = vld [vmem:[#allocation3 + $0x38] sm:$0xff]  ;;  %v4945_v19 = vld [vmem:[#allocation3 + $0x49] sm:$0xff] }
 0x43b   : > { %v4346_v62 = vadd.f32 %v4250_v36, %v9185_v2 }
 0x43c   : > { %v3766_v53 = vpop.f32.mrf.mxu3 }
 0x43d   : > { %v3830_v23 = vadd.f32 %v3766_v53, %v9189_v5  ;;  %6421 = vmatmul.msk.f32.gmra.mxu1 %vm405_vm2, %v10522_v32  ;;  %v5260_v5 = vld [vmem:[#allocation9 + $0x210] sm:$0xff]  ;;  %v10523_v32 = vld [vmem:[#allocation38_spill] sm:$0xff] }
 0x43e   : > { %6453 = vmatmul.msk.f32.gmra.mxu2 %vm405_vm2, %v9204_v24  ;;  %5375 = vmatpush.msra.mxu1 %v5260_v5  ;;  %v10524_v2 = vmax.f32 %v10523_v32, 0.0  ;;  %v10525_v32 = vld [vmem:[#allocation68_spill] sm:$0xff] }
 0x43f   : > { %v4054_v49 = vpop.f32.mrf.mxu0  ;;  %v9442_v3 = vadd.f32 %v4048_v30, %v3830_v23 }
 0x441   : > { %v4532_v56 = vpop.f32.mrf.mxu2  ;;  %6470 = vmatmul.msk.f32.gmra.mxu3 %vm405_vm2, %v4662_v35 }
 0x442   : > { %v9444_v45 = vadd.f32 %v4532_v56, %v4346_v62  ;;  %v4253_v53 = vpop.f32.mrf.mxu1  ;;  %6503 = vmatmul.msk.f32.gmra.mxu0 %vm405_vm2, %v4945_v19  ;;  %v4663_v56 = vld [vmem:[#allocation3 + $0x48] sm:$0xff]  ;;  %v4946_v19 = vld [vmem:[#allocation3 + $0x51] sm:$0xff] }
 0x443   : > { %v4347_v36 = vadd.f32 %v4253_v53, %v9202_v52 }
 0x444   : > { %v3769_v41 = vpop.f32.mrf.mxu3 }
 0x445   : > { %v3831_v24 = vadd.f32 %v3769_v41, %v9206_v18  ;;  %6422 = vmatmul.msk.f32.gmra.mxu1 %vm405_vm2, %v10524_v2  ;;  %v4664_v2 = vld [vmem:[#allocation3 + $0x50] sm:$0xff] }
 0x446   : > { %6454 = vmatmul.msk.f32.gmra.mxu2 %vm405_vm2, %v9220_v60  ;;  %v10526_v60 = vmax.f32 %v10525_v32, 0.0  ;;  %v4665_v32 = vld [vmem:[#allocation3 + $0x60] sm:$0xff] }
 0x447   : > { %v4057_v30 = vpop.f32.mrf.mxu0  ;;  %v9455_v23 = vadd.f32 %v4051_v63, %v3831_v24 }
 0x449   : > { %v4535_v62 = vpop.f32.mrf.mxu2  ;;  %6471 = vmatmul.msk.f32.gmra.mxu3 %vm405_vm2, %v4663_v56 }
 0x44a   : > { %v9457_v35 = vadd.f32 %v4535_v62, %v4347_v36  ;;  %v4256_v18 = vpop.f32.mrf.mxu1  ;;  %6504 = vmatmul.msk.f32.gmra.mxu0 %vm405_vm2, %v4946_v19  ;;  %v4947_v62 = vld [vmem:[#allocation3 + $0x61] sm:$0xff] }
 0x44b   : > { %v4348_v52 = vadd.f32 %v4256_v18, %v9218_v21 }
 0x44c   : > { %v3772_v5 = vpop.f32.mrf.mxu3 }
 0x44d   : > { %v3832_v41 = vadd.f32 %v3772_v5, %v9222_v7  ;;  %6423 = vmatmul.msk.f32.gmra.mxu1 %vm405_vm2, %v10526_v60  ;;  %v10527_v5 = vld [vmem:[#allocation67_spill] sm:$0xff] }
 0x44e   : > { %6455 = vmatmul.msk.f32.gmra.mxu2 %vm405_vm2, %v9236_v17  ;;  %v10528_v17 = vmax.f32 %v10527_v5, 0.0  ;;  %v4666_v5 = vld [vmem:[#allocation3 + $0x68] sm:$0xff] }
 0x44f   : > { %v4060_v63 = vpop.f32.mrf.mxu0  ;;  %v9468_v53 = vadd.f32 %v4054_v49, %v3832_v41 }
 0x451   : > { %v4538_v24 = vpop.f32.mrf.mxu2  ;;  %6472 = vmatmul.msk.f32.gmra.mxu3 %vm405_vm2, %v4664_v2 }
 0x452   : > { %v9470_v36 = vadd.f32 %v4538_v24, %v4348_v52  ;;  %v4259_v7 = vpop.f32.mrf.mxu1  ;;  %6505 = vmatmul.msk.f32.gmra.mxu0 %vm405_vm2, %v4947_v62  ;;  %v4948_v52 = vld [vmem:[#allocation3 + $0x69] sm:$0xff] }
 0x453   : > { %v4349_v21 = vadd.f32 %v4259_v7, %v9234_v0  ;;  %v10529_v62 = vld [vmem:[#allocation69_spill] sm:$0xff] }
 0x454   : > { %v3775_v56 = vpop.f32.mrf.mxu3  ;;  %v5575_v0 = vld [vmem:[#allocation10] sm:$0xff] }
 0x455   : > { %v3833_v19 = vadd.f32 %v3775_v56, %v9238_v54  ;;  %6424 = vmatmul.msk.f32.gmra.mxu1 %vm405_vm2, %v10528_v17  ;;  %5694 = vmatpush.msra.mxu2 %v5575_v0  ;;  %v4950_v0 = vld [vmem:[#allocation3 + $0x81] sm:$0xff] }
 0x456   : > { %6456 = vmatmul.msk.f32.gmra.mxu2 %vm405_vm2, %v9252_v39  ;;  %v10530_v39 = vmax.f32 %v10529_v62, 0.0  ;;  %v4667_v62 = vld [vmem:[#allocation3 + $0x78] sm:$0xff] }
 0x457   : > { %v4063_v49 = vpop.f32.mrf.mxu0  ;;  %v9481_v18 = vadd.f32 %v4057_v30, %v3833_v19 }
 0x459   : > { %v4541_v41 = vpop.f32.mrf.mxu2  ;;  %6473 = vmatmul.msk.f32.gmra.mxu3 %vm405_vm2, %v4665_v32 }
 0x45a   : > { %v9483_v60 = vadd.f32 %v4541_v41, %v4349_v21  ;;  %v4262_v54 = vpop.f32.mrf.mxu1  ;;  %6506 = vmatmul.msk.f32.gmra.mxu0 %vm405_vm2, %v4948_v52  ;;  %v5259_v21 = vld [vmem:[#allocation9 + $0x208] sm:$0xff]  ;;  %v10531_v52 = vld [vmem:[#allocation19_spill] sm:$0xff] }
 0x45b   : > { %v4350_v30 = vadd.f32 %v4262_v54, %v9250_v15  ;;  %5376 = vmatpush.msra.mxu1 %v5259_v21  ;;  %v10532_v15 = vmax.f32 %v10531_v52, 0.0 }
 0x45c   : > { %v3778_v24 = vpop.f32.mrf.mxu3 }
 0x45d   : > { %v3834_v2 = vadd.f32 %v3778_v24, %v9254_v14  ;;  %6425 = vmatmul.msk.f32.gmra.mxu1 %vm405_vm2, %v10530_v39  ;;  %v4949_v14 = vld [vmem:[#allocation3 + $0x79] sm:$0xff] }
 0x45e   : > { %6457 = vmatmul.msk.f32.gmra.mxu2 %vm405_vm2, %v9268_v25 }
 0x45f   : > { %v4066_v7 = vpop.f32.mrf.mxu0  ;;  %v9494_v56 = vadd.f32 %v4060_v63, %v3834_v2 }
 0x461   : > { %v4544_v19 = vpop.f32.mrf.mxu2  ;;  %6474 = vmatmul.msk.f32.gmra.mxu3 %vm405_vm2, %v4666_v5  ;;  %v10533_v5 = vld [vmem:[#allocation43_spill] sm:$0xff] }
 0x462   : > { %v9496_v17 = vadd.f32 %v4544_v19, %v4350_v30  ;;  %v4265_v41 = vpop.f32.mrf.mxu1  ;;  %6507 = vmatmul.msk.f32.gmra.mxu0 %vm405_vm2, %v4949_v14 }
 0x463   : > { %v4351_v63 = vadd.f32 %v4265_v41, %v9266_v34  ;;  %v4668_v41 = vld [vmem:[#allocation3 + $0x80] sm:$0xff] }
 0x464   : > { %v3781_v25 = vpop.f32.mrf.mxu3 }
 0x465   : > { %v3835_v32 = vadd.f32 %v3781_v25, %v9270_v1  ;;  %6426 = vmatmul.msk.f32.gmra.mxu1 %vm405_vm2, %v10532_v15 }
 0x466   : > { %6458 = vmatmul.msk.f32.gmra.mxu2 %vm405_vm2, %v9284_v11  ;;  %v10534_v11 = vmax.f32 %v10533_v5, 0.0 }
 0x467   : > { %v4069_v54 = vpop.f32.mrf.mxu0  ;;  %v9507_v24 = vadd.f32 %v4063_v49, %v3835_v32  ;;  %v4951_v32 = vld [vmem:[#allocation3 + $0x91] sm:$0xff] }
 0x469   : > { %v4547_v2 = vpop.f32.mrf.mxu2  ;;  %6475 = vmatmul.msk.f32.gmra.mxu3 %vm405_vm2, %v4667_v62 }
 0x46a   : > { %v9509_v39 = vadd.f32 %v4547_v2, %v4351_v63  ;;  %v4268_v1 = vpop.f32.mrf.mxu1  ;;  %6508 = vmatmul.msk.f32.gmra.mxu0 %vm405_vm2, %v4950_v0  ;;  %v10535_v63 = vld [vmem:[#allocation72_spill] sm:$0xff]  ;;  %v4669_v0 = vld [vmem:[#allocation3 + $0x90] sm:$0xff] }
 0x46b   : > { %v4352_v34 = vadd.f32 %v4268_v1, %v9282_v27 }
 0x46c   : > { %v3784_v30 = vpop.f32.mrf.mxu3 }
 0x46d   : > { %v3836_v19 = vadd.f32 %v3784_v30, %v9286_v40  ;;  %6427 = vmatmul.msk.f32.gmra.mxu1 %vm405_vm2, %v10534_v11  ;;  %v4952_v30 = vld [vmem:[#allocation3 + $0x99] sm:$0xff] }
 0x46e   : > { %6459 = vmatmul.msk.f32.gmra.mxu2 %vm405_vm2, %v9300_v29  ;;  %v10536_v29 = vmax.f32 %v10535_v63, 0.0  ;;  %v10537_v11 = vld [vmem:[#allocation71_spill] sm:$0xff]  ;;  %v10539_v63 = vld [vmem:[#allocation73_spill] sm:$0xff] }
 0x46f   : > { %v4072_v49 = vpop.f32.mrf.mxu0  ;;  %v9520_v14 = vadd.f32 %v4066_v7, %v3836_v19 }
 0x471   : > { %v4550_v21 = vpop.f32.mrf.mxu2  ;;  %6476 = vmatmul.msk.f32.gmra.mxu3 %vm405_vm2, %v4668_v41  ;;  %v4670_v41 = vld [vmem:[#allocation3 + $0x98] sm:$0xff] }
 0x472   : > { %v9522_v25 = vadd.f32 %v4550_v21, %v4352_v34  ;;  %v4271_v40 = vpop.f32.mrf.mxu1  ;;  %6509 = vmatmul.msk.f32.gmra.mxu0 %vm405_vm2, %v4951_v32 }
 0x473   : > { %v4353_v27 = vadd.f32 %v4271_v40, %v9298_v10  ;;  %v4953_v40 = vld [vmem:[#allocation3 + $0xa9] sm:$0xff] }
 0x474   : > { %v3787_v52 = vpop.f32.mrf.mxu3 }
 0x475   : > { %v3837_v15 = vadd.f32 %v3787_v52, %v9302_v4  ;;  %6428 = vmatmul.msk.f32.gmra.mxu1 %vm405_vm2, %v10536_v29 }
 0x476   : > { %6460 = vmatmul.msk.f32.gmra.mxu2 %vm405_vm2, %v9316_v31  ;;  %v10538_v31 = vmax.f32 %v10537_v11, 0.0  ;;  %v10541_v11 = vld [vmem:[#allocation20_spill] sm:$0xff] }
 0x477   : > { %v4075_v7 = vpop.f32.mrf.mxu0  ;;  %v9533_v2 = vadd.f32 %v4069_v54, %v3837_v15 }
 0x479   : > { %v4553_v62 = vpop.f32.mrf.mxu2  ;;  %6477 = vmatmul.msk.f32.gmra.mxu3 %vm405_vm2, %v4669_v0  ;;  %v4671_v0 = vld [vmem:[#allocation3 + $0xa8] sm:$0xff] }
 0x47a   : > { %v9535_v1 = vadd.f32 %v4553_v62, %v4353_v27  ;;  %v4274_v4 = vpop.f32.mrf.mxu1  ;;  %6510 = vmatmul.msk.f32.gmra.mxu0 %vm405_vm2, %v4952_v30 }
 0x47b   : > { %v4354_v10 = vadd.f32 %v4274_v4, %v9314_v58  ;;  %v10540_v58 = vmax.f32 %v10539_v63, 0.0  ;;  %v4954_v4 = vld [vmem:[#allocation3 + $0xb1] sm:$0xff] }
 0x47c   : > { %v3790_v19 = vpop.f32.mrf.mxu3 }
 0x47d   : > { %v3838_v5 = vadd.f32 %v3790_v19, %v9318_v16  ;;  %6429 = vmatmul.msk.f32.gmra.mxu1 %vm405_vm2, %v10538_v31  ;;  %v5258_v16 = vld [vmem:[#allocation9 + $0x200] sm:$0xff] }
 0x47e   : > { %6461 = vmatmul.msk.f32.gmra.mxu2 %vm405_vm2, %v9332_v38  ;;  %5377 = vmatpush.msra.mxu1 %v5258_v16 }
 0x47f   : > { %v4078_v54 = vpop.f32.mrf.mxu0  ;;  %v9546_v34 = vadd.f32 %v4072_v49, %v3838_v5 }
 0x481   : > { %v4556_v21 = vpop.f32.mrf.mxu2  ;;  %6478 = vmatmul.msk.f32.gmra.mxu3 %vm405_vm2, %v4670_v41 }
 0x482   : > { %v9548_v32 = vadd.f32 %v4556_v21, %v4354_v10  ;;  %v4277_v52 = vpop.f32.mrf.mxu1  ;;  %6511 = vmatmul.msk.f32.gmra.mxu0 %vm405_vm2, %v4953_v40  ;;  %v4672_v21 = vld [vmem:[#allocation3 + $0xb0] sm:$0xff]  ;;  %v4955_v40 = vld [vmem:[#allocation3 + $0xc1] sm:$0xff] }
 0x483   : > { %v4355_v49 = vadd.f32 %v4277_v52, %v9330_v20 }
 0x484   : > { %v3793_v15 = vpop.f32.mrf.mxu3 }
 0x485   : > { %v3839_v38 = vadd.f32 %v3793_v15, %v9334_v47  ;;  %6430 = vmatmul.msk.f32.gmra.mxu1 %vm405_vm2, %v10540_v58  ;;  %v10543_v15 = vld [vmem:[#allocation49_spill] sm:$0xff]  ;;  %v4673_v58 = vld [vmem:[#allocation3 + $0xc0] sm:$0xff] }
 0x486   : > { %6462 = vmatmul.msk.f32.gmra.mxu2 %vm405_vm2, %v9348_v50  ;;  %v10542_v50 = vmax.f32 %v10541_v11, 0.0 }
 0x487   : > { %v4081_v29 = vpop.f32.mrf.mxu0  ;;  %v9559_v27 = vadd.f32 %v4075_v7, %v3839_v38 }
 0x489   : > { %v4559_v62 = vpop.f32.mrf.mxu2  ;;  %6479 = vmatmul.msk.f32.gmra.mxu3 %vm405_vm2, %v4671_v0 }
 0x48a   : > { %v9561_v30 = vadd.f32 %v4559_v62, %v4355_v49  ;;  %v4280_v47 = vpop.f32.mrf.mxu1  ;;  %6512 = vmatmul.msk.f32.gmra.mxu0 %vm405_vm2, %v4954_v4  ;;  %v4956_v62 = vld [vmem:[#allocation3 + $0xc9] sm:$0xff] }
 0x48b   : > { %v4356_v20 = vadd.f32 %v4280_v47, %v9346_v51 }
 0x48c   : > { %v3796_v19 = vpop.f32.mrf.mxu3 }
 0x48d   : > { %v3840_v5 = vadd.f32 %v3796_v19, %v9350_v43  ;;  %6431 = vmatmul.msk.f32.gmra.mxu1 %vm405_vm2, %v10542_v50  ;;  %v4957_v50 = vld [vmem:[#allocation3 + $0xd9] sm:$0xff] }
 0x48e   : > { %6463 = vmatmul.msk.f32.gmra.mxu2 %vm405_vm2, %v9364_v59  ;;  %v10544_v59 = vmax.f32 %v10543_v15, 0.0 }
 0x48f   : > { %v4084_v7 = vpop.f32.mrf.mxu0  ;;  %v9572_v31 = vadd.f32 %v4078_v54, %v3840_v5  ;;  %v4674_v5 = vld [vmem:[#allocation3 + $0xc8] sm:$0xff] }
 0x491   : > { %v4562_v10 = vpop.f32.mrf.mxu2  ;;  %6480 = vmatmul.msk.f32.gmra.mxu3 %vm405_vm2, %v4672_v21 }
 0x492   : > { %v9574_v41 = vadd.f32 %v4562_v10, %v4356_v20  ;;  %v4283_v43 = vpop.f32.mrf.mxu1  ;;  %6513 = vmatmul.msk.f32.gmra.mxu0 %vm405_vm2, %v4955_v40  ;;  %v10546_v10 = vld [vmem:[#allocation74_spill] sm:$0xff] }
 0x493   : > { %v4357_v51 = vadd.f32 %v4283_v43, %v9362_v44  ;;  %v4675_v43 = vld [vmem:[#allocation3 + $0xd8] sm:$0xff] }
 0x494   : > { %v3799_v16 = vpop.f32.mrf.mxu3 }
 0x495   : > { %v3841_v52 = vadd.f32 %v3799_v16, %v9366_v8  ;;  %6432 = vmatmul.msk.f32.gmra.mxu1 %vm405_vm2, %v10544_v59  ;;  %v9617_v59 = vld [vmem:[#allocation3 + $0x182] sm:$0xff] }
 0x496   : > { %6464 = vmatmul.msk.f32.gmra.mxu2 %vm405_vm2, %v9380_v6  ;;  %v10545_v6 = vmax.f32 %v9099_v37, 0.0 }
 0x497   : > { %v4087_v54 = vpop.f32.mrf.mxu0  ;;  %v9585_v38 = vadd.f32 %v4081_v29, %v3841_v52  ;;  %v4958_v52 = vld [vmem:[#allocation3 + $0xe1] sm:$0xff] }
 0x499   : > { %v4565_v63 = vpop.f32.mrf.mxu2  ;;  %6481 = vmatmul.msk.f32.gmra.mxu3 %vm405_vm2, %v4673_v58  ;;  %v4676_v58 = vld [vmem:[#allocation3 + $0xe0] sm:$0xff] }
 0x49a   : > { %v9587_v49 = vadd.f32 %v4565_v63, %v4357_v51  ;;  %v4286_v8 = vpop.f32.mrf.mxu1  ;;  %6514 = vmatmul.msk.f32.gmra.mxu0 %vm405_vm2, %v4956_v62 }
 0x49b   : > { %v4358_v44 = vadd.f32 %v4286_v8, %v9378_v9 }
 0x49c   : > { %v3802_v0 = vpop.f32.mrf.mxu3 }
 0x49d   : > { %v3842_v4 = vadd.f32 %v3802_v0, %v9382_v33  ;;  %6433 = vmatmul.msk.f32.gmra.mxu1 %vm405_vm2, %v10545_v6  ;;  %v4959_v0 = vld [vmem:[#allocation3 + $0xf1] sm:$0xff] }
 0x49e   : > { %6465 = vmatmul.msk.f32.gmra.mxu2 %vm405_vm2, %v9398_v13  ;;  %v10547_v13 = vmax.f32 %v10546_v10, 0.0  ;;  %v5225_v10 = vld [vmem:[#allocation3 + $0x32] sm:$0xff] }
 0x49f   : > { %v4090_v29 = vpop.f32.mrf.mxu0  ;;  %v9598_v47 = vadd.f32 %v4084_v7, %v3842_v4  ;;  %v9632_v4 = vld [vmem:[#allocation3 + $0x18a] sm:$0xff] }
 0x4a1   : > { %v4568_v19 = vpop.f32.mrf.mxu2  ;;  %6482 = vmatmul.msk.f32.gmra.mxu3 %vm405_vm2, %v4674_v5  ;;  %v4677_v5 = vld [vmem:[#allocation3 + $0xf0] sm:$0xff] }
 0x4a2   : > { %v9600_v11 = vadd.f32 %v4568_v19, %v4358_v44  ;;  %v4289_v33 = vpop.f32.mrf.mxu1  ;;  %6515 = vmatmul.msk.f32.gmra.mxu0 %vm405_vm2, %v4957_v50 }
 0x4a3   : > { %v4359_v9 = vadd.f32 %v4289_v33, %v9396_v12  ;;  %v10548_v12 = vmax.f32 %v9145_v28, 0.0  ;;  %v4960_v33 = vld [vmem:[#allocation3 + $0xf9] sm:$0xff] }
 0x4a4   : > { %v3805_v37 = vpop.f32.mrf.mxu3 }
 0x4a5   : > { %v3843_v20 = vadd.f32 %v3805_v37, %v9400_v22  ;;  %6434 = vmatmul.msk.f32.gmra.mxu1 %vm405_vm2, %v10547_v13 }
 0x4a6   : > { %6466 = vmatmul.msk.f32.gmra.mxu2 %vm405_vm2, %v9416_v26 }
 0x4a7   : > { %v4093_v7 = vpop.f32.mrf.mxu0  ;;  %v9611_v21 = vadd.f32 %v4087_v54, %v3843_v20 }
 0x4a9   : > { %v4571_v40 = vpop.f32.mrf.mxu2  ;;  %6483 = vmatmul.msk.f32.gmra.mxu3 %vm405_vm2, %v4675_v43 }
 0x4aa   : > { %v9613_v16 = vadd.f32 %v4571_v40, %v4359_v9  ;;  %v4292_v22 = vpop.f32.mrf.mxu1  ;;  %6516 = vmatmul.msk.f32.gmra.mxu0 %vm405_vm2, %v4958_v52  ;;  %v4678_v40 = vld [vmem:[#allocation3 + $0xf8] sm:$0xff]  ;;  %v4961_v52 = vld [vmem:[#allocation3 + $0x109] sm:$0xff] }
 0x4ab   : > { %v4360_v51 = vadd.f32 %v4292_v22, %v9414_v55  ;;  %v10549_v55 = vmax.f32 %v9166_v42, 0.0  ;;  %v5543_v42 = vld [vmem:[%s7074_s23] sm:$0xff] }
 0x4ac   : > { %v3808_v15 = vpop.f32.mrf.mxu3 }
 0x4ad   : > { %v3844_v26 = vadd.f32 %v3808_v15, %v9418_v46  ;;  %6435 = vmatmul.msk.f32.gmra.mxu1 %vm405_vm2, %v10548_v12  ;;  %v5544_v15 = vld [vmem:[%s7074_s23 + $0x8] sm:$0xff] }
 0x4ae   : > { %6467 = vmatmul.msk.f32.gmra.mxu2 %vm405_vm2, %v9617_v59  ;;  %v5226_v12 = vld [vmem:[#allocation3 + $0x3a] sm:$0xff] }
 0x4af   : > { %v9626_v54 = vadd.f32 %v4090_v29, %v3844_v26  ;;  %v5097_v62 = vpop.f32.mrf.mxu0 }
 0x4b1   : > { %v4574_v63 = vpop.f32.mrf.mxu2  ;;  %6484 = vmatmul.msk.f32.gmra.mxu3 %vm405_vm2, %v4676_v58 }
 0x4b2   : > { %v9628_v8 = vadd.f32 %v4574_v63, %v4360_v51  ;;  %v4295_v46 = vpop.f32.mrf.mxu1  ;;  %6517 = vmatmul.msk.f32.gmra.mxu0 %vm405_vm2, %v4959_v0 }
 0x4b3   : > { %v4361_v44 = vadd.f32 %v4295_v46, %v9429_v61  ;;  %v4962_v46 = vld [vmem:[#allocation3 + $0x111] sm:$0xff] }
 0x4b4   : > { %v3811_v28 = vpop.f32.mrf.mxu3 }
 0x4b5   : > { %v3845_v6 = vadd.f32 %v3811_v28, %v9431_v57  ;;  %6436 = vmatmul.msk.f32.gmra.mxu1 %vm405_vm2, %v10549_v55  ;;  %v5227_v55 = vld [vmem:[#allocation3 + $0x4a] sm:$0xff] }
 0x4b6   : > { %6468 = vmatmul.msk.f32.gmra.mxu2 %vm405_vm2, %v9632_v4 }
 0x4b7   : > { %v9641_v29 = vadd.f32 %v4093_v7, %v3845_v6  ;;  %v5100_v57 = vpop.f32.mrf.mxu0  ;;  %v5545_v6 = vld [vmem:[%s7074_s23 + $0x10] sm:$0xff] }
 0x4b9   : > { %v4577_v19 = vpop.f32.mrf.mxu2  ;;  %6485 = vmatmul.msk.f32.gmra.mxu3 %vm405_vm2, %v4677_v5 }
 0x4ba   : > { %v9643_v50 = vadd.f32 %v4577_v19, %v4361_v44  ;;  %v4298_v37 = vpop.f32.mrf.mxu1  ;;  %6518 = vmatmul.msk.f32.gmra.mxu0 %vm405_vm2, %v4960_v33 }
 0x4bb   : > { %v4362_v61 = vadd.f32 %v4298_v37, %v9442_v3  ;;  %v4680_v37 = vld [vmem:[#allocation3 + $0x110] sm:$0xff] }
 0x4bc   : > { %v4815_v20 = vpop.f32.mrf.mxu3 }
 0x4bd   : > { %v4911_v13 = vadd.f32 %v4815_v20, %v9444_v45  ;;  %6533 = vmatmul.msk.f32.vlgmr.msra.gmra.mxu1 %vm405_vm2, %v5225_v10  ;;  %v5546_v10 = vld [vmem:[%s7074_s23 + $0x18] sm:$0xff] }
 0x4be   : > { %6565 = vmatmul.msk.f32.vlgmr.msra.gmra.mxu2 %vm349_vm0, %v5543_v42  ;;  %v4963_v42 = vld [vmem:[#allocation3 + $0x121] sm:$0xff] }
 0x4bf   : > { %v9652_v9 = vadd.f32 %v5097_v62, %v4911_v13  ;;  %v5103_v45 = vpop.f32.mrf.mxu0  ;;  %v4679_v62 = vld [vmem:[#allocation3 + $0x108] sm:$0xff]  ;;  %v5228_v13 = vld [vmem:[#allocation3 + $0x52] sm:$0xff] }
 0x4c1   : > { %v4580_v7 = vpop.f32.mrf.mxu2  ;;  %6486 = vmatmul.msk.f32.gmra.mxu3 %vm405_vm2, %v4678_v40 }
 0x4c2   : > { %v9654_v43 = vadd.f32 %v4580_v7, %v4362_v61  ;;  %v4301_v22 = vpop.f32.mrf.mxu1  ;;  %6519 = vmatmul.msk.f32.gmra.mxu0 %vm405_vm2, %v4961_v52 }
 0x4c3   : > { %v4363_v3 = vadd.f32 %v4301_v22, %v9455_v23  ;;  %v4681_v22 = vld [vmem:[#allocation3 + $0x120] sm:$0xff] }
 0x4c4   : > { %v4818_v26 = vpop.f32.mrf.mxu3 }
 0x4c5   : > { %v4912_v51 = vadd.f32 %v4818_v26, %v9457_v35  ;;  %6534 = vmatmul.msk.f32.gmra.mxu1 %vm405_vm2, %v5226_v12  ;;  %v5547_v12 = vld [vmem:[%s7074_s23 + $0x20] sm:$0xff] }
 0x4c6   : > { %6566 = vmatmul.msk.f32.gmra.mxu2 %vm349_vm0, %v5544_v15 }
 0x4c7   : > { %v9663_v63 = vadd.f32 %v5100_v57, %v4912_v51  ;;  %v5106_v23 = vpop.f32.mrf.mxu0  ;;  %v5229_v51 = vld [vmem:[#allocation3 + $0x62] sm:$0xff] }
 0x4c9   : > { %v4583_v58 = vpop.f32.mrf.mxu2  ;;  %6487 = vmatmul.msk.f32.gmra.mxu3 %vm405_vm2, %v4679_v62 }
 0x4ca   : > { %v9665_v0 = vadd.f32 %v4583_v58, %v4363_v3  ;;  %v4304_v28 = vpop.f32.mrf.mxu1  ;;  %6520 = vmatmul.msk.f32.gmra.mxu0 %vm405_vm2, %v4962_v46  ;;  %v4682_v46 = vld [vmem:[#allocation3 + $0x128] sm:$0xff] }
 0x4cb   : > { %v4364_v19 = vadd.f32 %v4304_v28, %v9468_v53 }
 0x4cc   : > { %v4821_v35 = vpop.f32.mrf.mxu3 }
 0x4cd   : > { %v4913_v44 = vadd.f32 %v4821_v35, %v9470_v36  ;;  %6535 = vmatmul.msk.f32.gmra.mxu1 %vm405_vm2, %v5227_v55 }
 0x4ce   : > { %6567 = vmatmul.msk.f32.gmra.mxu2 %vm349_vm0, %v5545_v6  ;;  %v4965_v6 = vld [vmem:[#allocation3 + $0x139] sm:$0xff] }
 0x4cf   : > { %v9674_v5 = vadd.f32 %v5103_v45, %v4913_v44  ;;  %v5109_v40 = vpop.f32.mrf.mxu0  ;;  %v4964_v45 = vld [vmem:[#allocation3 + $0x129] sm:$0xff]  ;;  %v5548_v44 = vld [vmem:[%s7074_s23 + $0x28] sm:$0xff] }
 0x4d1   : > { %v4586_v33 = vpop.f32.mrf.mxu2  ;;  %6488 = vmatmul.msk.f32.gmra.mxu3 %vm405_vm2, %v4680_v37 }
 0x4d2   : > { %v9676_v57 = vadd.f32 %v4586_v33, %v4364_v19  ;;  %v4307_v20 = vpop.f32.mrf.mxu1  ;;  %6521 = vmatmul.msk.f32.gmra.mxu0 %vm405_vm2, %v4963_v42  ;;  %v4683_v42 = vld [vmem:[#allocation3 + $0x138] sm:$0xff] }
 0x4d3   : > { %v4365_v53 = vadd.f32 %v4307_v20, %v9481_v18 }
 0x4d4   : > { %v4824_v36 = vpop.f32.mrf.mxu3 }
 0x4d5   : > { %v4914_v61 = vadd.f32 %v4824_v36, %v9483_v60  ;;  %6536 = vmatmul.msk.f32.gmra.mxu1 %vm405_vm2, %v5228_v13  ;;  %v5549_v13 = vld [vmem:[%s7074_s23 + $0x30] sm:$0xff] }
 0x4d6   : > { %6568 = vmatmul.msk.f32.gmra.mxu2 %vm349_vm0, %v5546_v10  ;;  %v4966_v10 = vld [vmem:[#allocation3 + $0x141] sm:$0xff] }
 0x4d7   : > { %v9685_v7 = vadd.f32 %v5106_v23, %v4914_v61  ;;  %v5112_v35 = vpop.f32.mrf.mxu0  ;;  %v5230_v23 = vld [vmem:[#allocation3 + $0x6a] sm:$0xff] }
 0x4d9   : > { %v4589_v52 = vpop.f32.mrf.mxu2  ;;  %6489 = vmatmul.msk.f32.gmra.mxu3 %vm405_vm2, %v4681_v22 }
 0x4da   : > { %v9687_v15 = vadd.f32 %v4589_v52, %v4365_v53  ;;  %v4310_v26 = vpop.f32.mrf.mxu1  ;;  %6522 = vmatmul.msk.f32.gmra.mxu0 %vm405_vm2, %v4964_v45  ;;  %v5231_v53 = vld [vmem:[#allocation3 + $0x7a] sm:$0xff] }
 0x4db   : > { %v4366_v18 = vadd.f32 %v4310_v26, %v9494_v56  ;;  %v4684_v45 = vld [vmem:[#allocation3 + $0x140] sm:$0xff] }
 0x4dc   : > { %v4827_v60 = vpop.f32.mrf.mxu3 }
 0x4dd   : > { %v4915_v3 = vadd.f32 %v4827_v60, %v9496_v17  ;;  %6537 = vmatmul.msk.f32.gmra.mxu1 %vm405_vm2, %v5229_v51  ;;  %v5550_v51 = vld [vmem:[%s7074_s23 + $0x38] sm:$0xff] }
 0x4de   : > { %6569 = vmatmul.msk.f32.gmra.mxu2 %vm349_vm0, %v5547_v12  ;;  %v4967_v12 = vld [vmem:[#allocation3 + $0x151] sm:$0xff] }
 0x4df   : > { %v9696_v58 = vadd.f32 %v5109_v40, %v4915_v3  ;;  %v5232_v3 = vld [vmem:[#allocation3 + $0x82] sm:$0xff] }
 0x4e1   : > { %v4592_v62 = vpop.f32.mrf.mxu2  ;;  %6490 = vmatmul.msk.f32.gmra.mxu3 %vm405_vm2, %v4682_v46 }
 0x4e2   : > { %v9698_v28 = vadd.f32 %v4592_v62, %v4366_v18  ;;  %v4313_v55 = vpop.f32.mrf.mxu1  ;;  %6523 = vmatmul.msk.f32.gmra.mxu0 %vm405_vm2, %v4965_v6 }
 0x4e3   : > { %v4367_v56 = vadd.f32 %v4313_v55, %v9507_v24 }
 0x4e4   : > { %v4830_v17 = vpop.f32.mrf.mxu3 }
 0x4e5   : > { %v4916_v19 = vadd.f32 %v4830_v17, %v9509_v39  ;;  %6538 = vmatmul.msk.f32.gmra.mxu1 %vm405_vm2, %v5230_v23  ;;  %v5115_v39 = vpop.f32.mrf.mxu0  ;;  %v5551_v23 = vld [vmem:[%s7074_s23 + $0x40] sm:$0xff] }
 0x4e6   : > { %6570 = vmatmul.msk.f32.gmra.mxu2 %vm349_vm0, %v5548_v44  ;;  %v4968_v44 = vld [vmem:[#allocation3 + $0x159] sm:$0xff] }
 0x4e7   : > { %v9707_v33 = vadd.f32 %v5112_v35, %v4916_v19  ;;  %v4685_v35 = vld [vmem:[#allocation3 + $0x150] sm:$0xff] }
 0x4e9   : > { %v4595_v37 = vpop.f32.mrf.mxu2  ;;  %6491 = vmatmul.msk.f32.gmra.mxu3 %vm405_vm2, %v4683_v42  ;;  %v4969_v42 = vld [vmem:[#allocation3 + $0x169] sm:$0xff] }
 0x4ea   : > { %v9709_v20 = vadd.f32 %v4595_v37, %v4367_v56  ;;  %v4316_v36 = vpop.f32.mrf.mxu1  ;;  %6524 = vmatmul.msk.f32.gmra.mxu0 %vm405_vm2, %v4966_v10  ;;  %v4686_v56 = vld [vmem:[#allocation3 + $0x158] sm:$0xff] }
 0x4eb   : > { %v4368_v24 = vadd.f32 %v4316_v36, %v9520_v14  ;;  %v5552_v36 = vld [vmem:[%s7074_s23 + $0x48] sm:$0xff] }
 0x4ec   : > { %v4833_v61 = vpop.f32.mrf.mxu3 }
 0x4ed   : > { %v4917_v40 = vadd.f32 %v4833_v61, %v9522_v25  ;;  %6539 = vmatmul.msk.f32.gmra.mxu1 %vm405_vm2, %v5231_v53  ;;  %v5118_v14 = vpop.f32.mrf.mxu0  ;;  %v4687_v61 = vld [vmem:[#allocation3 + $0x168] sm:$0xff] }
 0x4ee   : > { %6571 = vmatmul.msk.f32.gmra.mxu2 %vm349_vm0, %v5549_v13  ;;  %v5234_v13 = vld [vmem:[#allocation3 + $0x9a] sm:$0xff] }
 0x4ef   : > { %v9718_v52 = vadd.f32 %v5115_v39, %v4917_v40  ;;  %v4970_v40 = vld [vmem:[#allocation3 + $0x171] sm:$0xff] }
 0x4f1   : > { %v4598_v22 = vpop.f32.mrf.mxu2  ;;  %6492 = vmatmul.msk.f32.gmra.mxu3 %vm405_vm2, %v4684_v45  ;;  %v5235_v45 = vld [vmem:[#allocation3 + $0xaa] sm:$0xff] }
 0x4f2   : > { %v9720_v26 = vadd.f32 %v4598_v22, %v4368_v24  ;;  %v4319_v60 = vpop.f32.mrf.mxu1  ;;  %6525 = vmatmul.msk.f32.gmra.mxu0 %vm405_vm2, %v4967_v12  ;;  %v5553_v22 = vld [vmem:[%s7074_s23 + $0x50] sm:$0xff] }
 0x4f3   : > { %v4369_v62 = vadd.f32 %v4319_v60, %v9533_v2  ;;  %v4688_v60 = vld [vmem:[#allocation3 + $0x170] sm:$0xff] }
 0x4f4   : > { %v4836_v25 = vpop.f32.mrf.mxu3 }
 0x4f5   : > { %v4918_v18 = vadd.f32 %v4836_v25, %v9535_v1  ;;  %6540 = vmatmul.msk.f32.gmra.mxu1 %vm405_vm2, %v5232_v3  ;;  %v5233_v1 = vld [vmem:[#allocation3 + $0x92] sm:$0xff]  ;;  %v4971_v25 = vld [vmem:[#allocation3 + $0x181] sm:$0xff] }
 0x4f6   : > { %6572 = vmatmul.msk.f32.gmra.mxu2 %vm349_vm0, %v5550_v51 }
 0x4f7   : > { %v9729_v46 = vadd.f32 %v5118_v14, %v4918_v18  ;;  %v5554_v18 = vld [vmem:[%s7074_s23 + $0x58] sm:$0xff]  ;;  %v5236_v14 = vld [vmem:[#allocation3 + $0xb2] sm:$0xff] }
 0x4f9   : > { %v4601_v6 = vpop.f32.mrf.mxu2  ;;  %6493 = vmatmul.msk.f32.gmra.mxu3 %vm405_vm2, %v4685_v35  ;;  %v4972_v35 = vld [vmem:[#allocation3 + $0x189] sm:$0xff] }
 0x4fa   : > { %v9731_v55 = vadd.f32 %v4601_v6, %v4369_v62  ;;  %v4322_v17 = vpop.f32.mrf.mxu1  ;;  %6526 = vmatmul.msk.f32.gmra.mxu0 %vm405_vm2, %v4968_v44 }
 0x4fb   : > { %v4370_v2 = vadd.f32 %v4322_v17, %v9546_v34  ;;  %v5555_v17 = vld [vmem:[%s7074_s23 + $0x60] sm:$0xff] }
 0x4fd   : > { %6541 = vmatmul.msk.f32.gmra.mxu1 %vm405_vm2, %v5233_v1 }
 0x4fe   : > { %6573 = vmatmul.msk.f32.gmra.mxu2 %vm349_vm0, %v5551_v23  ;;  %v5237_v23 = vld [vmem:[#allocation3 + $0xc2] sm:$0xff] }
 0x501   : > { %v4604_v19 = vpop.f32.mrf.mxu2  ;;  %6494 = vmatmul.msk.f32.gmra.mxu3 %vm405_vm2, %v4686_v56  ;;  %v10550_v56 = vld [vmem:[#allocation75_spill] sm:$0xff] }
 0x502   : > { %v9739_v37 = vadd.f32 %v4604_v19, %v4370_v2  ;;  %v4325_v10 = vpop.f32.mrf.mxu1  ;;  %6527 = vmatmul.msk.f32.gmra.mxu0 %vm405_vm2, %v4969_v42  ;;  %v5556_v42 = vld [vmem:[%s7074_s23 + $0x68] sm:$0xff] }
 0x503   : > { %v4371_v39 = vadd.f32 %v4325_v10, %v9559_v27  ;;  %v5238_v10 = vld [vmem:[#allocation3 + $0xca] sm:$0xff] }
 0x505   : > { %6542 = vmatmul.msk.f32.gmra.mxu1 %vm405_vm2, %v5234_v13  ;;  %v4974_v13 = vld [vmem:[#allocation3 + $0x1a1] sm:$0xff] }
 0x506   : > { %6574 = vmatmul.msk.f32.gmra.mxu2 %vm349_vm0, %v5552_v36  ;;  %v4691_v36 = vld [vmem:[#allocation3 + $0x198] sm:$0xff] }
 0x509   : > { %v4607_v34 = vpop.f32.mrf.mxu2  ;;  %6495 = vmatmul.msk.f32.gmra.mxu3 %vm405_vm2, %v4687_v61 }
 0x50a   : > { %v9747_v53 = vadd.f32 %v4607_v34, %v4371_v39  ;;  %v4328_v24 = vpop.f32.mrf.mxu1  ;;  %6528 = vmatmul.msk.f32.gmra.mxu0 %vm405_vm2, %v4970_v40  ;;  %v5557_v40 = vld [vmem:[%s7074_s23 + $0x70] sm:$0xff] }
 0x50b   : > { %v4372_v12 = vadd.f32 %v4328_v24, %v9572_v31  ;;  %v5239_v24 = vld [vmem:[#allocation3 + $0xda] sm:$0xff] }
 0x50d   : > { %6543 = vmatmul.msk.f32.gmra.mxu1 %vm405_vm2, %v5235_v45 }
 0x50e   : > { %6575 = vmatmul.msk.f32.gmra.mxu2 %vm349_vm0, %v5553_v22  ;;  %v4692_v22 = vld [vmem:[#allocation3 + $0x1a0] sm:$0xff] }
 0x511   : > { %v4610_v27 = vpop.f32.mrf.mxu2  ;;  %6496 = vmatmul.msk.f32.gmra.mxu3 %vm405_vm2, %v4688_v60  ;;  %v5558_v60 = vld [vmem:[%s7074_s23 + $0x78] sm:$0xff] }
 0x512   : > { %v9755_v51 = vadd.f32 %v4610_v27, %v4372_v12  ;;  %v4331_v3 = vpop.f32.mrf.mxu1  ;;  %6529 = vmatmul.msk.f32.gmra.mxu0 %vm405_vm2, %v4971_v25  ;;  %v5240_v25 = vld [vmem:[#allocation3 + $0xe2] sm:$0xff] }
 0x513   : > { %v4373_v62 = vadd.f32 %v4331_v3, %v9585_v38  ;;  %v4973_v38 = vld [vmem:[#allocation3 + $0x199] sm:$0xff] }
 0x515   : > { %6544 = vmatmul.msk.f32.gmra.mxu1 %vm405_vm2, %v5236_v14 }
 0x516   : > { %6576 = vmatmul.msk.f32.gmra.mxu2 %vm349_vm0, %v5554_v18 }
 0x519   : > { %v4613_v31 = vpop.f32.mrf.mxu2  ;;  %6497 = vmatmul.msk.f32.gmra.mxu3 %vm405_vm2, %v9386_v48 }
 0x51a   : > { %v9763_v6 = vadd.f32 %v4613_v31, %v4373_v62  ;;  %v4334_v44 = vpop.f32.mrf.mxu1  ;;  %6530 = vmatmul.msk.f32.gmra.mxu0 %vm405_vm2, %v4972_v35  ;;  %v5559_v62 = vld [vmem:[%s7074_s23 + $0x80] sm:$0xff] }
 0x51b   : > { %v4374_v1 = vadd.f32 %v4334_v44, %v9598_v47  ;;  %v5241_v31 = vld [vmem:[#allocation3 + $0xf2] sm:$0xff]  ;;  %v9803_v44 = vld [vmem:[%s10102_s4] ss:$0 sm:$0xff] }
 0x51d   : > { %6545 = vmatmul.msk.f32.gmra.mxu1 %vm405_vm2, %v5237_v23 }
 0x51e   : > { %6577 = vmatmul.msk.f32.gmra.mxu2 %vm349_vm0, %v5555_v17 }
 0x521   : > { %v4616_v2 = vpop.f32.mrf.mxu2  ;;  %6498 = vmatmul.msk.f32.gmra.mxu3 %vm405_vm2, %v10550_v56  ;;  %v5242_v56 = vld [vmem:[#allocation3 + $0xfa] sm:$0xff] }
 0x522   : > { %v9772_v19 = vadd.f32 %v4616_v2, %v4374_v1  ;;  %v4337_v48 = vpop.f32.mrf.mxu1  ;;  %6531 = vmatmul.msk.f32.gmra.mxu0 %vm405_vm2, %v4973_v38  ;;  %v5560_v38 = vld [vmem:[%s7074_s23 + $0x88] sm:$0xff] }
 0x523   : > { %v4375_v47 = vadd.f32 %v4337_v48, %v9611_v21 }
 0x525   : > { %6546 = vmatmul.msk.f32.gmra.mxu1 %vm405_vm2, %v5238_v10 }
 0x526   : > { %6578 = vmatmul.msk.f32.gmra.mxu2 %vm349_vm0, %v5556_v42  ;;  %v9824_v42 = vpop.f32.mrf.mxu3 }
 0x529   : > { %v4619_v39 = vpop.f32.mrf.mxu2  ;;  %6499 = vmatmul.msk.f32.gmra.mxu3 %vm405_vm2, %v4691_v36 }
 0x52a   : > { %v9781_v34 = vadd.f32 %v4619_v39, %v4375_v47  ;;  %v4340_v61 = vpop.f32.mrf.mxu1  ;;  %6532 = vmatmul.msk.f32.gmra.mxu0 %vm405_vm2, %v4974_v13  ;;  %v5561_v39 = vld [vmem:[%s7074_s23 + $0x90] sm:$0xff] }
 0x52b   : > { %v4376_v21 = vadd.f32 %v4340_v61, %v9626_v54 }
 0x52d   : > { %6547 = vmatmul.msk.f32.gmra.mxu1 %vm405_vm2, %v5239_v24  ;;  %v5243_v24 = vld [vmem:[#allocation3 + $0x10a] sm:$0xff] }
 0x52e   : > { %6579 = vmatmul.msk.f32.gmra.mxu2 %vm349_vm0, %v5557_v40  ;;  %v9829_v40 = vpop.f32.mrf.mxu0 }
 0x531   : > { %v4622_v45 = vpop.f32.mrf.mxu2  ;;  %6500 = vmatmul.msk.f32.gmra.mxu3 %vm405_vm2, %v4692_v22  ;;  %v9836_v22 = vpop.f32.mrf.mxu3 }
 0x532   : > { %v9789_v12 = vadd.f32 %v4622_v45, %v4376_v21  ;;  %v4343_v27 = vpop.f32.mrf.mxu1 }
 0x533   : > { %v4377_v3 = vadd.f32 %v4343_v27, %v9641_v29  ;;  %v9810_v29 = vld [vmem:[%s10104_s6] ss:$0 sm:$0xff] }
 0x535   : > { %6548 = vmatmul.msk.f32.gmra.mxu1 %vm405_vm2, %v5240_v25  ;;  %v5562_v25 = vld [vmem:[%s7074_s23 + $0x98] sm:$0xff] }
 0x536   : > { %6580 = vmatmul.msk.f32.gmra.mxu2 %vm349_vm0, %v5558_v60 }
 0x539   : > { %v4625_v18 = vpop.f32.mrf.mxu2 }
 0x53a   : > { %v9796_v14 = vadd.f32 %v4625_v18, %v4377_v3  ;;  %v5379_v54 = vpop.f32.mrf.mxu1  ;;  %v5244_v18 = vld [vmem:[#allocation3 + $0x112] sm:$0xff] }
 0x53b   : > { %v5475_v35 = vadd.f32 %v5379_v54, %v9652_v9  ;;  %v9846_v54 = vpop.f32.mrf.mxu0 }
 0x53d   : > { %6549 = vmatmul.msk.f32.gmra.mxu1 %vm405_vm2, %v5241_v31  ;;  %v5511_v23 = vadd.f32 %v9803_v44, %v5475_v35 }
 0x53e   : > { %6581 = vmatmul.msk.f32.gmra.mxu2 %vm349_vm0, %v5559_v62 }
 0x541   : > { %v5696_v17 = vpop.f32.mrf.mxu2 }
 0x542   : > { %v5697_v9 = vadd.f32 %v9810_v29, %v5696_v17  ;;  %v5382_v1 = vpop.f32.mrf.mxu1  ;;  %v9850_v17 = vpop.f32.mrf.mxu3 }
 0x543   : > { %v5476_v48 = vadd.f32 %v5382_v1, %v9663_v63 }
 0x544   : > { %v5792_v2 = vadd.f32 %v5697_v9, %v5511_v23  ;;  %v5563_v9 = vld [vmem:[%s7074_s23 + $0xa0] sm:$0xff] }
 0x545   : > { %6550 = vmatmul.msk.f32.gmra.mxu1 %vm405_vm2, %v5242_v56  ;;  %v5512_v36 = vadd.f32 %v9803_v44, %v5476_v48 }
 0x546   : > { %5824 = vst.msk [vmem:[%s9817_s9] sm:$0xff] %vm405_vm2, %v5792_v2  ;;  %6582 = vmatmul.msk.f32.gmra.mxu2 %vm349_vm0, %v5560_v38  ;;  %v5245_v38 = vld [vmem:[#allocation3 + $0x122] sm:$0xff]  ;;  %v9858_v2 = vpop.f32.mrf.mxu0 }
 0x549   : > { %v5699_v10 = vpop.f32.mrf.mxu2 }
 0x54a   : > { %v5700_v47 = vadd.f32 %v9810_v29, %v5699_v10  ;;  %v5385_v13 = vpop.f32.mrf.mxu1 }
 0x54b   : > { %v5477_v63 = vadd.f32 %v5385_v13, %v9674_v5 }
 0x54c   : > { %v5793_v61 = vadd.f32 %v5700_v47, %v5512_v36  ;;  %v5564_v47 = vld [vmem:[%s7074_s23 + $0xa8] sm:$0xff] }
 0x54d   : > { %6551 = vmatmul.msk.f32.gmra.mxu1 %vm405_vm2, %v5243_v24  ;;  %v5513_v45 = vadd.f32 %v9803_v44, %v5477_v63 }
 0x54e   : > { %5825 = vst.msk [vmem:[%s9817_s9 + $0x8] sm:$0xff] %vm405_vm2, %v5793_v61  ;;  %6583 = vmatmul.msk.f32.gmra.mxu2 %vm349_vm0, %v5561_v39  ;;  %v9863_v39 = vpop.f32.mrf.mxu3  ;;  %v5246_v61 = vld [vmem:[#allocation3 + $0x12a] sm:$0xff] }
 0x551   : > { %v5702_v21 = vpop.f32.mrf.mxu2 }
 0x552   : > { %v5703_v27 = vadd.f32 %v9810_v29, %v5702_v21  ;;  %v5388_v60 = vpop.f32.mrf.mxu1 }
 0x553   : > { %v5478_v5 = vadd.f32 %v5388_v60, %v9685_v7  ;;  %v5565_v60 = vld [vmem:[%s7074_s23 + $0xb0] sm:$0xff] }
 0x554   : > { %v5794_v3 = vadd.f32 %v5703_v27, %v5513_v45  ;;  %v9872_v45 = vpop.f32.mrf.mxu0 }
 0x555   : > { %6552 = vmatmul.msk.f32.gmra.mxu1 %vm405_vm2, %v5244_v18  ;;  %v5514_v31 = vadd.f32 %v9803_v44, %v5478_v5 }
 0x556   : > { %5826 = vst.msk [vmem:[%s9817_s9 + $0x10] sm:$0xff] %vm405_vm2, %v5794_v3  ;;  %6584 = vmatmul.msk.f32.gmra.mxu2 %vm349_vm0, %v5562_v25  ;;  %v5247_v3 = vld [vmem:[#allocation3 + $0x13a] sm:$0xff]  ;;  %v9880_v18 = vpop.f32.mrf.mxu3 }
 0x559   : > { %v5705_v62 = vpop.f32.mrf.mxu2 }
 0x55a   : > { %v5706_v35 = vadd.f32 %v9810_v29, %v5705_v62  ;;  %v5391_v23 = vpop.f32.mrf.mxu1 }
 0x55b   : > { %v5479_v7 = vadd.f32 %v5391_v23, %v9696_v58  ;;  %v5566_v23 = vld [vmem:[%s7074_s23 + $0xb8] sm:$0xff] }
 0x55c   : > { %v5795_v1 = vadd.f32 %v5706_v35, %v5514_v31 }
 0x55d   : > { %6553 = vmatmul.msk.f32.gmra.mxu1 %vm405_vm2, %v5245_v38  ;;  %v5515_v48 = vadd.f32 %v9803_v44, %v5479_v7  ;;  %v5248_v38 = vld [vmem:[#allocation3 + $0x142] sm:$0xff]  ;;  %v4919_v7 = vadd.f32 %v9824_v42, %v9548_v32  ;;  %v4920_v42 = vadd.f32 %v9836_v22, %v9561_v30  ;;  %v4921_v30 = vadd.f32 %v9850_v17, %v9574_v41 }
 0x55e   : > { %5827 = vst.msk [vmem:[%s9817_s9 + $0x18] sm:$0xff] %vm405_vm2, %v5795_v1  ;;  %6585 = vmatmul.msk.f32.gmra.mxu2 %vm349_vm0, %v5563_v9  ;;  %v9885_v1 = vpop.f32.mrf.mxu0  ;;  %v4922_v41 = vadd.f32 %v9863_v39, %v9587_v49  ;;  %v4923_v39 = vadd.f32 %v9880_v18, %v9600_v11 }
 0x561   : > { %v5708_v56 = vpop.f32.mrf.mxu2 }
 0x562   : > { %v5709_v10 = vadd.f32 %v9810_v29, %v5708_v56  ;;  %v5394_v36 = vpop.f32.mrf.mxu1  ;;  %v9894_v56 = vpop.f32.mrf.mxu3 }
 0x563   : > { %v5480_v58 = vadd.f32 %v5394_v36, %v9707_v33  ;;  %v4924_v11 = vadd.f32 %v9894_v56, %v9613_v16 }
 0x564   : > { %v5796_v13 = vadd.f32 %v5709_v10, %v5515_v48 }
 0x565   : > { %6554 = vmatmul.msk.f32.gmra.mxu1 %vm405_vm2, %v5246_v61  ;;  %v5516_v63 = vadd.f32 %v9803_v44, %v5480_v58  ;;  %v5249_v58 = vld [vmem:[#allocation3 + $0x152] sm:$0xff] }
 0x566   : > { %5828 = vst.msk [vmem:[%s9817_s9 + $0x20] sm:$0xff] %vm405_vm2, %v5796_v13  ;;  %6586 = vmatmul.msk.f32.gmra.mxu2 %vm349_vm0, %v5564_v47  ;;  %v5567_v13 = vld [vmem:[%s7074_s23 + $0xc0] sm:$0xff]  ;;  %v9904_v32 = vpop.f32.mrf.mxu0 }
 0x569   : > { %v5711_v24 = vpop.f32.mrf.mxu2 }
 0x56a   : > { %v5712_v21 = vadd.f32 %v9810_v29, %v5711_v24  ;;  %v5397_v27 = vpop.f32.mrf.mxu1 }
 0x56b   : > { %v5481_v33 = vadd.f32 %v5397_v27, %v9718_v52 }
 0x56c   : > { %v5797_v25 = vadd.f32 %v5712_v21, %v5516_v63 }
 0x56d   : > { %6555 = vmatmul.msk.f32.gmra.mxu1 %vm405_vm2, %v5247_v3  ;;  %v5517_v62 = vadd.f32 %v9803_v44, %v5481_v33  ;;  %v5202_v33 = vadd.f32 %v9846_v54, %v4920_v42 }
 0x56e   : > { %5829 = vst.msk [vmem:[%s9817_s9 + $0x28] sm:$0xff] %vm405_vm2, %v5797_v25  ;;  %6587 = vmatmul.msk.f32.gmra.mxu2 %vm349_vm0, %v5565_v60  ;;  %v5568_v25 = vld [vmem:[%s7074_s23 + $0xc8] sm:$0xff]  ;;  %v9920_v22 = vpop.f32.mrf.mxu0 }
 0x571   : > { %v5714_v5 = vpop.f32.mrf.mxu2 }
 0x572   : > { %v5715_v31 = vadd.f32 %v9810_v29, %v5714_v5  ;;  %v5400_v35 = vpop.f32.mrf.mxu1  ;;  %v5250_v5 = vld [vmem:[#allocation3 + $0x15a] sm:$0xff] }
 0x573   : > { %v5482_v52 = vadd.f32 %v5400_v35, %v9729_v46  ;;  %v5201_v46 = vadd.f32 %v9829_v40, %v4919_v7  ;;  %v9910_v40 = vpop.f32.mrf.mxu3 }
 0x574   : > { %v5798_v9 = vadd.f32 %v5715_v31, %v5517_v62  ;;  %v4925_v56 = vadd.f32 %v9910_v40, %v9628_v8 }
 0x575   : > { %6556 = vmatmul.msk.f32.gmra.mxu1 %vm405_vm2, %v5248_v38  ;;  %v5518_v10 = vadd.f32 %v9803_v44, %v5482_v52  ;;  %v5203_v52 = vadd.f32 %v9858_v2, %v4921_v30 }
 0x576   : > { %5830 = vst.msk [vmem:[%s9817_s9 + $0x30] sm:$0xff] %vm405_vm2, %v5798_v9  ;;  %6588 = vmatmul.msk.f32.gmra.mxu2 %vm349_vm0, %v5566_v23  ;;  %v5569_v9 = vld [vmem:[%s7074_s23 + $0xd0] sm:$0xff] }
 0x579   : > { %v5717_v48 = vpop.f32.mrf.mxu2 }
 0x57a   : > { %v5718_v36 = vadd.f32 %v9810_v29, %v5717_v48  ;;  %v5403_v47 = vpop.f32.mrf.mxu1  ;;  %v5251_v48 = vld [vmem:[#allocation3 + $0x16a] sm:$0xff] }
 0x57b   : > { %v5483_v24 = vadd.f32 %v5403_v47, %v5201_v46  ;;  %v4860_v7 = vpop.f32.mrf.mxu3 }
 0x57c   : > { %v5799_v61 = vadd.f32 %v5718_v36, %v5518_v10  ;;  %v4926_v8 = vadd.f32 %v4860_v7, %v9643_v50 }
 0x57d   : > { %6557 = vmatmul.msk.f32.gmra.mxu1 %vm405_vm2, %v5249_v58  ;;  %v5519_v21 = vadd.f32 %v9803_v44, %v5483_v24  ;;  %v5204_v58 = vadd.f32 %v9872_v45, %v4922_v41  ;;  %v5252_v24 = vld [vmem:[#allocation3 + $0x172] sm:$0xff]  ;;  %v5573_v41 = vld [vmem:[%s7074_s23 + $0xf0] sm:$0xff] }
 0x57e   : > { %5831 = vst.msk [vmem:[%s9817_s9 + $0x38] sm:$0xff] %vm405_vm2, %v5799_v61  ;;  %6589 = vmatmul.msk.f32.gmra.mxu2 %vm349_vm0, %v5567_v13  ;;  %v5142_v13 = vpop.f32.mrf.mxu0  ;;  %v5570_v61 = vld [vmem:[%s7074_s23 + $0xd8] sm:$0xff] }
 0x581   : > { %v5720_v63 = vpop.f32.mrf.mxu2 }
 0x582   : > { %v5721_v27 = vadd.f32 %v9810_v29, %v5720_v63  ;;  %v5406_v60 = vpop.f32.mrf.mxu1 }
 0x583   : > { %v5484_v62 = vadd.f32 %v5406_v60, %v5202_v33  ;;  %v4863_v49 = vpop.f32.mrf.mxu3  ;;  %v5571_v60 = vld [vmem:[%s7074_s23 + $0xe0] sm:$0xff] }
 0x584   : > { %v5800_v3 = vadd.f32 %v5721_v27, %v5519_v21  ;;  %v4927_v50 = vadd.f32 %v4863_v49, %v9654_v43 }
 0x585   : > { %6558 = vmatmul.msk.f32.gmra.mxu1 %vm405_vm2, %v5250_v5  ;;  %v5520_v35 = vadd.f32 %v9803_v44, %v5484_v62 }
 0x586   : > { %5832 = vst.msk [vmem:[%s9817_s9 + $0x40] sm:$0xff] %vm405_vm2, %v5800_v3  ;;  %6590 = vmatmul.msk.f32.gmra.mxu2 %vm349_vm0, %v5568_v25  ;;  %v5205_v3 = vadd.f32 %v9885_v1, %v4923_v39  ;;  %v5145_v33 = vpop.f32.mrf.mxu0  ;;  %v5572_v1 = vld [vmem:[%s7074_s23 + $0xe8] sm:$0xff] }
 0x589   : > { %v5723_v31 = vpop.f32.mrf.mxu2 }
 0x58a   : > { %v5724_v23 = vadd.f32 %v9810_v29, %v5723_v31  ;;  %v5409_v54 = vpop.f32.mrf.mxu1 }
 0x58b   : > { %v5485_v10 = vadd.f32 %v5409_v54, %v5203_v52  ;;  %v4866_v18 = vpop.f32.mrf.mxu3  ;;  %v5206_v54 = vadd.f32 %v9904_v32, %v4924_v11 }
 0x58c   : > { %v5801_v38 = vadd.f32 %v5724_v23, %v5520_v35  ;;  %v4928_v11 = vadd.f32 %v4866_v18, %v9665_v0 }
 0x58d   : > { %6559 = vmatmul.msk.f32.gmra.mxu1 %vm405_vm2, %v5251_v48  ;;  %v5521_v36 = vadd.f32 %v9803_v44, %v5485_v10  ;;  %v5255_v10 = vld [vmem:[#allocation3 + $0x19a] sm:$0xff] }
 0x58e   : > { %5833 = vst.msk [vmem:[%s9817_s9 + $0x48] sm:$0xff] %vm405_vm2, %v5801_v38  ;;  %6591 = vmatmul.msk.f32.gmra.mxu2 %vm349_vm0, %v5569_v9  ;;  %v5148_v16 = vpop.f32.mrf.mxu0 }
 0x591   : > { %v5726_v17 = vpop.f32.mrf.mxu2 }
 0x592   : > { %v5727_v47 = vadd.f32 %v9810_v29, %v5726_v17  ;;  %v5412_v2 = vpop.f32.mrf.mxu1 }
 0x593   : > { %v5486_v42 = vadd.f32 %v5412_v2, %v5204_v58  ;;  %v4869_v48 = vpop.f32.mrf.mxu3  ;;  %v5256_v58 = vld [vmem:[#allocation3 + $0x1a2] sm:$0xff] }
 0x594   : > { %v5802_v46 = vadd.f32 %v5727_v47, %v5521_v36  ;;  %v5207_v36 = vadd.f32 %v9920_v22, %v4925_v56 }
 0x595   : > { %6560 = vmatmul.msk.f32.gmra.mxu1 %vm405_vm2, %v5252_v24  ;;  %v5522_v21 = vadd.f32 %v9803_v44, %v5486_v42  ;;  %v5574_v24 = vld [vmem:[%s7074_s23 + $0xf8] sm:$0xff]  ;;  %v5208_v42 = vadd.f32 %v5142_v13, %v4926_v8  ;;  %v5209_v13 = vadd.f32 %v5145_v33, %v4927_v50  ;;  %v4929_v33 = vadd.f32 %v4869_v48, %v9676_v57  ;;  %s5869_s23 = sshll.u32 %s9817_s9, 4  ;;  %s5870_s23 = int_to_ptr.vmem [resolvable:$true] %s5869_s23 }
 0x596   : > { %5834 = vst.msk [vmem:[%s9817_s9 + $0x50] sm:$0xff] %vm405_vm2, %v5802_v46  ;;  %6592 = vmatmul.msk.f32.gmra.mxu2 %vm349_vm0, %v5570_v61  ;;  %v5151_v40 = vpop.f32.mrf.mxu0 }
 0x599   : > { %v5729_v63 = vpop.f32.mrf.mxu2 }
 0x59a   : > { %v5730_v27 = vadd.f32 %v9810_v29, %v5729_v63  ;;  %v5415_v45 = vpop.f32.mrf.mxu1 }
 0x59b   : > { %v5487_v5 = vadd.f32 %v5415_v45, %v5205_v3  ;;  %v4872_v39 = vpop.f32.mrf.mxu3 }
 0x59c   : > { %v5803_v25 = vadd.f32 %v5730_v27, %v5522_v21 }
 0x59d   : > { %6561 = vmatmul.msk.f32.gmra.mxu1 %vm405_vm2, %v9617_v59  ;;  %v5523_v30 = vadd.f32 %v9803_v44, %v5487_v5 }
 0x59e   : > { %5835 = vst.msk [vmem:[%s9817_s9 + $0x58] sm:$0xff] %vm405_vm2, %v5803_v25  ;;  %6593 = vmatmul.msk.f32.gmra.mxu2 %vm349_vm0, %v5571_v60  ;;  %v5154_v45 = vpop.f32.mrf.mxu0 }
 0x5a1   : > { %v5732_v62 = vpop.f32.mrf.mxu2 }
 0x5a2   : > { %v5733_v31 = vadd.f32 %v9810_v29, %v5732_v62  ;;  %v5418_v35 = vpop.f32.mrf.mxu1 }
 0x5a3   : > { %v5488_v59 = vadd.f32 %v5418_v35, %v5206_v54  ;;  %v4875_v5 = vpop.f32.mrf.mxu3  ;;  %v5210_v35 = vadd.f32 %v5148_v16, %v4928_v11 }
 0x5a4   : > { %v5804_v23 = vadd.f32 %v5733_v31, %v5523_v30 }
 0x5a5   : > { %6562 = vmatmul.msk.f32.gmra.mxu1 %vm405_vm2, %v9632_v4  ;;  %v5524_v38 = vadd.f32 %v9803_v44, %v5488_v59 }
 0x5a6   : > { %5836 = vst.msk [vmem:[%s9817_s9 + $0x60] sm:$0xff] %vm405_vm2, %v5804_v23  ;;  %6594 = vmatmul.msk.f32.gmra.mxu2 %vm349_vm0, %v5572_v1  ;;  %v5157_v1 = vpop.f32.mrf.mxu0 }
 0x5a9   : > { %v5735_v9 = vpop.f32.mrf.mxu2 }
 0x5aa   : > { %v5736_v52 = vadd.f32 %v9810_v29, %v5735_v9  ;;  %v5421_v32 = vpop.f32.mrf.mxu1 }
 0x5ab   : > { %v5489_v4 = vadd.f32 %v5421_v32, %v5207_v36  ;;  %v4878_v54 = vpop.f32.mrf.mxu3  ;;  %v4930_v32 = vadd.f32 %v4872_v39, %v9687_v15 }
 0x5ac   : > { %v5805_v17 = vadd.f32 %v5736_v52, %v5524_v38  ;;  %v5211_v38 = vadd.f32 %v5151_v40, %v4929_v33  ;;  %v4931_v40 = vadd.f32 %v4875_v5, %v9698_v28  ;;  %v4932_v39 = vadd.f32 %v4878_v54, %v9709_v20 }
 0x5ad   : > { %6563 = vmatmul.msk.f32.gmra.mxu1 %vm405_vm2, %v5255_v10  ;;  %v5525_v2 = vadd.f32 %v9803_v44, %v5489_v4  ;;  %v5212_v4 = vadd.f32 %v5154_v45, %v4930_v32 }
 0x5ae   : > { %5837 = vst.msk [vmem:[%s9817_s9 + $0x68] sm:$0xff] %vm405_vm2, %v5805_v17  ;;  %6595 = vmatmul.msk.f32.gmra.mxu2 %vm349_vm0, %v5573_v41  ;;  %v5160_v16 = vpop.f32.mrf.mxu0 }
 0x5af   : > { %v5214_v45 = vadd.f32 %v5160_v16, %v4932_v39 }
 0x5b1   : > { %v5738_v47 = vpop.f32.mrf.mxu2 }
 0x5b2   : > { %v5739_v61 = vadd.f32 %v9810_v29, %v5738_v47  ;;  %v5424_v46 = vpop.f32.mrf.mxu1 }
 0x5b3   : > { %v5490_v63 = vadd.f32 %v5424_v46, %v5208_v42  ;;  %v4881_v48 = vpop.f32.mrf.mxu3 }
 0x5b4   : > { %v5806_v22 = vadd.f32 %v5739_v61, %v5525_v2 }
 0x5b5   : > { %6564 = vmatmul.msk.f32.gmra.mxu1 %vm405_vm2, %v5256_v58  ;;  %v5526_v21 = vadd.f32 %v9803_v44, %v5490_v63 }
 0x5b6   : > { %5838 = vst.msk [vmem:[%s9817_s9 + $0x70] sm:$0xff] %vm405_vm2, %v5806_v22  ;;  %6596 = vmatmul.msk.f32.gmra.mxu2 %vm349_vm0, %v5574_v24  ;;  %v5163_v47 = vpop.f32.mrf.mxu0  ;;  %v5213_v24 = vadd.f32 %v5157_v1, %v4931_v40 }
 0x5b9   : > { %v5741_v7 = vpop.f32.mrf.mxu2 }
 0x5ba   : > { %v5742_v27 = vadd.f32 %v9810_v29, %v5741_v7  ;;  %v5427_v60 = vpop.f32.mrf.mxu1 }
 0x5bb   : > { %v5491_v3 = vadd.f32 %v5427_v60, %v5209_v13  ;;  %v4884_v22 = vpop.f32.mrf.mxu3  ;;  %v4933_v13 = vadd.f32 %v4881_v48, %v9720_v26 }
 0x5bc   : > { %v5807_v25 = vadd.f32 %v5742_v27, %v5526_v21 }
 0x5bd   : > { %v5527_v30 = vadd.f32 %v9803_v44, %v5491_v3 }
 0x5be   : > { %5839 = vst.msk [vmem:[%s9817_s9 + $0x78] sm:$0xff] %vm405_vm2, %v5807_v25  ;;  %v5166_v7 = vpop.f32.mrf.mxu0 }
 0x5c1   : > { %v5744_v62 = vpop.f32.mrf.mxu2 }
 0x5c2   : > { %v5745_v43 = vadd.f32 %v9810_v29, %v5744_v62  ;;  %v5430_v49 = vpop.f32.mrf.mxu1 }
 0x5c3   : > { %v5492_v23 = vadd.f32 %v5430_v49, %v5210_v35  ;;  %v4887_v25 = vpop.f32.mrf.mxu3 }
 0x5c4   : > { %v5808_v31 = vadd.f32 %v5745_v43, %v5527_v30  ;;  %v5215_v30 = vadd.f32 %v5163_v47, %v4933_v13 }
 0x5c5   : > { %v5528_v56 = vadd.f32 %v9803_v44, %v5492_v23 }
 0x5c6   : > { %5840 = vst.msk [vmem:[%s9817_s9 + $0x80] sm:$0xff] %vm405_vm2, %v5808_v31  ;;  %v5169_v43 = vpop.f32.mrf.mxu0  ;;  %v4934_v31 = vadd.f32 %v4884_v22, %v9731_v55 }
 0x5c9   : > { %v5747_v59 = vpop.f32.mrf.mxu2 }
 0x5ca   : > { %v5748_v0 = vadd.f32 %v9810_v29, %v5747_v59  ;;  %v5433_v18 = vpop.f32.mrf.mxu1  ;;  %v5216_v59 = vadd.f32 %v5166_v7, %v4934_v31 }
 0x5cb   : > { %v5493_v52 = vadd.f32 %v5433_v18, %v5211_v38  ;;  %v4890_v35 = vpop.f32.mrf.mxu3  ;;  %v4935_v18 = vadd.f32 %v4887_v25, %v9739_v37 }
 0x5cc   : > { %v5809_v9 = vadd.f32 %v5748_v0, %v5528_v56 }
 0x5cd   : > { %v5529_v41 = vadd.f32 %v9803_v44, %v5493_v52 }
 0x5ce   : > { %5841 = vst.msk [vmem:[%s9817_s9 + $0x88] sm:$0xff] %vm405_vm2, %v5809_v9  ;;  %v5172_v0 = vpop.f32.mrf.mxu0 }
 0x5d1   : > { %v5750_v10 = vpop.f32.mrf.mxu2 }
 0x5d2   : > { %v5751_v57 = vadd.f32 %v9810_v29, %v5750_v10  ;;  %v5436_v17 = vpop.f32.mrf.mxu1  ;;  %v5217_v10 = vadd.f32 %v5169_v43, %v4935_v18 }
 0x5d3   : > { %v5494_v8 = vadd.f32 %v5436_v17, %v5212_v4  ;;  %v4893_v52 = vpop.f32.mrf.mxu3 }
 0x5d4   : > { %v5810_v36 = vadd.f32 %v5751_v57, %v5529_v41  ;;  %v4936_v57 = vadd.f32 %v4890_v35, %v9747_v53 }
 0x5d5   : > { %v5530_v61 = vadd.f32 %v9803_v44, %v5494_v8 }
 0x5d6   : > { %5842 = vst.msk [vmem:[%s9817_s9 + $0x90] sm:$0xff] %vm405_vm2, %v5810_v36  ;;  %v5175_v48 = vpop.f32.mrf.mxu0  ;;  %v5218_v40 = vadd.f32 %v5172_v0, %v4936_v57 }
 0x5d9   : > { %v5753_v2 = vpop.f32.mrf.mxu2 }
 0x5da   : > { %v5754_v15 = vadd.f32 %v9810_v29, %v5753_v2  ;;  %v5439_v46 = vpop.f32.mrf.mxu1 }
 0x5db   : > { %v5495_v42 = vadd.f32 %v5439_v46, %v5213_v24  ;;  %v4896_v47 = vpop.f32.mrf.mxu3 }
 0x5dc   : > { %v5811_v58 = vadd.f32 %v5754_v15, %v5530_v61  ;;  %v4937_v61 = vadd.f32 %v4893_v52, %v9755_v51 }
 0x5dd   : > { %v5531_v50 = vadd.f32 %v9803_v44, %v5495_v42 }
 0x5de   : > { %5843 = vst.msk [vmem:[%s9817_s9 + $0x98] sm:$0xff] %vm405_vm2, %v5811_v58  ;;  %v5178_v58 = vpop.f32.mrf.mxu0  ;;  %v5219_v42 = vadd.f32 %v5175_v48, %v4937_v61 }
 0x5e1   : > { %v5756_v63 = vpop.f32.mrf.mxu2 }
 0x5e2   : > { %v5757_v28 = vadd.f32 %v9810_v29, %v5756_v63  ;;  %v5442_v21 = vpop.f32.mrf.mxu1 }
 0x5e3   : > { %v5496_v60 = vadd.f32 %v5442_v21, %v5214_v45  ;;  %v4899_v63 = vpop.f32.mrf.mxu3 }
 0x5e4   : > { %v5812_v27 = vadd.f32 %v5757_v28, %v5531_v50  ;;  %v4938_v50 = vadd.f32 %v4896_v47, %v9763_v6  ;;  %v4939_v13 = vadd.f32 %v4899_v63, %v9772_v19 }
 0x5e5   : > { %v5532_v5 = vadd.f32 %v9803_v44, %v5496_v60 }
 0x5e6   : > { %5844 = vst.msk [vmem:[%s9817_s9 + $0xa0] sm:$0xff] %vm405_vm2, %v5812_v27  ;;  %v5220_v45 = vadd.f32 %v5178_v58, %v4938_v50  ;;  %v5181_v60 = vpop.f32.mrf.mxu0 }
 0x5e9   : > { %v5759_v3 = vpop.f32.mrf.mxu2 }
 0x5ea   : > { %v5760_v20 = vadd.f32 %v9810_v29, %v5759_v3  ;;  %v5445_v11 = vpop.f32.mrf.mxu1 }
 0x5eb   : > { %v5497_v49 = vadd.f32 %v5445_v11, %v5215_v30  ;;  %v4902_v3 = vpop.f32.mrf.mxu3  ;;  %v5221_v30 = vadd.f32 %v5181_v60, %v4939_v13 }
 0x5ec   : > { %v5813_v62 = vadd.f32 %v5760_v20, %v5532_v5  ;;  %v4940_v31 = vadd.f32 %v4902_v3, %v9781_v34 }
 0x5ed   : > { %v5533_v23 = vadd.f32 %v9803_v44, %v5497_v49 }
 0x5ee   : > { %5845 = vst.msk [vmem:[%s9817_s9 + $0xa8] sm:$0xff] %vm405_vm2, %v5813_v62  ;;  %v5184_v49 = vpop.f32.mrf.mxu0 }
 0x5f1   : > { %v5762_v1 = vpop.f32.mrf.mxu2 }
 0x5f2   : > { %v5763_v26 = vadd.f32 %v9810_v29, %v5762_v1  ;;  %v5448_v33 = vpop.f32.mrf.mxu1 }
 0x5f3   : > { %v5498_v56 = vadd.f32 %v5448_v33, %v5216_v59 }
 0x5f4   : > { %v5814_v54 = vadd.f32 %v5763_v26, %v5533_v23  ;;  %v4905_v23 = vpop.f32.mrf.mxu3 }
 0x5f5   : > { %v5534_v38 = vadd.f32 %v9803_v44, %v5498_v56  ;;  %v4941_v0 = vadd.f32 %v4905_v23, %v9789_v12 }
 0x5f6   : > { %5846 = vst.msk [vmem:[%s9817_s9 + $0xb0] sm:$0xff] %vm405_vm2, %v5814_v54  ;;  %v5222_v54 = vadd.f32 %v5184_v49, %v4940_v31  ;;  %v5187_v56 = vpop.f32.mrf.mxu0 }
 0x5f9   : > { %v5765_v9 = vpop.f32.mrf.mxu2 }
 0x5fa   : > { %v5766_v55 = vadd.f32 %v9810_v29, %v5765_v9  ;;  %v5451_v16 = vpop.f32.mrf.mxu1 }
 0x5fb   : > { %v5499_v41 = vadd.f32 %v5451_v16, %v5217_v10 }
 0x5fc   : > { %v5815_v32 = vadd.f32 %v5766_v55, %v5534_v38  ;;  %v5223_v55 = vadd.f32 %v5187_v56, %v4941_v0  ;;  %v4908_v16 = vpop.f32.mrf.mxu3 }
 0x5fd   : > { %v5535_v36 = vadd.f32 %v9803_v44, %v5499_v41  ;;  %v4942_v10 = vadd.f32 %v4908_v16, %v9796_v14 }
 0x5fe   : > { %5847 = vst.msk [vmem:[%s9817_s9 + $0xb8] sm:$0xff] %vm405_vm2, %v5815_v32  ;;  %v5190_v41 = vpop.f32.mrf.mxu0 }
 0x601   : > { %v5768_v17 = vpop.f32.mrf.mxu2 }
 0x602   : > { %v5769_v37 = vadd.f32 %v9810_v29, %v5768_v17  ;;  %v5454_v4 = vpop.f32.mrf.mxu1 }
 0x603   : > { %v5500_v2 = vadd.f32 %v5454_v4, %v5218_v40 }
 0x604   : > { %v5816_v8 = vadd.f32 %v5769_v37, %v5535_v36  ;;  %v5224_v36 = vadd.f32 %v5190_v41, %v4942_v10 }
 0x605   : > { %v5536_v46 = vadd.f32 %v9803_v44, %v5500_v2 }
 0x606   : > { %5848 = vst.msk [vmem:[%s9817_s9 + $0xc0] sm:$0xff] %vm405_vm2, %v5816_v8 }
 0x609   : > { %v5771_v15 = vpop.f32.mrf.mxu2 }
 0x60a   : > { %v5772_v53 = vadd.f32 %v9810_v29, %v5771_v15  ;;  %v5457_v24 = vpop.f32.mrf.mxu1 }
 0x60b   : > { %v5501_v39 = vadd.f32 %v5457_v24, %v5219_v42 }
 0x60c   : > { %v5817_v22 = vadd.f32 %v5772_v53, %v5536_v46 }
 0x60d   : > { %v5537_v7 = vadd.f32 %v9803_v44, %v5501_v39 }
 0x60e   : > { %5849 = vst.msk [vmem:[%s9817_s9 + $0xc8] sm:$0xff] %vm405_vm2, %v5817_v22 }
 0x611   : > { %v5774_v28 = vpop.f32.mrf.mxu2 }
 0x612   : > { %v5775_v51 = vadd.f32 %v9810_v29, %v5774_v28  ;;  %v5460_v21 = vpop.f32.mrf.mxu1 }
 0x613   : > { %v5502_v25 = vadd.f32 %v5460_v21, %v5220_v45 }
 0x614   : > { %v5818_v27 = vadd.f32 %v5775_v51, %v5537_v7 }
 0x615   : > { %v5538_v20 = vadd.f32 %v9803_v44, %v5502_v25 }
 0x616   : > { %5850 = vst.msk [vmem:[%s9817_s9 + $0xd0] sm:$0xff] %vm405_vm2, %v5818_v27 }
 0x619   : > { %v5777_v5 = vpop.f32.mrf.mxu2 }
 0x61a   : > { %v5778_v6 = vadd.f32 %v9810_v29, %v5777_v5  ;;  %v5463_v11 = vpop.f32.mrf.mxu1 }
 0x61b   : > { %v5503_v43 = vadd.f32 %v5463_v11, %v5221_v30 }
 0x61c   : > { %v5819_v62 = vadd.f32 %v5778_v6, %v5538_v20 }
 0x61d   : > { %v5539_v1 = vadd.f32 %v9803_v44, %v5503_v43 }
 0x61e   : > { %5851 = vst.msk [vmem:[%s9817_s9 + $0xd8] sm:$0xff] %vm405_vm2, %v5819_v62 }
 0x621   : > { %v5780_v35 = vpop.f32.mrf.mxu2 }
 0x622   : > { %v5781_v19 = vadd.f32 %v9810_v29, %v5780_v35  ;;  %v5466_v26 = vpop.f32.mrf.mxu1 }
 0x623   : > { %v5504_v59 = vadd.f32 %v5466_v26, %v5222_v54 }
 0x624   : > { %v5820_v33 = vadd.f32 %v5781_v19, %v5539_v1 }
 0x625   : > { %v5540_v34 = vadd.f32 %v9803_v44, %v5504_v59 }
 0x626   : > { %5852 = vst.msk [vmem:[%s9817_s9 + $0xe0] sm:$0xff] %vm405_vm2, %v5820_v33 }
 0x629   : > { %v5783_v18 = vpop.f32.mrf.mxu2 }
 0x62a   : > { %v5784_v9 = vadd.f32 %v9810_v29, %v5783_v18  ;;  %v5469_v38 = vpop.f32.mrf.mxu1 }
 0x62b   : > { %v5505_v32 = vadd.f32 %v5469_v38, %v5223_v55 }
 0x62c   : > { %v5821_v52 = vadd.f32 %v5784_v9, %v5540_v34 }
 0x62d   : > { %v5541_v12 = vadd.f32 %v9803_v44, %v5505_v32 }
 0x62e   : > { %5853 = vst.msk [vmem:[%s9817_s9 + $0xe8] sm:$0xff] %vm405_vm2, %v5821_v52 }
 0x631   : > { %v5786_v57 = vpop.f32.mrf.mxu2 }
 0x632   : > { %v5787_v48 = vadd.f32 %v9810_v29, %v5786_v57  ;;  %v5472_v17 = vpop.f32.mrf.mxu1 }
 0x633   : > { %v5506_v14 = vadd.f32 %v5472_v17, %v5224_v36 }
 0x634   : > { %v5822_v37 = vadd.f32 %v5787_v48, %v5541_v12 }
 0x635   : > { %v5542_v8 = vadd.f32 %v9803_v44, %v5506_v14 }
 0x636   : > { %5854 = vst.msk [vmem:[%s9817_s9 + $0xf0] sm:$0xff] %vm405_vm2, %v5822_v37 }
 0x639   : > { %v5789_v4 = vpop.f32.mrf.mxu2 }
 0x63a   : > { %v5790_v40 = vadd.f32 %v9810_v29, %v5789_v4 }
 0x63c   : > { %v5823_v47 = vadd.f32 %v5790_v40, %v5542_v8 }
 0x63e   : > { %5855 = vst.msk [vmem:[%s9817_s9 + $0xf8] sm:$0xff] %vm405_vm2, %v5823_v47 }
 0x63f   : > { %6850 = shalt.err (!%p6847_p10)
}
 0x640   : > { %s6905_s15 = smov 128   ;;  %s6906_s9 = smov 8  }
 0x641   : > { %6630 = dma.vmem_to_hbm [thread:$0]  (%p7038_p3), %s5870_s23, 4096, %s5872_s30, %s5857_s28, %s6905_s15, %s6905_s15, %s6906_s9  }
 0x642 PF: > { %s5886_s21 = sand.u32 1, %s6885_s24   ;;  %p10551_p12 = scmp.ge.s32.totalorder %s6897_s27, 2 }
 0x643   : > { %s5887_s11 = scalar_lea.sflag [#allocation6], %s5886_s21 }
 0x644   : > { %p6647_p13 = pnand %p10551_p12, %p6982_p6 }
 0x646   : > { %p6648_p0 = pneg %p6647_p13 }
 0x648   : > { %6880 = dma.done.wait (%p6648_p0), %s5887_s11, 4096  }
 0x649   : > { %6882 = vsyncadd (%p6648_p0), %s5887_s11, 4294963200  ;;  %p22_p5 = scmp.ge.s32.totalorder %s7020_s13, 4   ;;  %s10552_s24 = smov %s6889_s25 }
 0x64a   : > { %s10553_s25 = smov %s6893_s26  ;;  %s10554_s26 = smov %s7034_s17 }
 0x64b   : > { %s10555_s27 = smov %s7020_s13  ;;  %24 = sbr.rel (!%p22_p5) target bundleno = 9 (0x9), region = 125 }
 0x650   :  { %5893 = vsyncpa [#allocation5], 1 }
 0x651   :  { %5895 = vsyncpa [#allocation5 + $0x1], 1 }
 0x652   :  { %5896 = vsyncpa [#allocation8], 1 }
 0x653   :  { %5897 = vsyncpa [#allocation11], 1 }
 0x654   :  { %5898 = vsyncpa [#allocation6], 1 }
 0x655   :  { %5900 = vsyncpa [#allocation6 + $0x1], 1 }

</bundles_post_ra>
